<compile_context>
chip_gen: v7x
topology: tpu7x:2x2x1
jax: 0.10.0
libtpu: 0.0.40
codegen_flags: <defaults>
</compile_context>

<pallas_src>
from functools import partial

import jax
import jax.numpy as jnp
from jax import lax
from jax.experimental import pallas as pl
from jax.experimental.pallas import tpu as pltpu


def _round_tile(m, target):
    """Largest multiple of 8 that is <= min(target, m) (and >= 8)."""
    t = min(target, m)
    return max(8, (t // 8) * 8)


# ----------------------------------------------------------------------------
# Kernel 1: fused 1x1x1 conv (matmul) + folded BN affine (+ residual) (+ ReLU)
# ----------------------------------------------------------------------------
def _pointwise_kernel(*refs, relu, has_res):
    if has_res:
        x_ref, w_ref, s_ref, b_ref, r_ref, o_ref = refs
    else:
        x_ref, w_ref, s_ref, b_ref, o_ref = refs
    # bf16 MXU inputs, f32 accumulation.
    y = jnp.dot(x_ref[...].astype(w_ref.dtype), w_ref[...],
                preferred_element_type=jnp.float32)
    y = y * s_ref[...] + b_ref[...]
    if has_res:
        y = y + r_ref[...].astype(jnp.float32)
    if relu:
        y = jnp.maximum(y, 0.0)
    o_ref[...] = y.astype(o_ref.dtype)


def pointwise_conv_bn(x2d, w, scale, shift, *, relu=True, residual=None,
                      out_dtype=None, tm=512):
    """act((x2d @ w) * scale + shift [+ residual]), tiled+pipelined over rows."""
    M, Cin = x2d.shape
    Cout = w.shape[1]
    out_dtype = x2d.dtype if out_dtype is None else out_dtype
    tm = _round_tile(M, tm)
    mp = pl.cdiv(M, tm) * tm
    if mp > M:
        x2d = jnp.pad(x2d, ((0, mp - M), (0, 0)))
        if residual is not None:
            residual = jnp.pad(residual, ((0, mp - M), (0, 0)))

    in_specs = [
        pl.BlockSpec((tm, Cin), lambda i: (i, 0)),
        pl.BlockSpec((Cin, Cout), lambda i: (0, 0)),
        pl.BlockSpec((1, Cout), lambda i: (0, 0)),
        pl.BlockSpec((1, Cout), lambda i: (0, 0)),
    ]
    args = [x2d, w, scale, shift]
    if residual is not None:
        in_specs.append(pl.BlockSpec((tm, Cout), lambda i: (i, 0)))
        args.append(residual)

    isz = lambda a: jnp.dtype(a.dtype).itemsize
    bytes_accessed = (mp * Cin * isz(x2d) + Cin * Cout * isz(w)
                      + mp * Cout * jnp.dtype(out_dtype).itemsize)
    if residual is not None:
        bytes_accessed += mp * Cout * isz(residual)

    out = pl.pallas_call(
        partial(_pointwise_kernel, relu=relu, has_res=residual is not None),
        out_shape=jax.ShapeDtypeStruct((mp, Cout), out_dtype),
        grid=(mp // tm,),
        in_specs=in_specs,
        out_specs=pl.BlockSpec((tm, Cout), lambda i: (i, 0)),
        compiler_params=pltpu.CompilerParams(
            dimension_semantics=("parallel",)),
        cost_estimate=pl.CostEstimate(flops=int(2 * mp * Cin * Cout),
                                      transcendentals=0,
                                      bytes_accessed=int(bytes_accessed)),
    )(*args)
    return out[:M] if mp > M else out


# ----------------------------------------------------------------------------
# Kernel 2: 3x3x3 conv (stride 1, pad 1) + folded BN affine + ReLU
#   Rows = flattened (D+2, H+2, W) padded volume, lanes = 3*P (W-im2col).
#   Each (kd, kh) tap is a contiguous row-window matmul with K = 3*P;
#   pad/garbage rows are discarded by the wrapper.
# ----------------------------------------------------------------------------
def _conv3x3x3_kernel(x_ref, w_ref, s_ref, b_ref, o_ref, acc_ref,
                      *, tm, sd, sh):
    j = pl.program_id(1)
    m0 = pl.multiple_of(j * tm, 8)

    def win(t):                              # contiguous row window for tap t
        kd, kh = divmod(t, 3)
        return x_ref[0, pl.ds(m0 + kd * sd + kh * sh, tm), :]

    # First tap initializes the f32 accumulator (no separate zero-fill pass).
    acc_ref[...] = jnp.dot(win(0), w_ref[0],
                           preferred_element_type=jnp.float32)
    for t in range(1, 9):                    # remaining (kd, kh) taps
        acc_ref[...] += jnp.dot(win(t), w_ref[t],
                                preferred_element_type=jnp.float32)
    y = acc_ref[...] * s_ref[...] + b_ref[...]
    o_ref[...] = jnp.maximum(y, 0.0)[None].astype(o_ref.dtype)


def conv3x3x3_bn_relu(x, w, scale, shift, *, out_dtype=jnp.bfloat16, tm=256):
    """3x3x3 conv (stride 1, padding 1) + folded BN + ReLU, channels-last."""
    N, D, H, W, P = x.shape
    Cout = w.shape[-1]

    # Zero-pad the spatial volume and do a partial im2col along W only,
    # so the lane axis becomes 3*P and every tap matmul has K = 3*P.
    # TODO(synk): the pad + concat is one extra XLA pass over the (small)
    #             conv2 input; a fused halo-tiled kernel would avoid it.
    xp = jnp.pad(x, ((0, 0), (1, 1), (1, 1), (1, 1), (0, 0)))
    xp3 = jnp.concatenate([xp[:, :, :, k:k + W, :] for k in range(3)],
                          axis=-1)                       # (N, D+2, H+2, W, 3P)

    sd, sh = (H + 2) * W, W          # flat row strides for depth / height taps
    r0 = (D + 2) * (H + 2) * W
    m2 = D * (H + 2) * W             # output rows per batch (incl. discarded ph rows)
    tm = _round_tile(m2, tm)
    m2p = pl.cdiv(m2, tm) * tm
    halo = 2 * sd + 2 * sh
    r_blk = max(r0, m2p + halo)      # rows the kernel may touch ...
    r_blk = ((r_blk + 7) // 8) * 8   # ... rounded to the sublane multiple
    xp3 = xp3.reshape(N, r0, 3 * P)
    if r_blk > r0:                   # tail rows only feed discarded outputs
        xp3 = jnp.pad(xp3, ((0, 0), (0, r_blk - r0), (0, 0)))

    w9 = w.reshape(9, 3 * P, Cout)   # (kd*3+kh, kw*P+c, Cout)

    flops = 2 * N * m2p * 9 * (3 * P) * Cout
    bytes_accessed = (xp3.size * jnp.dtype(xp3.dtype).itemsize
                      + w9.size * jnp.dtype(w9.dtype).itemsize
                      + N * m2p * Cout * jnp.dtype(out_dtype).itemsize)

    out = pl.pallas_call(
        partial(_conv3x3x3_kernel, tm=tm, sd=sd, sh=sh),
        out_shape=jax.ShapeDtypeStruct((N, m2p, Cout), out_dtype),
        grid=(N, m2p // tm),
        in_specs=[
            pl.BlockSpec((1, r_blk, 3 * P), lambda n, j: (n, 0, 0)),
            pl.BlockSpec((9, 3 * P, Cout), lambda n, j: (0, 0, 0)),
            pl.BlockSpec((1, Cout), lambda n, j: (0, 0)),
            pl.BlockSpec((1, Cout), lambda n, j: (0, 0)),
        ],
        out_specs=pl.BlockSpec((1, tm, Cout), lambda n, j: (n, j, 0)),
        scratch_shapes=[pltpu.VMEM((tm, Cout), jnp.float32)],
        compiler_params=pltpu.CompilerParams(
            dimension_semantics=("parallel", "parallel")),
        cost_estimate=pl.CostEstimate(flops=int(flops), transcendentals=0,
                                      bytes_accessed=int(bytes_accessed)),
    )(xp3, w9, scale, shift)

    # Drop padded-H garbage rows and reshape back to NDHWC (one cheap HBM pass).
    out = out[:, :m2].reshape(N, D, H + 2, W, Cout)[:, :, :H]
    return out


# ----------------------------------------------------------------------------
# Bottleneck forward (stride=1, downsample=None  =>  in_planes == 4*planes)
# ----------------------------------------------------------------------------
def bottleneck_forward(x, params, *, compute_dtype=jnp.bfloat16,
                       tm_pointwise=512, tm_conv=256):
    (w1, s1, b1, w2, s2, b2, w3, s3, b3) = params
    N, D, H, W, Cin = x.shape
    P = w1.shape[1]
    C4 = w3.shape[1]
    M = N * D * H * W

    x2d = x.reshape(M, Cin)
    h1 = pointwise_conv_bn(x2d, w1.astype(compute_dtype), s1, b1,
                           relu=True, out_dtype=compute_dtype,
                           tm=tm_pointwise)                        # (M, P)
    h2 = conv3x3x3_bn_relu(h1.reshape(N, D, H, W, P),
                           w2.astype(compute_dtype), s2, b2,
                           out_dtype=compute_dtype, tm=tm_conv)    # (N,D,H,W,P)
    out2d = pointwise_conv_bn(h2.reshape(M, P), w3.astype(compute_dtype),
                              s3, b3, relu=True, residual=x2d,
                              out_dtype=x.dtype, tm=tm_pointwise)  # (M, C4)
    return out2d.reshape(N, D, H, W, C4)


# ----------------------------------------------------------------------------
# Parameter setup (deterministic) and pure-JAX reference
# ----------------------------------------------------------------------------
def fold_bn(gamma, beta, mean, var, eps=1e-5):
    scale = gamma / jnp.sqrt(var + eps)
    shift = beta - mean * scale
    return scale[None, :], shift[None, :]


def make_params(key, in_planes, planes):
    expansion = 4
    ks = jax.random.split(key, 6)
    w1 = jax.random.normal(ks[0], (in_planes, planes), jnp.float32) / jnp.sqrt(in_planes)
    w2 = jax.random.normal(ks[1], (3, 3, 3, planes, planes), jnp.float32) / jnp.sqrt(27 * planes)
    w3 = jax.random.normal(ks[2], (planes, planes * expansion), jnp.float32) / jnp.sqrt(planes)

    def bn_params(k, c):
        k1, k2, k3, k4 = jax.random.split(k, 4)
        gamma = 1.0 + 0.1 * jax.random.normal(k1, (c,), jnp.float32)
        beta = 0.1 * jax.random.normal(k2, (c,), jnp.float32)
        mean = 0.1 * jax.random.normal(k3, (c,), jnp.float32)
        var = 1.0 + 0.1 * jnp.abs(jax.random.normal(k4, (c,), jnp.float32))
        return fold_bn(gamma, beta, mean, var)

    s1, b1 = bn_params(ks[3], planes)
    s2, b2 = bn_params(ks[4], planes)
    s3, b3 = bn_params(ks[5], planes * expansion)
    return (w1, s1, b1, w2, s2, b2, w3, s3, b3)


def bottleneck_reference(x, params, compute_dtype=jnp.bfloat16):
    """Pure-JAX reference with the same bf16-input / f32-accumulate recipe."""
    (w1, s1, b1, w2, s2, b2, w3, s3, b3) = params
    dn = ('NDHWC', 'DHWIO', 'NDHWC')

    def conv(a, w, padding):
        return lax.conv_general_dilated(
            a.astype(compute_dtype), w.astype(compute_dtype), (1, 1, 1),
            padding, dimension_numbers=dn,
            preferred_element_type=jnp.float32)

    out = conv(x, w1.reshape(1, 1, 1, *w1.shape), 'VALID')
    out = jnp.maximum(out * s1 + b1, 0.0).astype(compute_dtype)
    out = conv(out, w2, 'SAME')
    out = jnp.maximum(out * s2 + b2, 0.0).astype(compute_dtype)
    out = conv(out, w3.reshape(1, 1, 1, *w3.shape), 'VALID')
    out = out * s3 + b3 + x
    return jnp.maximum(out, 0.0)


if __name__ == "__main__":
    # Small test shapes; in_planes = planes * expansion so the identity
    # residual path (downsample=None) type-checks, as in the PyTorch module.
    N, D, H, W = 2, 4, 8, 8
    planes = 64
    in_planes = planes * 4          # 256

    key = jax.random.PRNGKey(0)
    kx, kp = jax.random.split(key)
    # x in NDHWC (equivalent PyTorch NCDHW shape: (2, 256, 4, 8, 8))
    x = jax.random.normal(kx, (N, D, H, W, in_planes), jnp.float32)
    params = make_params(kp, in_planes, planes)

    # Small tiles so this tiny test actually exercises the multi-tile
    # pipelined path; production defaults are 512 / 256 rows (sweep upward,
    # staying well under v7x's 64 MiB VMEM).
    fwd = jax.jit(partial(bottleneck_forward, tm_pointwise=128, tm_conv=80))
    out = jax.block_until_ready(fwd(x, params))
    ref = jax.block_until_ready(jax.jit(bottleneck_reference)(x, params))

    assert out.shape == (N, D, H, W, in_planes), out.shape
    err = float(jnp.max(jnp.abs(out - ref)))
    assert jnp.allclose(out, ref, rtol=2e-2, atol=2e-2), err
    print("KERNEL_OK")
</pallas_src>

<mosaic_0001>
module attributes {stable_mosaic.version = 11 : i64} {
  func.func @_pointwise_kernel(%arg0: i32, %arg1: memref<128x256xf32, #tpu.memory_space<vmem>>, %arg2: memref<256x64xbf16, #tpu.memory_space<vmem>>, %arg3: memref<1x64xf32, #tpu.memory_space<vmem>>, %arg4: memref<1x64xf32, #tpu.memory_space<vmem>>, %arg5: memref<128x64xbf16, #tpu.memory_space<vmem>>) attributes {dimension_semantics = [#tpu.dimension_semantics<parallel>], iteration_bounds = array<i64: 4>, scalar_prefetch = 0 : i64, scratch_operands = 0 : i64, tpu.core_type = #tpu.core_type<tc>, window_params = [{transform_indices = @transform_0, window_bounds = array<i64: 128, 256>}, {pipeline_mode = #tpu.pipeline_mode<synchronous>, transform_indices = @transform_1, window_bounds = array<i64: 256, 64>}, {pipeline_mode = #tpu.pipeline_mode<synchronous>, transform_indices = @transform_2, window_bounds = array<i64: 1, 64>}, {pipeline_mode = #tpu.pipeline_mode<synchronous>, transform_indices = @transform_3, window_bounds = array<i64: 1, 64>}, {transform_indices = @transform_4, window_bounds = array<i64: 128, 64>}]} {
    %c0 = arith.constant 0 : index
    %c0_0 = arith.constant 0 : index
    %0 = vector.load %arg1[%c0, %c0_0] : memref<128x256xf32, #tpu.memory_space<vmem>>, vector<128x256xf32>
    %1 = arith.truncf %0 : vector<128x256xf32> to vector<128x256xbf16>
    %c0_1 = arith.constant 0 : index
    %c0_2 = arith.constant 0 : index
    %2 = vector.load %arg2[%c0_1, %c0_2] : memref<256x64xbf16, #tpu.memory_space<vmem>>, vector<256x64xbf16>
    %cst = arith.constant dense<0.000000e+00> : vector<128x64xf32>
    %3 = tpu.matmul %1, %2, %cst {dimension_numbers = #tpu.dot_dimension_numbers<[1], [0], [0], [1], [0, 0, 1, 1], [], []>} : vector<128x256xbf16>, vector<256x64xbf16>, vector<128x64xf32> -> vector<128x64xf32>
    %c0_3 = arith.constant 0 : index
    %c0_4 = arith.constant 0 : index
    %4 = vector.load %arg3[%c0_3, %c0_4] : memref<1x64xf32, #tpu.memory_space<vmem>>, vector<1x64xf32>
    %5 = vector.broadcast %4 : vector<1x64xf32> to vector<128x64xf32>
    %6 = arith.mulf %3, %5 : vector<128x64xf32>
    %c0_5 = arith.constant 0 : index
    %c0_6 = arith.constant 0 : index
    %7 = vector.load %arg4[%c0_5, %c0_6] : memref<1x64xf32, #tpu.memory_space<vmem>>, vector<1x64xf32>
    %8 = vector.broadcast %7 : vector<1x64xf32> to vector<128x64xf32>
    %9 = arith.addf %6, %8 : vector<128x64xf32>
    %cst_7 = arith.constant 0.000000e+00 : f32
    %10 = vector.broadcast %cst_7 : f32 to vector<128x64xf32>
    %11 = arith.maximumf %9, %10 : vector<128x64xf32>
    %12 = arith.truncf %11 : vector<128x64xf32> to vector<128x64xbf16>
    %c0_8 = arith.constant 0 : index
    %c0_9 = arith.constant 0 : index
    %13 = vector.load %arg5[%c0_8, %c0_9] : memref<128x64xbf16, #tpu.memory_space<vmem>>, vector<128x64xbf16>
    tpu.vector_store %arg5[%c0_8, %c0_9], %12 {strides = array<i32>} : memref<128x64xbf16, #tpu.memory_space<vmem>>, vector<128x64xbf16>,
    return
  }
  func.func @transform_0(%arg0: i32) -> (i32, i32) {
    %c0_i32 = arith.constant 0 : i32
    %c0_i32_0 = arith.constant 0 : i32
    return %arg0, %c0_i32 : i32, i32
  }
  func.func @transform_1(%arg0: i32) -> (i32, i32) {
    %c0_i32 = arith.constant 0 : i32
    %c0_i32_0 = arith.constant 0 : i32
    %c0_i32_1 = arith.constant 0 : i32
    return %c0_i32, %c0_i32_0 : i32, i32
  }
  func.func @transform_2(%arg0: i32) -> (i32, i32) {
    %c0_i32 = arith.constant 0 : i32
    %c0_i32_0 = arith.constant 0 : i32
    %c0_i32_1 = arith.constant 0 : i32
    return %c0_i32, %c0_i32_0 : i32, i32
  }
  func.func @transform_3(%arg0: i32) -> (i32, i32) {
    %c0_i32 = arith.constant 0 : i32
    %c0_i32_0 = arith.constant 0 : i32
    %c0_i32_1 = arith.constant 0 : i32
    return %c0_i32, %c0_i32_0 : i32, i32
  }
  func.func @transform_4(%arg0: i32) -> (i32, i32) {
    %c0_i32 = arith.constant 0 : i32
    %c0_i32_0 = arith.constant 0 : i32
    return %arg0, %c0_i32 : i32, i32
  }
}

module attributes {stable_mosaic.version = 11 : i64} {
  func.func @_conv3x3x3_kernel(%arg0: i32, %arg1: i32, %arg2: memref<1x496x192xbf16, #tpu.memory_space<vmem>>, %arg3: memref<9x192x64xbf16, #tpu.memory_space<vmem>>, %arg4: memref<1x64xf32, #tpu.memory_space<vmem>>, %arg5: memref<1x64xf32, #tpu.memory_space<vmem>>, %arg6: memref<1x80x64xbf16, #tpu.memory_space<vmem>>, %arg7: memref<80x64xf32, #tpu.memory_space<vmem>>) attributes {dimension_semantics = [#tpu.dimension_semantics<parallel>, #tpu.dimension_semantics<parallel>], iteration_bounds = array<i64: 2, 4>, scalar_prefetch = 0 : i64, scratch_operands = 1 : i64, tpu.core_type = #tpu.core_type<tc>, window_params = [{transform_indices = @transform_0, window_bounds = array<i64: 1, 496, 192>}, {pipeline_mode = #tpu.pipeline_mode<synchronous>, transform_indices = @transform_1, window_bounds = array<i64: 9, 192, 64>}, {pipeline_mode = #tpu.pipeline_mode<synchronous>, transform_indices = @transform_2, window_bounds = array<i64: 1, 64>}, {pipeline_mode = #tpu.pipeline_mode<synchronous>, transform_indices = @transform_3, window_bounds = array<i64: 1, 64>}, {transform_indices = @transform_4, window_bounds = array<i64: 1, 80, 64>}]} {
    %c80_i32 = arith.constant 80 : i32
    %0 = arith.muli %arg1, %c80_i32 : i32
    %1 = tpu.assume_multiple %0, 8 : i32
    %c0_i32 = arith.constant 0 : i32
    %2 = arith.addi %1, %c0_i32 : i32
    %c0_i32_0 = arith.constant 0 : i32
    %3 = arith.addi %2, %c0_i32_0 : i32
    %c0 = arith.constant 0 : index
    %4 = arith.index_cast %3 : i32 to index
    %c0_1 = arith.constant 0 : index
    %5 = vector.load %arg2[%c0, %4, %c0_1] : memref<1x496x192xbf16, #tpu.memory_space<vmem>>, vector<1x80x192xbf16>
    %6 = vector.shape_cast %5 : vector<1x80x192xbf16> to vector<80x192xbf16>
    %c0_2 = arith.constant 0 : index
    %c0_3 = arith.constant 0 : index
    %c0_4 = arith.constant 0 : index
    %7 = vector.load %arg3[%c0_2, %c0_3, %c0_4] : memref<9x192x64xbf16, #tpu.memory_space<vmem>>, vector<1x192x64xbf16>
    %8 = vector.shape_cast %7 : vector<1x192x64xbf16> to vector<192x64xbf16>
    %cst = arith.constant dense<0.000000e+00> : vector<80x64xf32>
    %9 = tpu.matmul %6, %8, %cst {dimension_numbers = #tpu.dot_dimension_numbers<[1], [0], [0], [1], [0, 0, 1, 1], [], []>} : vector<80x192xbf16>, vector<192x64xbf16>, vector<80x64xf32> -> vector<80x64xf32>
    %c0_5 = arith.constant 0 : index
    %c0_6 = arith.constant 0 : index
    %10 = vector.load %arg7[%c0_5, %c0_6] : memref<80x64xf32, #tpu.memory_space<vmem>>, vector<80x64xf32>
    tpu.vector_store %arg7[%c0_5, %c0_6], %9 {strides = array<i32>} : memref<80x64xf32, #tpu.memory_space<vmem>>, vector<80x64xf32>,
    %c0_7 = arith.constant 0 : index
    %c0_8 = arith.constant 0 : index
    %11 = vector.load %arg7[%c0_7, %c0_8] : memref<80x64xf32, #tpu.memory_space<vmem>>, vector<80x64xf32>
    %c0_i32_9 = arith.constant 0 : i32
    %12 = arith.addi %1, %c0_i32_9 : i32
    %c8_i32 = arith.constant 8 : i32
    %13 = arith.addi %12, %c8_i32 : i32
    %c0_10 = arith.constant 0 : index
    %14 = arith.index_cast %13 : i32 to index
    %c0_11 = arith.constant 0 : index
    %15 = vector.load %arg2[%c0_10, %14, %c0_11] : memref<1x496x192xbf16, #tpu.memory_space<vmem>>, vector<1x80x192xbf16>
    %16 = vector.shape_cast %15 : vector<1x80x192xbf16> to vector<80x192xbf16>
    %c1 = arith.constant 1 : index
    %c0_12 = arith.constant 0 : index
    %c0_13 = arith.constant 0 : index
    %17 = vector.load %arg3[%c1, %c0_12, %c0_13] : memref<9x192x64xbf16, #tpu.memory_space<vmem>>, vector<1x192x64xbf16>
    %18 = vector.shape_cast %17 : vector<1x192x64xbf16> to vector<192x64xbf16>
    %cst_14 = arith.constant dense<0.000000e+00> : vector<80x64xf32>
    %19 = tpu.matmul %16, %18, %cst_14 {dimension_numbers = #tpu.dot_dimension_numbers<[1], [0], [0], [1], [0, 0, 1, 1], [], []>} : vector<80x192xbf16>, vector<192x64xbf16>, vector<80x64xf32> -> vector<80x64xf32>
    %20 = arith.addf %11, %19 : vector<80x64xf32>
    %c0_15 = arith.constant 0 : index
    %c0_16 = arith.constant 0 : index
    %21 = vector.load %arg7[%c0_15, %c0_16] : memref<80x64xf32, #tpu.memory_space<vmem>>, vector<80x64xf32>
    tpu.vector_store %arg7[%c0_15, %c0_16], %20 {strides = array<i32>} : memref<80x64xf32, #tpu.memory_space<vmem>>, vector<80x64xf32>,
    %c0_17 = arith.constant 0 : index
    %c0_18 = arith.constant 0 : index
    %22 = vector.load %arg7[%c0_17, %c0_18] : memref<80x64xf32, #tpu.memory_space<vmem>>, vector<80x64xf32>
    %c0_i32_19 = arith.constant 0 : i32
    %23 = arith.addi %1, %c0_i32_19 : i32
    %c16_i32 = arith.constant 16 : i32
    %24 = arith.addi %23, %c16_i32 : i32
    %c0_20 = arith.constant 0 : index
    %25 = arith.index_cast %24 : i32 to index
    %c0_21 = arith.constant 0 : index
    %26 = vector.load %arg2[%c0_20, %25, %c0_21] : memref<1x496x192xbf16, #tpu.memory_space<vmem>>, vector<1x80x192xbf16>
    %27 = vector.shape_cast %26 : vector<1x80x192xbf16> to vector<80x192xbf16>
    %c2 = arith.constant 2 : index
    %c0_22 = arith.constant 0 : index
    %c0_23 = arith.constant 0 : index
    %28 = vector.load %arg3[%c2, %c0_22, %c0_23] : memref<9x192x64xbf16, #tpu.memory_space<vmem>>, vector<1x192x64xbf16>
    %29 = vector.shape_cast %28 : vector<1x192x64xbf16> to vector<192x64xbf16>
    %cst_24 = arith.constant dense<0.000000e+00> : vector<80x64xf32>
    %30 = tpu.matmul %27, %29, %cst_24 {dimension_numbers = #tpu.dot_dimension_numbers<[1], [0], [0], [1], [0, 0, 1, 1], [], []>} : vector<80x192xbf16>, vector<192x64xbf16>, vector<80x64xf32> -> vector<80x64xf32>
    %31 = arith.addf %22, %30 : vector<80x64xf32>
    %c0_25 = arith.constant 0 : index
    %c0_26 = arith.constant 0 : index
    %32 = vector.load %arg7[%c0_25, %c0_26] : memref<80x64xf32, #tpu.memory_space<vmem>>, vector<80x64xf32>
    tpu.vector_store %arg7[%c0_25, %c0_26], %31 {strides = array<i32>} : memref<80x64xf32, #tpu.memory_space<vmem>>, vector<80x64xf32>,
    %c0_27 = arith.constant 0 : index
    %c0_28 = arith.constant 0 : index
    %33 = vector.load %arg7[%c0_27, %c0_28] : memref<80x64xf32, #tpu.memory_space<vmem>>, vector<80x64xf32>
    %c80_i32_29 = arith.constant 80 : i32
    %34 = arith.addi %1, %c80_i32_29 : i32
    %c0_i32_30 = arith.constant 0 : i32
    %35 = arith.addi %34, %c0_i32_30 : i32
    %c0_31 = arith.constant 0 : index
    %36 = arith.index_cast %35 : i32 to index
    %c0_32 = arith.constant 0 : index
    %37 = vector.load %arg2[%c0_31, %36, %c0_32] : memref<1x496x192xbf16, #tpu.memory_space<vmem>>, vector<1x80x192xbf16>
    %38 = vector.shape_cast %37 : vector<1x80x192xbf16> to vector<80x192xbf16>
    %c3 = arith.constant 3 : index
    %c0_33 = arith.constant 0 : index
    %c0_34 = arith.constant 0 : index
    %39 = vector.load %arg3[%c3, %c0_33, %c0_34] : memref<9x192x64xbf16, #tpu.memory_space<vmem>>, vector<1x192x64xbf16>
    %40 = vector.shape_cast %39 : vector<1x192x64xbf16> to vector<192x64xbf16>
    %cst_35 = arith.constant dense<0.000000e+00> : vector<80x64xf32>
    %41 = tpu.matmul %38, %40, %cst_35 {dimension_numbers = #tpu.dot_dimension_numbers<[1], [0], [0], [1], [0, 0, 1, 1], [], []>} : vector<80x192xbf16>, vector<192x64xbf16>, vector<80x64xf32> -> vector<80x64xf32>
    %42 = arith.addf %33, %41 : vector<80x64xf32>
    %c0_36 = arith.constant 0 : index
    %c0_37 = arith.constant 0 : index
    %43 = vector.load %arg7[%c0_36, %c0_37] : memref<80x64xf32, #tpu.memory_space<vmem>>, vector<80x64xf32>
    tpu.vector_store %arg7[%c0_36, %c0_37], %42 {strides = array<i32>} : memref<80x64xf32, #tpu.memory_space<vmem>>, vector<80x64xf32>,
    %c0_38 = arith.constant 0 : index
    %c0_39 = arith.constant 0 : index
    %44 = vector.load %arg7[%c0_38, %c0_39] : memref<80x64xf32, #tpu.memory_space<vmem>>, vector<80x64xf32>
    %c80_i32_40 = arith.constant 80 : i32
    %45 = arith.addi %1, %c80_i32_40 : i32
    %c8_i32_41 = arith.constant 8 : i32
    %46 = arith.addi %45, %c8_i32_41 : i32
    %c0_42 = arith.constant 0 : index
    %47 = arith.index_cast %46 : i32 to index
    %c0_43 = arith.constant 0 : index
    %48 = vector.load %arg2[%c0_42, %47, %c0_43] : memref<1x496x192xbf16, #tpu.memory_space<vmem>>, vector<1x80x192xbf16>
    %49 = vector.shape_cast %48 : vector<1x80x192xbf16> to vector<80x192xbf16>
    %c4 = arith.constant 4 : index
    %c0_44 = arith.constant 0 : index
    %c0_45 = arith.constant 0 : index
    %50 = vector.load %arg3[%c4, %c0_44, %c0_45] : memref<9x192x64xbf16, #tpu.memory_space<vmem>>, vector<1x192x64xbf16>
    %51 = vector.shape_cast %50 : vector<1x192x64xbf16> to vector<192x64xbf16>
    %cst_46 = arith.constant dense<0.000000e+00> : vector<80x64xf32>
    %52 = tpu.matmul %49, %51, %cst_46 {dimension_numbers = #tpu.dot_dimension_numbers<[1], [0], [0], [1], [0, 0, 1, 1], [], []>} : vector<80x192xbf16>, vector<192x64xbf16>, vector<80x64xf32> -> vector<80x64xf32>
    %53 = arith.addf %44, %52 : vector<80x64xf32>
    %c0_47 = arith.constant 0 : index
    %c0_48 = arith.constant 0 : index
    %54 = vector.load %arg7[%c0_47, %c0_48] : memref<80x64xf32, #tpu.memory_space<vmem>>, vector<80x64xf32>
    tpu.vector_store %arg7[%c0_47, %c0_48], %53 {strides = array<i32>} : memref<80x64xf32, #tpu.memory_space<vmem>>, vector<80x64xf32>,
    %c0_49 = arith.constant 0 : index
    %c0_50 = arith.constant 0 : index
    %55 = vector.load %arg7[%c0_49, %c0_50] : memref<80x64xf32, #tpu.memory_space<vmem>>, vector<80x64xf32>
    %c80_i32_51 = arith.constant 80 : i32
    %56 = arith.addi %1, %c80_i32_51 : i32
    %c16_i32_52 = arith.constant 16 : i32
    %57 = arith.addi %56, %c16_i32_52 : i32
    %c0_53 = arith.constant 0 : index
    %58 = arith.index_cast %57 : i32 to index
    %c0_54 = arith.constant 0 : index
    %59 = vector.load %arg2[%c0_53, %58, %c0_54] : memref<1x496x192xbf16, #tpu.memory_space<vmem>>, vector<1x80x192xbf16>
    %60 = vector.shape_cast %59 : vector<1x80x192xbf16> to vector<80x192xbf16>
    %c5 = arith.constant 5 : index
    %c0_55 = arith.constant 0 : index
    %c0_56 = arith.constant 0 : index
    %61 = vector.load %arg3[%c5, %c0_55, %c0_56] : memref<9x192x64xbf16, #tpu.memory_space<vmem>>, vector<1x192x64xbf16>
    %62 = vector.shape_cast %61 : vector<1x192x64xbf16> to vector<192x64xbf16>
    %cst_57 = arith.constant dense<0.000000e+00> : vector<80x64xf32>
    %63 = tpu.matmul %60, %62, %cst_57 {dimension_numbers = #tpu.dot_dimension_numbers<[1], [0], [0], [1], [0, 0, 1, 1], [], []>} : vector<80x192xbf16>, vector<192x64xbf16>, vector<80x64xf32> -> vector<80x64xf32>
    %64 = arith.addf %55, %63 : vector<80x64xf32>
    %c0_58 = arith.constant 0 : index
    %c0_59 = arith.constant 0 : index
    %65 = vector.load %arg7[%c0_58, %c0_59] : memref<80x64xf32, #tpu.memory_space<vmem>>, vector<80x64xf32>
    tpu.vector_store %arg7[%c0_58, %c0_59], %64 {strides = array<i32>} : memref<80x64xf32, #tpu.memory_space<vmem>>, vector<80x64xf32>,
    %c0_60 = arith.constant 0 : index
    %c0_61 = arith.constant 0 : index
    %66 = vector.load %arg7[%c0_60, %c0_61] : memref<80x64xf32, #tpu.memory_space<vmem>>, vector<80x64xf32>
    %c160_i32 = arith.constant 160 : i32
    %67 = arith.addi %1, %c160_i32 : i32
    %c0_i32_62 = arith.constant 0 : i32
    %68 = arith.addi %67, %c0_i32_62 : i32
    %c0_63 = arith.constant 0 : index
    %69 = arith.index_cast %68 : i32 to index
    %c0_64 = arith.constant 0 : index
    %70 = vector.load %arg2[%c0_63, %69, %c0_64] : memref<1x496x192xbf16, #tpu.memory_space<vmem>>, vector<1x80x192xbf16>
    %71 = vector.shape_cast %70 : vector<1x80x192xbf16> to vector<80x192xbf16>
    %c6 = arith.constant 6 : index
    %c0_65 = arith.constant 0 : index
    %c0_66 = arith.constant 0 : index
    %72 = vector.load %arg3[%c6, %c0_65, %c0_66] : memref<9x192x64xbf16, #tpu.memory_space<vmem>>, vector<1x192x64xbf16>
    %73 = vector.shape_cast %72 : vector<1x192x64xbf16> to vector<192x64xbf16>
    %cst_67 = arith.constant dense<0.000000e+00> : vector<80x64xf32>
    %74 = tpu.matmul %71, %73, %cst_67 {dimension_numbers = #tpu.dot_dimension_numbers<[1], [0], [0], [1], [0, 0, 1, 1], [], []>} : vector<80x192xbf16>, vector<192x64xbf16>, vector<80x64xf32> -> vector<80x64xf32>
    %75 = arith.addf %66, %74 : vector<80x64xf32>
    %c0_68 = arith.constant 0 : index
    %c0_69 = arith.constant 0 : index
    %76 = vector.load %arg7[%c0_68, %c0_69] : memref<80x64xf32, #tpu.memory_space<vmem>>, vector<80x64xf32>
    tpu.vector_store %arg7[%c0_68, %c0_69], %75 {strides = array<i32>} : memref<80x64xf32, #tpu.memory_space<vmem>>, vector<80x64xf32>,
    %c0_70 = arith.constant 0 : index
    %c0_71 = arith.constant 0 : index
    %77 = vector.load %arg7[%c0_70, %c0_71] : memref<80x64xf32, #tpu.memory_space<vmem>>, vector<80x64xf32>
    %c160_i32_72 = arith.constant 160 : i32
    %78 = arith.addi %1, %c160_i32_72 : i32
    %c8_i32_73 = arith.constant 8 : i32
    %79 = arith.addi %78, %c8_i32_73 : i32
    %c0_74 = arith.constant 0 : index
    %80 = arith.index_cast %79 : i32 to index
    %c0_75 = arith.constant 0 : index
    %81 = vector.load %arg2[%c0_74, %80, %c0_75] : memref<1x496x192xbf16, #tpu.memory_space<vmem>>, vector<1x80x192xbf16>
    %82 = vector.shape_cast %81 : vector<1x80x192xbf16> to vector<80x192xbf16>
    %c7 = arith.constant 7 : index
    %c0_76 = arith.constant 0 : index
    %c0_77 = arith.constant 0 : index
    %83 = vector.load %arg3[%c7, %c0_76, %c0_77] : memref<9x192x64xbf16, #tpu.memory_space<vmem>>, vector<1x192x64xbf16>
    %84 = vector.shape_cast %83 : vector<1x192x64xbf16> to vector<192x64xbf16>
    %cst_78 = arith.constant dense<0.000000e+00> : vector<80x64xf32>
    %85 = tpu.matmul %82, %84, %cst_78 {dimension_numbers = #tpu.dot_dimension_numbers<[1], [0], [0], [1], [0, 0, 1, 1], [], []>} : vector<80x192xbf16>, vector<192x64xbf16>, vector<80x64xf32> -> vector<80x64xf32>
    %86 = arith.addf %77, %85 : vector<80x64xf32>
    %c0_79 = arith.constant 0 : index
    %c0_80 = arith.constant 0 : index
    %87 = vector.load %arg7[%c0_79, %c0_80] : memref<80x64xf32, #tpu.memory_space<vmem>>, vector<80x64xf32>
    tpu.vector_store %arg7[%c0_79, %c0_80], %86 {strides = array<i32>} : memref<80x64xf32, #tpu.memory_space<vmem>>, vector<80x64xf32>,
    %c0_81 = arith.constant 0 : index
    %c0_82 = arith.constant 0 : index
    %88 = vector.load %arg7[%c0_81, %c0_82] : memref<80x64xf32, #tpu.memory_space<vmem>>, vector<80x64xf32>
    %c160_i32_83 = arith.constant 160 : i32
    %89 = arith.addi %1, %c160_i32_83 : i32
    %c16_i32_84 = arith.constant 16 : i32
    %90 = arith.addi %89, %c16_i32_84 : i32
    %c0_85 = arith.constant 0 : index
    %91 = arith.index_cast %90 : i32 to index
    %c0_86 = arith.constant 0 : index
    %92 = vector.load %arg2[%c0_85, %91, %c0_86] : memref<1x496x192xbf16, #tpu.memory_space<vmem>>, vector<1x80x192xbf16>
    %93 = vector.shape_cast %92 : vector<1x80x192xbf16> to vector<80x192xbf16>
    %c8 = arith.constant 8 : index
    %c0_87 = arith.constant 0 : index
    %c0_88 = arith.constant 0 : index
    %94 = vector.load %arg3[%c8, %c0_87, %c0_88] : memref<9x192x64xbf16, #tpu.memory_space<vmem>>, vector<1x192x64xbf16>
    %95 = vector.shape_cast %94 : vector<1x192x64xbf16> to vector<192x64xbf16>
    %cst_89 = arith.constant dense<0.000000e+00> : vector<80x64xf32>
    %96 = tpu.matmul %93, %95, %cst_89 {dimension_numbers = #tpu.dot_dimension_numbers<[1], [0], [0], [1], [0, 0, 1, 1], [], []>} : vector<80x192xbf16>, vector<192x64xbf16>, vector<80x64xf32> -> vector<80x64xf32>
    %97 = arith.addf %88, %96 : vector<80x64xf32>
    %c0_90 = arith.constant 0 : index
    %c0_91 = arith.constant 0 : index
    %98 = vector.load %arg7[%c0_90, %c0_91] : memref<80x64xf32, #tpu.memory_space<vmem>>, vector<80x64xf32>
    tpu.vector_store %arg7[%c0_90, %c0_91], %97 {strides = array<i32>} : memref<80x64xf32, #tpu.memory_space<vmem>>, vector<80x64xf32>,
    %c0_92 = arith.constant 0 : index
    %c0_93 = arith.constant 0 : index
    %99 = vector.load %arg7[%c0_92, %c0_93] : memref<80x64xf32, #tpu.memory_space<vmem>>, vector<80x64xf32>
    %c0_94 = arith.constant 0 : index
    %c0_95 = arith.constant 0 : index
    %100 = vector.load %arg4[%c0_94, %c0_95] : memref<1x64xf32, #tpu.memory_space<vmem>>, vector<1x64xf32>
    %101 = vector.broadcast %100 : vector<1x64xf32> to vector<80x64xf32>
    %102 = arith.mulf %99, %101 : vector<80x64xf32>
    %c0_96 = arith.constant 0 : index
    %c0_97 = arith.constant 0 : index
    %103 = vector.load %arg5[%c0_96, %c0_97] : memref<1x64xf32, #tpu.memory_space<vmem>>, vector<1x64xf32>
    %104 = vector.broadcast %103 : vector<1x64xf32> to vector<80x64xf32>
    %105 = arith.addf %102, %104 : vector<80x64xf32>
    %cst_98 = arith.constant 0.000000e+00 : f32
    %106 = vector.broadcast %cst_98 : f32 to vector<80x64xf32>
    %107 = arith.maximumf %105, %106 : vector<80x64xf32>
    %108 = vector.shape_cast %107 : vector<80x64xf32> to vector<1x80x64xf32>
    %109 = arith.truncf %108 : vector<1x80x64xf32> to vector<1x80x64xbf16>
    %c0_99 = arith.constant 0 : index
    %c0_100 = arith.constant 0 : index
    %c0_101 = arith.constant 0 : index
    %110 = vector.load %arg6[%c0_99, %c0_100, %c0_101] : memref<1x80x64xbf16, #tpu.memory_space<vmem>>, vector<1x80x64xbf16>
    tpu.vector_store %arg6[%c0_99, %c0_100, %c0_101], %109 {strides = array<i32>} : memref<1x80x64xbf16, #tpu.memory_space<vmem>>, vector<1x80x64xbf16>,
    return
  }
  func.func @transform_0(%arg0: i32, %arg1: i32) -> (i32, i32, i32) {
    %c0_i32 = arith.constant 0 : i32
    %c0_i32_0 = arith.constant 0 : i32
    %c0_i32_1 = arith.constant 0 : i32
    return %arg0, %c0_i32, %c0_i32_0 : i32, i32, i32
  }
  func.func @transform_1(%arg0: i32, %arg1: i32) -> (i32, i32, i32) {
    %c0_i32 = arith.constant 0 : i32
    %c0_i32_0 = arith.constant 0 : i32
    %c0_i32_1 = arith.constant 0 : i32
    %c0_i32_2 = arith.constant 0 : i32
    return %c0_i32, %c0_i32_0, %c0_i32_1 : i32, i32, i32
  }
  func.func @transform_2(%arg0: i32, %arg1: i32) -> (i32, i32) {
    %c0_i32 = arith.constant 0 : i32
    %c0_i32_0 = arith.constant 0 : i32
    %c0_i32_1 = arith.constant 0 : i32
    return %c0_i32, %c0_i32_0 : i32, i32
  }
  func.func @transform_3(%arg0: i32, %arg1: i32) -> (i32, i32) {
    %c0_i32 = arith.constant 0 : i32
    %c0_i32_0 = arith.constant 0 : i32
    %c0_i32_1 = arith.constant 0 : i32
    return %c0_i32, %c0_i32_0 : i32, i32
  }
  func.func @transform_4(%arg0: i32, %arg1: i32) -> (i32, i32, i32) {
    %c0_i32 = arith.constant 0 : i32
    %c0_i32_0 = arith.constant 0 : i32
    return %arg0, %arg1, %c0_i32 : i32, i32, i32
  }
}

module attributes {stable_mosaic.version = 11 : i64} {
  func.func @_pointwise_kernel(%arg0: i32, %arg1: memref<128x64xbf16, #tpu.memory_space<vmem>>, %arg2: memref<64x256xbf16, #tpu.memory_space<vmem>>, %arg3: memref<1x256xf32, #tpu.memory_space<vmem>>, %arg4: memref<1x256xf32, #tpu.memory_space<vmem>>, %arg5: memref<128x256xf32, #tpu.memory_space<vmem>>, %arg6: memref<128x256xf32, #tpu.memory_space<vmem>>) attributes {dimension_semantics = [#tpu.dimension_semantics<parallel>], iteration_bounds = array<i64: 4>, scalar_prefetch = 0 : i64, scratch_operands = 0 : i64, tpu.core_type = #tpu.core_type<tc>, window_params = [{transform_indices = @transform_0, window_bounds = array<i64: 128, 64>}, {pipeline_mode = #tpu.pipeline_mode<synchronous>, transform_indices = @transform_1, window_bounds = array<i64: 64, 256>}, {pipeline_mode = #tpu.pipeline_mode<synchronous>, transform_indices = @transform_2, window_bounds = array<i64: 1, 256>}, {pipeline_mode = #tpu.pipeline_mode<synchronous>, transform_indices = @transform_3, window_bounds = array<i64: 1, 256>}, {transform_indices = @transform_4, window_bounds = array<i64: 128, 256>}, {transform_indices = @transform_5, window_bounds = array<i64: 128, 256>}]} {
    %c0 = arith.constant 0 : index
    %c0_0 = arith.constant 0 : index
    %0 = vector.load %arg1[%c0, %c0_0] : memref<128x64xbf16, #tpu.memory_space<vmem>>, vector<128x64xbf16>
    %c0_1 = arith.constant 0 : index
    %c0_2 = arith.constant 0 : index
    %1 = vector.load %arg2[%c0_1, %c0_2] : memref<64x256xbf16, #tpu.memory_space<vmem>>, vector<64x256xbf16>
    %cst = arith.constant dense<0.000000e+00> : vector<128x256xf32>
    %2 = tpu.matmul %0, %1, %cst {dimension_numbers = #tpu.dot_dimension_numbers<[1], [0], [0], [1], [0, 0, 1, 1], [], []>} : vector<128x64xbf16>, vector<64x256xbf16>, vector<128x256xf32> -> vector<128x256xf32>
    %c0_3 = arith.constant 0 : index
    %c0_4 = arith.constant 0 : index
    %3 = vector.load %arg3[%c0_3, %c0_4] : memref<1x256xf32, #tpu.memory_space<vmem>>, vector<1x256xf32>
    %4 = vector.broadcast %3 : vector<1x256xf32> to vector<128x256xf32>
    %5 = arith.mulf %2, %4 : vector<128x256xf32>
    %c0_5 = arith.constant 0 : index
    %c0_6 = arith.constant 0 : index
    %6 = vector.load %arg4[%c0_5, %c0_6] : memref<1x256xf32, #tpu.memory_space<vmem>>, vector<1x256xf32>
    %7 = vector.broadcast %6 : vector<1x256xf32> to vector<128x256xf32>
    %8 = arith.addf %5, %7 : vector<128x256xf32>
    %c0_7 = arith.constant 0 : index
    %c0_8 = arith.constant 0 : index
    %9 = vector.load %arg5[%c0_7, %c0_8] : memref<128x256xf32, #tpu.memory_space<vmem>>, vector<128x256xf32>
    %10 = arith.addf %8, %9 : vector<128x256xf32>
    %cst_9 = arith.constant 0.000000e+00 : f32
    %11 = vector.broadcast %cst_9 : f32 to vector<128x256xf32>
    %12 = arith.maximumf %10, %11 : vector<128x256xf32>
    %c0_10 = arith.constant 0 : index
    %c0_11 = arith.constant 0 : index
    %13 = vector.load %arg6[%c0_10, %c0_11] : memref<128x256xf32, #tpu.memory_space<vmem>>, vector<128x256xf32>
    tpu.vector_store %arg6[%c0_10, %c0_11], %12 {strides = array<i32>} : memref<128x256xf32, #tpu.memory_space<vmem>>, vector<128x256xf32>,
    return
  }
  func.func @transform_0(%arg0: i32) -> (i32, i32) {
    %c0_i32 = arith.constant 0 : i32
    %c0_i32_0 = arith.constant 0 : i32
    return %arg0, %c0_i32 : i32, i32
  }
  func.func @transform_1(%arg0: i32) -> (i32, i32) {
    %c0_i32 = arith.constant 0 : i32
    %c0_i32_0 = arith.constant 0 : i32
    %c0_i32_1 = arith.constant 0 : i32
    return %c0_i32, %c0_i32_0 : i32, i32
  }
  func.func @transform_2(%arg0: i32) -> (i32, i32) {
    %c0_i32 = arith.constant 0 : i32
    %c0_i32_0 = arith.constant 0 : i32
    %c0_i32_1 = arith.constant 0 : i32
    return %c0_i32, %c0_i32_0 : i32, i32
  }
  func.func @transform_3(%arg0: i32) -> (i32, i32) {
    %c0_i32 = arith.constant 0 : i32
    %c0_i32_0 = arith.constant 0 : i32
    %c0_i32_1 = arith.constant 0 : i32
    return %c0_i32, %c0_i32_0 : i32, i32
  }
  func.func @transform_4(%arg0: i32) -> (i32, i32) {
    %c0_i32 = arith.constant 0 : i32
    %c0_i32_0 = arith.constant 0 : i32
    return %arg0, %c0_i32 : i32, i32
  }
  func.func @transform_5(%arg0: i32) -> (i32, i32) {
    %c0_i32 = arith.constant 0 : i32
    %c0_i32_0 = arith.constant 0 : i32
    return %arg0, %c0_i32 : i32, i32
  }
}

</mosaic_0001>

<bundles_post_ra>
// kernel: bottleneck_forward.3
= control target key start
LH: loop header
LB: loop body
LE: loop exit
PB: predicated region body
PF: predicated region fallthrough
CT: control target
= control target key end

     0   :  { %9 = vsyncpa [#allocation3], 0  ;;  %s1267_s0 = inlined_call_operand.hbm [shape: f32[512,256], index: 0, kind: input, shape index: {}]   ;;  %s1268_s1 = inlined_call_operand.vmem [shape: bf16[256,64], index: 1, kind: input, shape index: {}]   ;;  %s1269_s2 = inlined_call_operand.vmem [shape: f32[1,64], index: 2, kind: input, shape index: {}]   ;;  %s1270_s3 = inlined_call_operand.vmem [shape: f32[1,64], index: 3, kind: input, shape index: {}]   ;;  %s1271_s4 = inlined_call_operand.vmem [shape: bf16[512,64], index: 4, kind: output, shape index: {}]  }
   0x1   :  { %11 = vsyncpa [#allocation3 + $0x1], 0  ;;  %s1002_s15 = smov 0   ;;  %s1004_s16 = smov 0  }
   0x2   :  { %s1006_s17 = smov 0   ;;  %s1008_s18 = smov 0  }
   0x3 LB: > { %s705_s19 = sadd.s32 4294967295, %s972_s18   ;;  %s1022_s20 = sadd.s32 1, %s972_s18   ;;  %s972_s18 = sphi %s1008_s18, %s1278_s18   ;;  %s968_s17 = sphi %s1006_s17, %s1277_s17   ;;  %s964_s16 = sphi %s1004_s16, %s1276_s16   ;;  %s960_s15 = sphi %s1002_s15, %s1275_s15  }
   0x4   : > { %s21_s21 = ssub.s32 %s972_s18, %s1022_s20  ;;  %s24_s22 = sadd.s32 1, %s968_s17 }
   0x5   : > { %p22_p0 = scmp.eq.s32.totalorder %s21_s21, 0  ;;  %p31_p1 = scmp.ne.s32.totalorder %s968_s17, %s964_s16 }
   0x6   : > { %p32_p2 = scmp.eq.s32.totalorder %s972_s18, 0  ;;  %p37_p3 = scmp.ne.s32.totalorder %s964_s16, %s960_s15 }
   0x7   : > { %s1032_s23 = scalar_select %p22_p0, %s968_s17, %s24_s22  }
   0x8   : > { %p33_p4 = por %p32_p2, %p31_p1  ;;  %p38_p5 = scmp.eq.s32.totalorder %s705_s19, 0 }
   0x9   : > { %p857_p6 = scmp.lt.s32.totalorder %s972_s18, 4  ;;  %s159_s25 = sand.u32 1, %s968_s17  }
   0xa   : > { %p1037_p7 = por %p38_p5, %p37_p3  ;;  %s709_s26 = sshll.u32 %s159_s25, 8 }
   0xb   : > { %s754_s27 = sshll.u32 %s972_s18, 12  ;;  %s163_s5 = scalar_lea.vmem [#allocation2], %s709_s26 }
   0xc   : > { %s1046_s30 = scalar_lea.hbm %s1267_s0, %s754_s27  ;;  %s171_s6 = sshll.u32 %s163_s5, 4  ;;  %s1048_s6 = int_to_ptr.vmem [resolvable:$true] %s171_s6 }
   0xd   : > { %p1050_p8 = pnand %p857_p6, %p33_p4  ;;  %s1055_s8 = scalar_lea.sflag [#allocation3], %s159_s25 }
   0xe   : > { %s908_s9 = scalar_lea.hbm %s1046_s30, 4096  ;;  %s913_s12 = scalar_lea.hbm %s1267_s0, 16384 }
   0xf   : > { %p909_p10 = scmp.ne.s32.totalorder %s1046_s30, %s908_s9  ;;  %p910_p11 = pneg %p1050_p8 }
  0x10   : > { %p914_p0 = scmp.lt.u32.totalorder %s1046_s30, %s1267_s0  ;;  %p915_p1 = scmp.lt.u32.totalorder %s913_s12, %s908_s9 }
  0x11   : > { %p911_p12 = pnand %p910_p11, %p909_p10  ;;  %p917_p3 = scmp.lt.u32.totalorder %s908_s9, %s1046_s30 }
  0x12   : > { %p916_p2 = por %p915_p1, %p914_p0 }
  0x13   : > { %p912_p13 = pneg %p911_p12 }
  0x14   : > { %p918_p4 = por %p917_p3, %p916_p2 }
  0x16   : > { %p919_p5 = pnand %p918_p4, %p912_p13 }
  0x18   : > { %922 = shalt.err (!%p919_p5)
}
  0x19   : > { %s923_s15 = scalar_lea.vmem %s1048_s6, 4096  ;;  %s974_s21 = smov [#allocation2]  }
  0x1a   : > { %p924_p6 = scmp.ne.s32.totalorder %s1048_s6, %s923_s15  ;;  %s928_s22 = sshll.u32 %s974_s21, 4  ;;  %s929_s22 = int_to_ptr.vmem [resolvable:$false] %s928_s22 }
  0x1b   : > { %s930_s25 = scalar_lea.vmem %s929_s22, 8192  ;;  %p931_p9 = scmp.lt.s32.totalorder %s1048_s6, %s929_s22 }
  0x1c   : > { %p926_p10 = pnand %p924_p6, %p910_p11  ;;  %p932_p0 = scmp.lt.s32.totalorder %s930_s25, %s923_s15 }
  0x1e   : > { %p927_p12 = pneg %p926_p10  ;;  %p933_p1 = por %p932_p0, %p931_p9 }
  0x20   : > { %p934_p2 = pnand %p933_p1, %p927_p12 }
  0x22   : > { %937 = shalt.err (!%p934_p2)
}
  0x23   : > { %s975_s26 = smov 256   ;;  %s976_s27 = smov 16  }
  0x24   : > { %856 = dma.hbm_to_vmem [thread:$0]  (!%p1050_p8), %s1046_s30, 4096, %s1048_s6, %s1055_s8, %s975_s26, %s975_s26, %s976_s27  }
  0x25   : > { %p179_p11 = scmp.lt.s32.totalorder %s972_s18, 5  ;;  %p1274_p13 = scmp.ge.s32.totalorder %s972_s18, 1 }
  0x27   : > { %p180_p3 = pnand %p1274_p13, %p179_p11 }
  0x28   : > { %s185_s28 = sand.u32 (!%p180_p3), 1, %s964_s16  }
  0x29   : > { %183 = sbr.rel (%p180_p3) target bundleno = 333 (0x14d), region = 36  ;;  %s714_s29 = sshll.u32 (!%p180_p3), %s185_s28, 8 }
  0x2a   : > { %s186_s5 = scalar_lea.sflag (!%p180_p3), [#allocation3], %s185_s28  ;;  %s1087_s9 = scalar_lea.vmem (!%p180_p3), [#allocation2], %s714_s29 }
  0x30   : > { %955 = dma.done.wait (%p1037_p7), %s186_s5, 4096  }
  0x31   : > { %957 = vsyncadd (%p1037_p7), %s186_s5, 4294963200  ;;  %v892_v0 = vld [vmem:[%s1268_s1 + $0x40] sm:$0xff]   ;;  %v894_v2 = vld [vmem:[%s1268_s1 + $0x48] sm:$0xff]   ;;  %s715_s25 = sshll.u32 %s705_s19, 4  ;;  %vm621_vm0 = vcmask 519168  }
  0x32   : > { %v893_v1 = vld [vmem:[%s1268_s1] sm:$0xff]   ;;  %771 = vmatprep.subr.bf16.mxu0 %v892_v0  ;;  %835 = vmatprep.subr.bf16.mxu1 %v892_v0  ;;  %v895_v3 = vld [vmem:[%s1268_s1 + $0x8] sm:$0xff]   ;;  %v896_v4 = vld [vmem:[%s1268_s1 + $0x50] sm:$0xff]   ;;  %p216_p7 = scmp.lt.s32.totalorder %s715_s25, 63 }
  0x33   : > { %772 = vmatpush3.bf16.msra.mxu0 %v893_v1  ;;  %843 = vmatpush3.bf16.msra.mxu1 %v893_v1  ;;  %v897_v5 = vld [vmem:[%s1268_s1 + $0x10] sm:$0xff]   ;;  %v898_v6 = vld [vmem:[%s1268_s1 + $0x58] sm:$0xff]   ;;  %v900_v8 = vld [vmem:[%s1268_s1 + $0x60] sm:$0xff]  }
  0x34   : > { %773 = vmatprep.subr.bf16.mxu0 %v894_v2  ;;  %836 = vmatprep.subr.bf16.mxu1 %v894_v2  ;;  %v899_v7 = vld [vmem:[%s1268_s1 + $0x18] sm:$0xff]   ;;  %v901_v9 = vld [vmem:[%s1268_s1 + $0x20] sm:$0xff]   ;;  %v902_v10 = vld [vmem:[%s1268_s1 + $0x68] sm:$0xff]   ;;  %s1280_s25 = smov (!%p216_p7, %s715_s25), 63 }
  0x35   : > { %v223_v11 = vld [vmem:[%s1087_s9 + $0x8] sm:$0xff]  ;;  %v225_v12 = vld [vmem:[%s1087_s9 + $0x18] sm:$0xff]  ;;  %v904_v18 = vld [vmem:[%s1268_s1 + $0x70] sm:$0xff]   ;;  %s716_s18 = sshll.u32 %s1280_s25, 2 }
  0x36   : > { %v239_v13 = vld [vmem:[%s1087_s9 + $0x88] sm:$0xff]  ;;  %v255_v14 = vpack.c.bf16 %v225_v12, %v223_v11  ;;  %v241_v15 = vld [vmem:[%s1087_s9 + $0x98] sm:$0xff]  ;;  %v905_v19 = vld [vmem:[%s1268_s1 + $0x30] sm:$0xff]   ;;  %s1196_s5 = scalar_lea.vmem %s1271_s4, %s716_s18 }
  0x37   : > { %774 = vmatpush3.bf16.msra.mxu0 %v895_v3  ;;  %844 = vmatpush3.bf16.msra.mxu1 %v895_v3  ;;  %v263_v16 = vpack.c.bf16 %v241_v15, %v239_v13  ;;  %v903_v17 = vld [vmem:[%s1268_s1 + $0x28] sm:$0xff]   ;;  %v906_v20 = vld [vmem:[%s1268_s1 + $0x78] sm:$0xff]   ;;  %v222_v22 = vld [vmem:[%s1087_s9] sm:$0xff] }
  0x38   : > { %775 = vmatprep.subr.bf16.mxu0 %v896_v4  ;;  %837 = vmatprep.subr.bf16.mxu1 %v896_v4  ;;  %v907_v21 = vld [vmem:[%s1268_s1 + $0x38] sm:$0xff]   ;;  %v224_v23 = vld [vmem:[%s1087_s9 + $0x10] sm:$0xff]  ;;  %v238_v24 = vld [vmem:[%s1087_s9 + $0x80] sm:$0xff] }
  0x39   : > { %430 = vmatprep.mubr.bf16.mxu0 %v255_v14  ;;  %462 = vmatprep.mubr.bf16.mxu1 %v263_v16  ;;  %v240_v25 = vld [vmem:[%s1087_s9 + $0x90] sm:$0xff]  ;;  %v227_v26 = vld [vmem:[%s1087_s9 + $0x28] sm:$0xff]  ;;  %v229_v27 = vld [vmem:[%s1087_s9 + $0x38] sm:$0xff]  ;;  %v254_v30 = vpack.c.bf16 %v224_v23, %v222_v22 }
  0x3a   : > { %v243_v28 = vld [vmem:[%s1087_s9 + $0xa8] sm:$0xff]  ;;  %v245_v29 = vld [vmem:[%s1087_s9 + $0xb8] sm:$0xff]  ;;  %v262_v31 = vpack.c.bf16 %v240_v25, %v238_v24  ;;  %v257_v32 = vpack.c.bf16 %v229_v27, %v227_v26  ;;  %v226_v34 = vld [vmem:[%s1087_s9 + $0x20] sm:$0xff] }
  0x3b   : > { %776 = vmatpush3.bf16.msra.mxu0 %v897_v5  ;;  %845 = vmatpush3.bf16.msra.mxu1 %v897_v5  ;;  %v265_v33 = vpack.c.bf16 %v245_v29, %v243_v28  ;;  %v228_v35 = vld [vmem:[%s1087_s9 + $0x30] sm:$0xff]  ;;  %v242_v36 = vld [vmem:[%s1087_s9 + $0xa0] sm:$0xff]  ;;  %v231_v38 = vld [vmem:[%s1087_s9 + $0x48] sm:$0xff] }
  0x3c   : > { %777 = vmatprep.subr.bf16.mxu0 %v898_v6  ;;  %838 = vmatprep.subr.bf16.mxu1 %v898_v6  ;;  %v244_v37 = vld [vmem:[%s1087_s9 + $0xb0] sm:$0xff]  ;;  %v233_v39 = vld [vmem:[%s1087_s9 + $0x58] sm:$0xff]  ;;  %v247_v40 = vld [vmem:[%s1087_s9 + $0xc8] sm:$0xff]  ;;  %v256_v42 = vpack.c.bf16 %v228_v35, %v226_v34 }
  0x3d   : > { %v249_v41 = vld [vmem:[%s1087_s9 + $0xd8] sm:$0xff]  ;;  %v264_v43 = vpack.c.bf16 %v244_v37, %v242_v36  ;;  %v259_v44 = vpack.c.bf16 %v233_v39, %v231_v38  ;;  %v230_v46 = vld [vmem:[%s1087_s9 + $0x40] sm:$0xff]  ;;  %v232_v47 = vld [vmem:[%s1087_s9 + $0x50] sm:$0xff] }
  0x3e   : > { %v267_v45 = vpack.c.bf16 %v249_v41, %v247_v40  ;;  %v246_v48 = vld [vmem:[%s1087_s9 + $0xc0] sm:$0xff]  ;;  %v248_v49 = vld [vmem:[%s1087_s9 + $0xd0] sm:$0xff]  ;;  %v235_v50 = vld [vmem:[%s1087_s9 + $0x68] sm:$0xff]  ;;  %v258_v54 = vpack.c.bf16 %v232_v47, %v230_v46 }
  0x3f   : > { %778 = vmatpush3.bf16.msra.mxu0 %v899_v7  ;;  %846 = vmatpush3.bf16.msra.mxu1 %v899_v7  ;;  %v237_v51 = vld [vmem:[%s1087_s9 + $0x78] sm:$0xff]  ;;  %v251_v52 = vld [vmem:[%s1087_s9 + $0xe8] sm:$0xff]  ;;  %v266_v55 = vpack.c.bf16 %v248_v49, %v246_v48  ;;  %v234_v58 = vld [vmem:[%s1087_s9 + $0x60] sm:$0xff] }
  0x40   : > { %779 = vmatprep.subr.bf16.mxu0 %v900_v8  ;;  %839 = vmatprep.subr.bf16.mxu1 %v900_v8  ;;  %v253_v53 = vld [vmem:[%s1087_s9 + $0xf8] sm:$0xff]  ;;  %v261_v56 = vpack.c.bf16 %v237_v51, %v235_v50  ;;  %v236_v59 = vld [vmem:[%s1087_s9 + $0x70] sm:$0xff]  ;;  %v250_v60 = vld [vmem:[%s1087_s9 + $0xe0] sm:$0xff] }
  0x41   : > { %v269_v57 = vpack.c.bf16 %v253_v53, %v251_v52  ;;  %v252_v61 = vld [vmem:[%s1087_s9 + $0xf0] sm:$0xff]  ;;  %v260_v62 = vpack.c.bf16 %v236_v59, %v234_v58  ;;  %v1178_v3 = vld [vmem:[%s1269_s2] ss:$0 sm:$0xff] }
  0x42   : > { %v268_v63 = vpack.c.bf16 %v252_v61, %v250_v60 }
  0x43   : > { %780 = vmatpush3.bf16.msra.mxu0 %v901_v9  ;;  %847 = vmatpush3.bf16.msra.mxu1 %v901_v9  ;;  %v1183_v9 = vld [vmem:[%s1270_s3] ss:$0 sm:$0xff] }
  0x44   : > { %781 = vmatprep.subr.bf16.mxu0 %v902_v10  ;;  %840 = vmatprep.subr.bf16.mxu1 %v902_v10 }
  0x47   : > { %782 = vmatpush3.bf16.msra.mxu0 %v903_v17  ;;  %848 = vmatpush3.bf16.msra.mxu1 %v903_v17 }
  0x48   : > { %783 = vmatprep.subr.bf16.mxu0 %v904_v18  ;;  %841 = vmatprep.subr.bf16.mxu1 %v904_v18 }
  0x4b   : > { %784 = vmatpush3.bf16.msra.mxu0 %v905_v19  ;;  %849 = vmatpush3.bf16.msra.mxu1 %v905_v19 }
  0x4c   : > { %785 = vmatprep.subr.bf16.mxu0 %v906_v20  ;;  %842 = vmatprep.subr.bf16.mxu1 %v906_v20 }
  0x4f   : > { %786 = vmatpush3.bf16.msra.mxu0 %v907_v21  ;;  %850 = vmatpush3.bf16.msra.mxu1 %v907_v21 }
  0x52   : > { %431 = vmatmul.mubr.bf16.vlgmr.msra.gmra.mrb[0].mxu0 %v254_v30  ;;  %463 = vmatmul.mubr.bf16.vlgmr.msra.gmra.mrb[0].mxu1 %v262_v31 }
  0x53   : > { %438 = vmatprep.mubr.bf16.mxu0 %v257_v32  ;;  %470 = vmatprep.mubr.bf16.mxu1 %v265_v33 }
  0x5a   : > { %439 = vmatmul.mubr.bf16.gmra.mrb[4].mxu0 %v256_v42  ;;  %471 = vmatmul.mubr.bf16.gmra.mrb[4].mxu1 %v264_v43 }
  0x5b   : > { %446 = vmatprep.mubr.bf16.mxu0 %v259_v44  ;;  %478 = vmatprep.mubr.bf16.mxu1 %v267_v45 }
  0x62   : > { %447 = vmatmul.mubr.bf16.gmra.mrb[8].mxu0 %v258_v54  ;;  %479 = vmatmul.mubr.bf16.gmra.mrb[8].mxu1 %v266_v55 }
  0x63   : > { %454 = vmatprep.mubr.bf16.mxu0 %v261_v56  ;;  %486 = vmatprep.mubr.bf16.mxu1 %v269_v57 }
  0x6a   : > { %455 = vmatmul.mubr.bf16.gmra.mrb[12].mxu0 %v260_v62  ;;  %487 = vmatmul.mubr.bf16.gmra.mrb[12].mxu1 %v268_v63 }
 0x125   : > { %v787_v0 = vpop.f32.mrb[0].mxu0  ;;  %v811_v1 = vpop.f32.mrb[0].mxu1 }
 0x126   : > { %v788_v2 = vpop.f32.mrb[1].mxu0  ;;  %v812_v4 = vpop.f32.mrb[1].mxu1 }
 0x127   : > { %v789_v5 = vadd.f32 %v788_v2, %v787_v0  ;;  %v813_v6 = vadd.f32 %v812_v4, %v811_v1  ;;  %v790_v7 = vpop.f32.mrb[2].mxu0  ;;  %v814_v8 = vpop.f32.mrb[2].mxu1 }
 0x128   : > { %v791_v10 = vpop.f32.mrb[3].mxu0  ;;  %v815_v11 = vpop.f32.mrb[3].mxu1 }
 0x129   : > { %v502_v12 = vmul.f32 %v789_v5, %v1178_v3  ;;  %v510_v13 = vmul.f32 %v813_v6, %v1178_v3  ;;  %v792_v14 = vadd.f32 %v791_v10, %v790_v7  ;;  %v816_v15 = vadd.f32 %v815_v11, %v814_v8 }
 0x12b   : > { %v525_v16 = vadd.f32 %v1183_v9, %v502_v12  ;;  %v533_v17 = vadd.f32 %v1183_v9, %v510_v13  ;;  %v503_v18 = vmul.f32 %v792_v14, %v1178_v3  ;;  %v511_v19 = vmul.f32 %v816_v15, %v1178_v3 }
 0x12d   : > { %v541_v20 = vmax.f32 %v525_v16, 0.0  ;;  %v549_v21 = vmax.f32 %v533_v17, 0.0  ;;  %v526_v22 = vadd.f32 %v1183_v9, %v503_v18  ;;  %v534_v23 = vadd.f32 %v1183_v9, %v511_v19  ;;  %v793_v24 = vpop.f32.mrb[4].mxu0  ;;  %v817_v25 = vpop.f32.mrb[4].mxu1 }
 0x12e   : > { %v794_v26 = vpop.f32.mrb[5].mxu0  ;;  %v818_v27 = vpop.f32.mrb[5].mxu1 }
 0x12f   : > { %v755_v28 = vpack.c.bf16 %v541_v20, %v541_v20  ;;  %v763_v29 = vpack.c.bf16 %v549_v21, %v549_v21  ;;  %v542_v30 = vmax.f32 %v526_v22, 0.0  ;;  %v550_v31 = vmax.f32 %v534_v23, 0.0  ;;  %v796_v32 = vpop.f32.mrb[6].mxu0  ;;  %v820_v33 = vpop.f32.mrb[6].mxu1 }
 0x130   : > { %v795_v34 = vadd.f32 %v794_v26, %v793_v24  ;;  %v819_v35 = vadd.f32 %v818_v27, %v817_v25  ;;  %v797_v36 = vpop.f32.mrb[7].mxu0  ;;  %v821_v37 = vpop.f32.mrb[7].mxu1 }
 0x131   : > { %622 = vst.msk [vmem:[%s1196_s5] sm:$0xf] %vm621_vm0, %v755_v28  ;;  %630 = vst.msk [vmem:[%s1196_s5 + $0x20] sm:$0xf] %vm621_vm0, %v763_v29  ;;  %v756_v38 = vpack.c.bf16 %v542_v30, %v542_v30  ;;  %v764_v39 = vpack.c.bf16 %v550_v31, %v550_v31  ;;  %v798_v40 = vadd.f32 %v797_v36, %v796_v32 }
 0x132   : > { %v822_v41 = vadd.f32 %v821_v37, %v820_v33  ;;  %v504_v42 = vmul.f32 %v795_v34, %v1178_v3  ;;  %v512_v43 = vmul.f32 %v819_v35, %v1178_v3 }
 0x133   : > { %623 = vst.msk [vmem:[%s1196_s5 + $0x4] sm:$0xf] %vm621_vm0, %v756_v38  ;;  %631 = vst.msk [vmem:[%s1196_s5 + $0x24] sm:$0xf] %vm621_vm0, %v764_v39  ;;  %v505_v44 = vmul.f32 %v798_v40, %v1178_v3 }
 0x134   : > { %v513_v45 = vmul.f32 %v822_v41, %v1178_v3  ;;  %v527_v46 = vadd.f32 %v1183_v9, %v504_v42  ;;  %v535_v47 = vadd.f32 %v1183_v9, %v512_v43 }
 0x135   : > { %v528_v48 = vadd.f32 %v1183_v9, %v505_v44  ;;  %v799_v50 = vpop.f32.mrb[8].mxu0  ;;  %v823_v51 = vpop.f32.mrb[8].mxu1 }
 0x136   : > { %v536_v49 = vadd.f32 %v1183_v9, %v513_v45  ;;  %v543_v52 = vmax.f32 %v527_v46, 0.0  ;;  %v551_v53 = vmax.f32 %v535_v47, 0.0  ;;  %v800_v54 = vpop.f32.mrb[9].mxu0  ;;  %v824_v55 = vpop.f32.mrb[9].mxu1 }
 0x137   : > { %v544_v56 = vmax.f32 %v528_v48, 0.0  ;;  %v801_v58 = vadd.f32 %v800_v54, %v799_v50  ;;  %v825_v59 = vadd.f32 %v824_v55, %v823_v51  ;;  %v802_v60 = vpop.f32.mrb[10].mxu0  ;;  %v826_v61 = vpop.f32.mrb[10].mxu1 }
 0x138   : > { %v552_v57 = vmax.f32 %v536_v49, 0.0  ;;  %v757_v62 = vpack.c.bf16 %v543_v52, %v543_v52  ;;  %v765_v63 = vpack.c.bf16 %v551_v53, %v551_v53  ;;  %v803_v0 = vpop.f32.mrb[11].mxu0  ;;  %v827_v1 = vpop.f32.mrb[11].mxu1 }
 0x139   : > { %v758_v2 = vpack.c.bf16 %v544_v56, %v544_v56  ;;  %v506_v5 = vmul.f32 %v801_v58, %v1178_v3  ;;  %v514_v6 = vmul.f32 %v825_v59, %v1178_v3  ;;  %v804_v7 = vadd.f32 %v803_v0, %v802_v60 }
 0x13a   : > { %v766_v4 = vpack.c.bf16 %v552_v57, %v552_v57  ;;  %624 = vst.msk [vmem:[%s1196_s5 + $0x8] sm:$0xf] %vm621_vm0, %v757_v62  ;;  %632 = vst.msk [vmem:[%s1196_s5 + $0x28] sm:$0xf] %vm621_vm0, %v765_v63  ;;  %v828_v8 = vadd.f32 %v827_v1, %v826_v61 }
 0x13b   : > { %625 = vst.msk [vmem:[%s1196_s5 + $0xc] sm:$0xf] %vm621_vm0, %v758_v2  ;;  %v529_v10 = vadd.f32 %v1183_v9, %v506_v5  ;;  %v537_v11 = vadd.f32 %v1183_v9, %v514_v6  ;;  %v507_v12 = vmul.f32 %v804_v7, %v1178_v3 }
 0x13c   : > { %633 = vst.msk [vmem:[%s1196_s5 + $0x2c] sm:$0xf] %vm621_vm0, %v766_v4  ;;  %v515_v13 = vmul.f32 %v828_v8, %v1178_v3 }
 0x13d   : > { %v545_v14 = vmax.f32 %v529_v10, 0.0  ;;  %v553_v15 = vmax.f32 %v537_v11, 0.0  ;;  %v805_v16 = vpop.f32.mrb[12].mxu0  ;;  %v829_v17 = vpop.f32.mrb[12].mxu1  ;;  %v530_v18 = vadd.f32 %v1183_v9, %v507_v12 }
 0x13e   : > { %v538_v19 = vadd.f32 %v1183_v9, %v515_v13  ;;  %v806_v20 = vpop.f32.mrb[13].mxu0  ;;  %v830_v21 = vpop.f32.mrb[13].mxu1 }
 0x13f   : > { %v759_v22 = vpack.c.bf16 %v545_v14, %v545_v14  ;;  %v767_v23 = vpack.c.bf16 %v553_v15, %v553_v15  ;;  %v807_v24 = vadd.f32 %v806_v20, %v805_v16  ;;  %v831_v25 = vadd.f32 %v830_v21, %v829_v17  ;;  %v808_v26 = vpop.f32.mrb[14].mxu0  ;;  %v832_v27 = vpop.f32.mrb[14].mxu1 }
 0x140   : > { %v546_v28 = vmax.f32 %v530_v18, 0.0  ;;  %v554_v29 = vmax.f32 %v538_v19, 0.0  ;;  %v809_v30 = vpop.f32.mrb[15].mxu0  ;;  %v833_v31 = vpop.f32.mrb[15].mxu1 }
 0x141   : > { %626 = vst.msk [vmem:[%s1196_s5 + $0x10] sm:$0xf] %vm621_vm0, %v759_v22  ;;  %634 = vst.msk [vmem:[%s1196_s5 + $0x30] sm:$0xf] %vm621_vm0, %v767_v23  ;;  %v508_v32 = vmul.f32 %v807_v24, %v1178_v3  ;;  %v516_v33 = vmul.f32 %v831_v25, %v1178_v3  ;;  %v810_v34 = vadd.f32 %v809_v30, %v808_v26 }
 0x142   : > { %v834_v35 = vadd.f32 %v833_v31, %v832_v27  ;;  %v760_v36 = vpack.c.bf16 %v546_v28, %v546_v28  ;;  %v768_v37 = vpack.c.bf16 %v554_v29, %v554_v29 }
 0x143   : > { %v531_v38 = vadd.f32 %v1183_v9, %v508_v32  ;;  %v539_v39 = vadd.f32 %v1183_v9, %v516_v33  ;;  %v509_v40 = vmul.f32 %v810_v34, %v1178_v3 }
 0x144   : > { %v517_v41 = vmul.f32 %v834_v35, %v1178_v3  ;;  %627 = vst.msk [vmem:[%s1196_s5 + $0x14] sm:$0xf] %vm621_vm0, %v760_v36  ;;  %635 = vst.msk [vmem:[%s1196_s5 + $0x34] sm:$0xf] %vm621_vm0, %v768_v37 }
 0x145   : > { %v547_v42 = vmax.f32 %v531_v38, 0.0  ;;  %v555_v43 = vmax.f32 %v539_v39, 0.0  ;;  %v532_v44 = vadd.f32 %v1183_v9, %v509_v40 }
 0x146   : > { %v540_v45 = vadd.f32 %v1183_v9, %v517_v41 }
 0x147   : > { %v761_v46 = vpack.c.bf16 %v547_v42, %v547_v42  ;;  %v769_v47 = vpack.c.bf16 %v555_v43, %v555_v43  ;;  %v548_v48 = vmax.f32 %v532_v44, 0.0 }
 0x148   : > { %v556_v49 = vmax.f32 %v540_v45, 0.0 }
 0x149   : > { %628 = vst.msk [vmem:[%s1196_s5 + $0x18] sm:$0xf] %vm621_vm0, %v761_v46  ;;  %636 = vst.msk [vmem:[%s1196_s5 + $0x38] sm:$0xf] %vm621_vm0, %v769_v47  ;;  %v762_v3 = vpack.c.bf16 %v548_v48, %v548_v48 }
 0x14a   : > { %v770_v50 = vpack.c.bf16 %v556_v49, %v556_v49 }
 0x14b   : > { %629 = vst.msk [vmem:[%s1196_s5 + $0x1c] sm:$0xf] %vm621_vm0, %v762_v3 }
 0x14c   : > { %637 = vst.msk [vmem:[%s1196_s5 + $0x3c] sm:$0xf] %vm621_vm0, %v770_v50 }
 0x14d PF: > { %p14_p8 = scmp.ge.s32.totalorder %s1022_s20, 6   ;;  %s1275_s15 = smov %s964_s16 }
 0x14e   : > { %s1276_s16 = smov %s968_s17  ;;  %s1277_s17 = smov %s1032_s23 }
 0x14f   : > { %s1278_s18 = smov %s1022_s20  ;;  %16 = sbr.rel (!%p14_p8) target bundleno = 3 (0x3), region = 76 }
 0x156   :  { %660 = vsyncpa [#allocation3], 1 }
 0x157   :  { %662 = vsyncpa [#allocation3 + $0x1], 1 }

// kernel: bottleneck_forward.5
= control target key start
LH: loop header
LB: loop body
LE: loop exit
PB: predicated region body
PF: predicated region fallthrough
CT: control target
= control target key end

     0   :  { %10 = vsyncpa [#allocation3], 0  ;;  %s1315_s0 = inlined_call_operand.vmem [shape: bf16[512,64], index: 0, kind: input, shape index: {}]   ;;  %s1316_s1 = inlined_call_operand.vmem [shape: bf16[64,256], index: 1, kind: input, shape index: {}]   ;;  %s1317_s2 = inlined_call_operand.vmem [shape: f32[1,256], index: 2, kind: input, shape index: {}]   ;;  %s1318_s3 = inlined_call_operand.vmem [shape: f32[1,256], index: 3, kind: input, shape index: {}]   ;;  %s1319_s4 = inlined_call_operand.vmem [shape: f32[512,256], index: 4, kind: input, shape index: {}]   ;;  %s1320_s5 = inlined_call_operand.hbm [shape: f32[512,256], index: 5, kind: output, shape index: {}]  }
   0x1   :  { %12 = vsyncpa [#allocation3 + $0x1], 0  ;;  %s1010_s18 = smov 0   ;;  %s1012_s19 = smov 0  }
   0x2   :  { %s1014_s20 = smov 0   ;;  %s1016_s21 = smov 0  }
   0x3 LB: > { %s1031_s22 = sadd.s32 4294967295, %s974_s21   ;;  %s799_s23 = sadd.s32 4294967294, %s974_s21   ;;  %s974_s21 = sphi %s1016_s21, %s1326_s21   ;;  %s970_s20 = sphi %s1014_s20, %s1325_s20   ;;  %s966_s19 = sphi %s1012_s19, %s1324_s19   ;;  %s962_s18 = sphi %s1010_s18, %s1323_s18  }
   0x4   : > { %s1035_s24 = sadd.s32 1, %s974_s21   ;;  %s140_s25 = sadd.s32 1, %s970_s20 }
   0x5   : > { %s137_s26 = ssub.s32 %s974_s21, %s1035_s24  ;;  %p150_p0 = scmp.ne.s32.totalorder %s970_s20, %s966_s19 }
   0x6   : > { %p138_p1 = scmp.eq.s32.totalorder %s137_s26, 0  ;;  %p151_p2 = scmp.eq.s32.totalorder %s1031_s22, 3 }
   0x7   : > { %p156_p3 = scmp.ne.s32.totalorder %s966_s19, %s962_s18  ;;  %p157_p4 = scmp.eq.s32.totalorder %s799_s23, 3 }
   0x8   : > { %s1046_s27 = scalar_select %p138_p1, %s970_s20, %s140_s25  }
   0x9   : > { %p1048_p5 = por %p151_p2, %p150_p0  ;;  %p1052_p6 = por %p157_p4, %p156_p3 }
   0xa   : > { %p802_p7 = scmp.ge.s32.totalorder %s974_s21, 1  ;;  %p203_p8 = scmp.lt.s32.totalorder %s974_s21, 5 }
   0xc   : > { %p204_p9 = pnand %p802_p7, %p203_p8 }
   0xd   : > { %v892_v0 = vld [vmem:[%s1316_s1 + $0x4] ss:$8 sps:$4 sm:$0xff] (!%p204_p9)   ;;  %s804_s7 = sshll.u32 (!%p204_p9), %s1031_s22, 4  ;;  %v894_v1 = vld [vmem:[%s1316_s1] ss:$8 sps:$4 sm:$0xff] (!%p204_p9)   ;;  %v976_v2 = vmov (!%p204_p9), 0   ;;  %v496_v17 = vlaneseq (!%p204_p9) }
   0xe   : > { %207 = sbr.rel (%p204_p9) target bundleno = 295 (0x127), region = 40  ;;  %413 = vmatprep.mubr.bf16.mxu0 (!%p204_p9), %v976_v2  ;;  %453 = vmatprep.mubr.bf16.mxu1 (!%p204_p9), %v976_v2  ;;  %p238_p10 = scmp.lt.s32.totalorder (!%p204_p9), %s804_s7, 63  ;;  %v895_v3 = vld [vmem:[%s1316_s1 + $0x14] ss:$8 sps:$4 sm:$0xff] (!%p204_p9)   ;;  %v897_v4 = vld [vmem:[%s1316_s1 + $0x10] ss:$8 sps:$4 sm:$0xff] (!%p204_p9)  }
   0xf   : > { %381 = vmatprep.subr.bf16.mxu0 (!%p204_p9), %v892_v0  ;;  %842 = vmatprep.subr.bf16.mxu1 (!%p204_p9), %v892_v0  ;;  %v898_v5 = vld [vmem:[%s1316_s1 + $0x24] ss:$8 sps:$4 sm:$0xff] (!%p204_p9)   ;;  %v900_v6 = vld [vmem:[%s1316_s1 + $0x20] ss:$8 sps:$4 sm:$0xff] (!%p204_p9)   ;;  %v901_v7 = vld [vmem:[%s1316_s1 + $0x34] ss:$8 sps:$4 sm:$0xff] (!%p204_p9)  }
  0x10   : > { %382 = vmatpush1.bf16.msra.mxu0 (!%p204_p9), %v894_v1  ;;  %846 = vmatpush1.bf16.msra.mxu1 (!%p204_p9), %v894_v1  ;;  %v903_v8 = vld [vmem:[%s1316_s1 + $0x30] ss:$8 sps:$4 sm:$0xff] (!%p204_p9)   ;;  %vm356_vm0 = vcmask (!%p204_p9), 523264   ;;  %v497_v18 = vshrl.u32 (!%p204_p9), %v496_v17, 7  ;;  %v494_v20 = vld [vmem:[%s1317_s2] sm:$0x3] (!%p204_p9) }
  0x11   : > { %383 = vmatprep.subr.bf16.mxu0 (!%p204_p9), %v895_v3  ;;  %843 = vmatprep.subr.bf16.mxu1 (!%p204_p9), %v895_v3  ;;  %v538_v22 = vld [vmem:[%s1318_s3] sm:$0x3] (!%p204_p9)  ;;  %s841_s30 = sshll.u32 (!%p204_p9), %s1031_s22, 12  ;;  %s977_s12 = smov (!%p204_p9), [#allocation2]  }
  0x12   : > { %v498_v19 = vsub.s32 (!%p204_p9), 0, %v497_v18  ;;  %v502_v21 = vsub.s32 (!%p204_p9), 1, %v497_v18  ;;  %s1262_s9 = scalar_lea.hbm (!%p204_p9), %s1320_s5, %s841_s30 }
  0x14   : > { %384 = vmatpush1.bf16.msra.mxu0 (!%p204_p9), %v897_v4  ;;  %847 = vmatpush1.bf16.msra.mxu1 (!%p204_p9), %v897_v4  ;;  %v1114_v23 = vrot.slane (!%p204_p9), %v494_v20, %v498_v19  ;;  %v1116_v24 = vrot.slane (!%p204_p9), %v494_v20, %v502_v21  ;;  %v1123_v25 = vrot.slane (!%p204_p9), %v538_v22, %v498_v19 }
  0x15   : > { %s1328_s7 = smov (!%p238_p10, %s804_s7), 63  ;;  %385 = vmatprep.subr.bf16.mxu0 %v898_v5  ;;  %844 = vmatprep.subr.bf16.mxu1 %v898_v5  ;;  %v1126_v28 = vrot.slane %v538_v22, %v502_v21 }
  0x16   : > { %s805_s16 = sshll.u32 %s1328_s7, 2  ;;  %s839_s13 = sshll.u32 %s1328_s7, 4 }
  0x17   : > { %s1080_s25 = scalar_lea.vmem %s1315_s0, %s805_s16  ;;  %s1121_s23 = scalar_lea.vmem %s1319_s4, %s839_s13 }
  0x18   : > { %386 = vmatpush1.bf16.msra.mxu0 %v900_v6  ;;  %848 = vmatpush1.bf16.msra.mxu1 %v900_v6  ;;  %v904_v9 = vld [vmem:[%s1080_s25] sm:$0xff]   ;;  %v906_v11 = vld [vmem:[%s1080_s25 + $0x8] sm:$0xff]   ;;  %v908_v13 = vld [vmem:[%s1080_s25 + $0x10] sm:$0xff]   ;;  %s916_s13 = sshll.u32 %s977_s12, 4  ;;  %s917_s13 = int_to_ptr.vmem [resolvable:$false] %s916_s13 }
  0x19   : > { %387 = vmatprep.subr.bf16.mxu0 %v901_v7  ;;  %845 = vmatprep.subr.bf16.mxu1 %v901_v7  ;;  %v905_v10 = vld [vmem:[%s1080_s25 + $0x20] sm:$0xff]   ;;  %v907_v12 = vld [vmem:[%s1080_s25 + $0x28] sm:$0xff]   ;;  %v909_v14 = vld [vmem:[%s1080_s25 + $0x30] sm:$0xff]   ;;  %s918_s14 = scalar_lea.vmem %s917_s13, 8192 }
  0x1a   : > { %v910_v15 = vld [vmem:[%s1080_s25 + $0x18] sm:$0xff]   ;;  %v582_v33 = vld [vmem:[%s1121_s23] sm:$0xff]  ;;  %v583_v41 = vld [vmem:[%s1121_s23 + $0x8] sm:$0xff] }
  0x1b   : > { %v911_v16 = vld [vmem:[%s1080_s25 + $0x38] sm:$0xff]   ;;  %s234_s25 = sand.u32 1, %s966_s19   ;;  %v598_v34 = vld [vmem:[%s1121_s23 + $0x80] sm:$0xff]  ;;  %v599_v42 = vld [vmem:[%s1121_s23 + $0x88] sm:$0xff] }
  0x1c   : > { %388 = vmatpush1.bf16.msra.mxu0 %v903_v8  ;;  %849 = vmatpush1.bf16.msra.mxu1 %v903_v8  ;;  %s1136_s7 = sshll.u32 %s234_s25, 8  ;;  %v584_v49 = vld [vmem:[%s1121_s23 + $0x10] sm:$0xff]  ;;  %v585_v57 = vld [vmem:[%s1121_s23 + $0x18] sm:$0xff]  ;;  %v586_v17 = vld [vmem:[%s1121_s23 + $0x20] sm:$0xff]  ;;  %s1274_s10 = scalar_lea.sflag [#allocation3], %s234_s25 }
  0x1d   : > { %v600_v50 = vld [vmem:[%s1121_s23 + $0x90] sm:$0xff]  ;;  %v601_v58 = vld [vmem:[%s1121_s23 + $0x98] sm:$0xff]  ;;  %s1157_s26 = scalar_lea.vmem [#allocation2], %s1136_s7  ;;  %v602_v18 = vld [vmem:[%s1121_s23 + $0xa0] sm:$0xff] }
  0x1e   : > { %s725_s6 = sshll.u32 %s1157_s26, 4  ;;  %s1264_s6 = int_to_ptr.vmem [resolvable:$true] %s725_s6 }
  0x1f   : > { %825 = vmatmul.mubr.msk.bf16.vlgmr.msra.gmra.mrb[0].mxu0 %vm356_vm0, %v904_v9  ;;  %829 = vmatmul.mubr.msk.bf16.vlgmr.msra.gmra.mrb[0].mxu1 %vm356_vm0, %v905_v10  ;;  %s912_s11 = scalar_lea.vmem %s1264_s6, 4096  ;;  %p919_p0 = scmp.lt.s32.totalorder %s1264_s6, %s917_s13 }
  0x20   : > { %423 = vmatprep.mubr.bf16.mxu0 %v976_v2  ;;  %463 = vmatprep.mubr.bf16.mxu1 %v976_v2  ;;  %p913_p11 = scmp.ne.s32.totalorder %s1264_s6, %s912_s11  ;;  %p920_p1 = scmp.lt.s32.totalorder %s918_s14, %s912_s11 }
  0x22   : > { %p914_p12 = pnand %p913_p11, %p1048_p5  ;;  %p921_p2 = por %p920_p1, %p919_p0 }
  0x24   : > { %p915_p13 = pneg %p914_p12 }
  0x26   : > { %p922_p3 = pnand %p921_p2, %p915_p13 }
  0x27   : > { %826 = vmatmul.mubr.msk.bf16.gmra.mrb[4].mxu0 %vm356_vm0, %v906_v11  ;;  %830 = vmatmul.mubr.msk.bf16.gmra.mrb[4].mxu1 %vm356_vm0, %v907_v12 }
  0x28   : > { %433 = vmatprep.mubr.bf16.mxu0 %v976_v2  ;;  %473 = vmatprep.mubr.bf16.mxu1 %v976_v2 }
  0x2f   : > { %827 = vmatmul.mubr.msk.bf16.gmra.mrb[8].mxu0 %vm356_vm0, %v908_v13  ;;  %831 = vmatmul.mubr.msk.bf16.gmra.mrb[8].mxu1 %vm356_vm0, %v909_v14 }
  0x30   : > { %443 = vmatprep.mubr.bf16.mxu0 %v976_v2  ;;  %483 = vmatprep.mubr.bf16.mxu1 %v976_v2 }
  0x37   : > { %828 = vmatmul.mubr.msk.bf16.gmra.mrb[12].mxu0 %vm356_vm0, %v910_v15  ;;  %832 = vmatmul.mubr.msk.bf16.gmra.mrb[12].mxu1 %vm356_vm0, %v911_v16 }
  0xf2   : > { %v415_v26 = vpop.f32.mrb[0].mxu0  ;;  %v455_v27 = vpop.f32.mrb[0].mxu1 }
  0xf3   : > { %v506_v29 = vmul.f32 %v1114_v23, %v415_v26  ;;  %v522_v30 = vmul.f32 %v1114_v23, %v455_v27  ;;  %v417_v31 = vpop.f32.mrb[1].mxu0  ;;  %v457_v32 = vpop.f32.mrb[1].mxu1 }
  0xf4   : > { %v507_v35 = vmul.f32 %v1116_v24, %v417_v31  ;;  %v523_v36 = vmul.f32 %v1116_v24, %v457_v32  ;;  %v419_v37 = vpop.f32.mrb[2].mxu0  ;;  %v459_v38 = vpop.f32.mrb[2].mxu1 }
  0xf5   : > { %v550_v39 = vadd.f32 %v1123_v25, %v506_v29  ;;  %v566_v40 = vadd.f32 %v1123_v25, %v522_v30  ;;  %v508_v43 = vmul.f32 %v1114_v23, %v419_v37  ;;  %v524_v44 = vmul.f32 %v1114_v23, %v459_v38  ;;  %v421_v45 = vpop.f32.mrb[3].mxu0  ;;  %v461_v46 = vpop.f32.mrb[3].mxu1  ;;  %v587_v29 = vld [vmem:[%s1121_s23 + $0x28] sm:$0xff]  ;;  %v588_v37 = vld [vmem:[%s1121_s23 + $0x30] sm:$0xff] }
  0xf6   : > { %v551_v47 = vadd.f32 %v1126_v28, %v507_v35  ;;  %v567_v48 = vadd.f32 %v1126_v28, %v523_v36  ;;  %v509_v51 = vmul.f32 %v1116_v24, %v421_v45  ;;  %v525_v52 = vmul.f32 %v1116_v24, %v461_v46  ;;  %v603_v30 = vld [vmem:[%s1121_s23 + $0xa8] sm:$0xff]  ;;  %v604_v38 = vld [vmem:[%s1121_s23 + $0xb0] sm:$0xff]  ;;  %v589_v45 = vld [vmem:[%s1121_s23 + $0x38] sm:$0xff] }
  0xf7   : > { %v614_v53 = vadd.f32 %v582_v33, %v550_v39  ;;  %v630_v54 = vadd.f32 %v598_v34, %v566_v40  ;;  %v552_v55 = vadd.f32 %v1123_v25, %v508_v43  ;;  %v568_v56 = vadd.f32 %v1123_v25, %v524_v44  ;;  %v605_v46 = vld [vmem:[%s1121_s23 + $0xb8] sm:$0xff] }
  0xf8   : > { %v615_v59 = vadd.f32 %v583_v41, %v551_v47  ;;  %v631_v60 = vadd.f32 %v599_v42, %v567_v48  ;;  %v553_v61 = vadd.f32 %v1126_v28, %v509_v51  ;;  %v569_v62 = vadd.f32 %v1126_v28, %v525_v52 }
  0xf9   : > { %v646_v63 = vmax.f32 %v614_v53, 0.0  ;;  %v662_v0 = vmax.f32 %v630_v54, 0.0  ;;  %v616_v1 = vadd.f32 %v584_v49, %v552_v55  ;;  %v632_v2 = vadd.f32 %v600_v50, %v568_v56 }
  0xfa   : > { %v647_v3 = vmax.f32 %v615_v59, 0.0  ;;  %v663_v4 = vmax.f32 %v631_v60, 0.0  ;;  %v617_v5 = vadd.f32 %v585_v57, %v553_v61  ;;  %v633_v6 = vadd.f32 %v601_v58, %v569_v62  ;;  %v425_v7 = vpop.f32.mrb[4].mxu0  ;;  %v465_v8 = vpop.f32.mrb[4].mxu1 }
  0xfb   : > { %678 = vst [vmem:[%s1157_s26] sm:$0xff] %v646_v63  ;;  %694 = vst [vmem:[%s1157_s26 + $0x80] sm:$0xff] %v662_v0  ;;  %v648_v9 = vmax.f32 %v616_v1, 0.0  ;;  %v664_v10 = vmax.f32 %v632_v2, 0.0  ;;  %v510_v11 = vmul.f32 %v1114_v23, %v425_v7  ;;  %v526_v12 = vmul.f32 %v1114_v23, %v465_v8  ;;  %v427_v13 = vpop.f32.mrb[5].mxu0  ;;  %v467_v14 = vpop.f32.mrb[5].mxu1 }
  0xfc   : > { %679 = vst [vmem:[%s1157_s26 + $0x8] sm:$0xff] %v647_v3  ;;  %695 = vst [vmem:[%s1157_s26 + $0x88] sm:$0xff] %v663_v4  ;;  %v649_v15 = vmax.f32 %v617_v5, 0.0  ;;  %v665_v16 = vmax.f32 %v633_v6, 0.0  ;;  %v511_v19 = vmul.f32 %v1116_v24, %v427_v13  ;;  %v527_v20 = vmul.f32 %v1116_v24, %v467_v14  ;;  %v429_v21 = vpop.f32.mrb[6].mxu0  ;;  %v469_v22 = vpop.f32.mrb[6].mxu1 }
  0xfd   : > { %680 = vst [vmem:[%s1157_s26 + $0x10] sm:$0xff] %v648_v9  ;;  %696 = vst [vmem:[%s1157_s26 + $0x90] sm:$0xff] %v664_v10  ;;  %v554_v26 = vadd.f32 %v1123_v25, %v510_v11  ;;  %v570_v27 = vadd.f32 %v1123_v25, %v526_v12  ;;  %v512_v31 = vmul.f32 %v1114_v23, %v429_v21  ;;  %v431_v33 = vpop.f32.mrb[7].mxu0  ;;  %v471_v34 = vpop.f32.mrb[7].mxu1  ;;  %v590_v5 = vld [vmem:[%s1121_s23 + $0x40] sm:$0xff]  ;;  %v591_v13 = vld [vmem:[%s1121_s23 + $0x48] sm:$0xff] }
  0xfe   : > { %v528_v32 = vmul.f32 %v1114_v23, %v469_v22  ;;  %681 = vst [vmem:[%s1157_s26 + $0x18] sm:$0xff] %v649_v15  ;;  %697 = vst [vmem:[%s1157_s26 + $0x98] sm:$0xff] %v665_v16  ;;  %v555_v35 = vadd.f32 %v1126_v28, %v511_v19  ;;  %v571_v36 = vadd.f32 %v1126_v28, %v527_v20  ;;  %v606_v6 = vld [vmem:[%s1121_s23 + $0xc0] sm:$0xff]  ;;  %v607_v14 = vld [vmem:[%s1121_s23 + $0xc8] sm:$0xff] }
  0xff   : > { %v513_v39 = vmul.f32 %v1116_v24, %v431_v33  ;;  %v529_v40 = vmul.f32 %v1116_v24, %v471_v34  ;;  %v618_v41 = vadd.f32 %v586_v17, %v554_v26  ;;  %v634_v42 = vadd.f32 %v602_v18, %v570_v27  ;;  %v592_v21 = vld [vmem:[%s1121_s23 + $0x50] sm:$0xff]  ;;  %v593_v33 = vld [vmem:[%s1121_s23 + $0x58] sm:$0xff] }
 0x100   : > { %v556_v43 = vadd.f32 %v1123_v25, %v512_v31  ;;  %v572_v44 = vadd.f32 %v1123_v25, %v528_v32  ;;  %v619_v47 = vadd.f32 %v587_v29, %v555_v35  ;;  %v635_v48 = vadd.f32 %v603_v30, %v571_v36  ;;  %v608_v22 = vld [vmem:[%s1121_s23 + $0xd0] sm:$0xff]  ;;  %v609_v34 = vld [vmem:[%s1121_s23 + $0xd8] sm:$0xff] }
 0x101   : > { %v557_v49 = vadd.f32 %v1126_v28, %v513_v39  ;;  %v573_v50 = vadd.f32 %v1126_v28, %v529_v40  ;;  %v650_v51 = vmax.f32 %v618_v41, 0.0  ;;  %v666_v52 = vmax.f32 %v634_v42, 0.0 }
 0x102   : > { %v620_v53 = vadd.f32 %v588_v37, %v556_v43  ;;  %v636_v54 = vadd.f32 %v604_v38, %v572_v44  ;;  %v651_v55 = vmax.f32 %v619_v47, 0.0  ;;  %v667_v56 = vmax.f32 %v635_v48, 0.0  ;;  %v435_v59 = vpop.f32.mrb[8].mxu0  ;;  %v475_v60 = vpop.f32.mrb[8].mxu1 }
 0x103   : > { %v621_v57 = vadd.f32 %v589_v45, %v557_v49  ;;  %v637_v58 = vadd.f32 %v605_v46, %v573_v50  ;;  %682 = vst [vmem:[%s1157_s26 + $0x20] sm:$0xff] %v650_v51  ;;  %698 = vst [vmem:[%s1157_s26 + $0xa0] sm:$0xff] %v666_v52  ;;  %v514_v63 = vmul.f32 %v1114_v23, %v435_v59  ;;  %v437_v1 = vpop.f32.mrb[9].mxu0  ;;  %v477_v2 = vpop.f32.mrb[9].mxu1 }
 0x104   : > { %v652_v61 = vmax.f32 %v620_v53, 0.0  ;;  %v668_v62 = vmax.f32 %v636_v54, 0.0  ;;  %v530_v0 = vmul.f32 %v1114_v23, %v475_v60  ;;  %683 = vst [vmem:[%s1157_s26 + $0x28] sm:$0xff] %v651_v55  ;;  %699 = vst [vmem:[%s1157_s26 + $0xa8] sm:$0xff] %v667_v56  ;;  %v515_v7 = vmul.f32 %v1116_v24, %v437_v1  ;;  %v439_v9 = vpop.f32.mrb[10].mxu0  ;;  %v479_v10 = vpop.f32.mrb[10].mxu1 }
 0x105   : > { %v653_v3 = vmax.f32 %v621_v57, 0.0  ;;  %v669_v4 = vmax.f32 %v637_v58, 0.0  ;;  %v531_v8 = vmul.f32 %v1116_v24, %v477_v2  ;;  %v558_v11 = vadd.f32 %v1123_v25, %v514_v63  ;;  %v441_v17 = vpop.f32.mrb[11].mxu0  ;;  %v481_v18 = vpop.f32.mrb[11].mxu1  ;;  %v594_v57 = vld [vmem:[%s1121_s23 + $0x60] sm:$0xff]  ;;  %v595_v1 = vld [vmem:[%s1121_s23 + $0x68] sm:$0xff] }
 0x106   : > { %684 = vst [vmem:[%s1157_s26 + $0x30] sm:$0xff] %v652_v61  ;;  %700 = vst [vmem:[%s1157_s26 + $0xb0] sm:$0xff] %v668_v62  ;;  %v574_v12 = vadd.f32 %v1123_v25, %v530_v0  ;;  %v516_v15 = vmul.f32 %v1114_v23, %v439_v9  ;;  %v532_v16 = vmul.f32 %v1114_v23, %v479_v10  ;;  %v610_v58 = vld [vmem:[%s1121_s23 + $0xe0] sm:$0xff]  ;;  %v611_v2 = vld [vmem:[%s1121_s23 + $0xe8] sm:$0xff] }
 0x107   : > { %685 = vst [vmem:[%s1157_s26 + $0x38] sm:$0xff] %v653_v3  ;;  %701 = vst [vmem:[%s1157_s26 + $0xb8] sm:$0xff] %v669_v4  ;;  %v559_v19 = vadd.f32 %v1126_v28, %v515_v7  ;;  %v575_v20 = vadd.f32 %v1126_v28, %v531_v8  ;;  %v517_v26 = vmul.f32 %v1116_v24, %v441_v17  ;;  %v596_v9 = vld [vmem:[%s1121_s23 + $0x70] sm:$0xff]  ;;  %v613_v17 = vld [vmem:[%s1121_s23 + $0xf8] sm:$0xff] }
 0x108   : > { %v533_v27 = vmul.f32 %v1116_v24, %v481_v18  ;;  %v622_v29 = vadd.f32 %v590_v5, %v558_v11  ;;  %v638_v30 = vadd.f32 %v606_v6, %v574_v12  ;;  %v560_v31 = vadd.f32 %v1123_v25, %v516_v15  ;;  %v612_v10 = vld [vmem:[%s1121_s23 + $0xf0] sm:$0xff] }
 0x109   : > { %v576_v32 = vadd.f32 %v1123_v25, %v532_v16  ;;  %v623_v35 = vadd.f32 %v591_v13, %v559_v19  ;;  %v639_v36 = vadd.f32 %v607_v14, %v575_v20  ;;  %v561_v37 = vadd.f32 %v1126_v28, %v517_v26  ;;  %v597_v16 = vld [vmem:[%s1121_s23 + $0x78] sm:$0xff] }
 0x10a   : > { %v577_v38 = vadd.f32 %v1126_v28, %v533_v27  ;;  %v654_v39 = vmax.f32 %v622_v29, 0.0  ;;  %v670_v40 = vmax.f32 %v638_v30, 0.0  ;;  %v624_v41 = vadd.f32 %v592_v21, %v560_v31  ;;  %v445_v47 = vpop.f32.mrb[12].mxu0  ;;  %v485_v48 = vpop.f32.mrb[12].mxu1 }
 0x10b   : > { %v640_v42 = vadd.f32 %v608_v22, %v576_v32  ;;  %v655_v43 = vmax.f32 %v623_v35, 0.0  ;;  %v671_v44 = vmax.f32 %v639_v36, 0.0  ;;  %v625_v45 = vadd.f32 %v593_v33, %v561_v37  ;;  %v447_v53 = vpop.f32.mrb[13].mxu0  ;;  %v487_v54 = vpop.f32.mrb[13].mxu1 }
 0x10c   : > { %v641_v46 = vadd.f32 %v609_v34, %v577_v38  ;;  %686 = vst [vmem:[%s1157_s26 + $0x40] sm:$0xff] %v654_v39  ;;  %702 = vst [vmem:[%s1157_s26 + $0xc0] sm:$0xff] %v670_v40  ;;  %v656_v49 = vmax.f32 %v624_v41, 0.0  ;;  %v518_v51 = vmul.f32 %v1114_v23, %v445_v47  ;;  %v534_v52 = vmul.f32 %v1114_v23, %v485_v48  ;;  %v449_v61 = vpop.f32.mrb[14].mxu0  ;;  %v489_v62 = vpop.f32.mrb[14].mxu1 }
 0x10d   : > { %v672_v50 = vmax.f32 %v640_v42, 0.0  ;;  %687 = vst [vmem:[%s1157_s26 + $0x48] sm:$0xff] %v655_v43  ;;  %703 = vst [vmem:[%s1157_s26 + $0xc8] sm:$0xff] %v671_v44  ;;  %v657_v55 = vmax.f32 %v625_v45, 0.0  ;;  %v519_v59 = vmul.f32 %v1116_v24, %v447_v53  ;;  %v535_v60 = vmul.f32 %v1116_v24, %v487_v54  ;;  %v451_v5 = vpop.f32.mrb[15].mxu0  ;;  %v491_v6 = vpop.f32.mrb[15].mxu1 }
 0x10e   : > { %v673_v56 = vmax.f32 %v641_v46, 0.0  ;;  %688 = vst [vmem:[%s1157_s26 + $0x50] sm:$0xff] %v656_v49  ;;  %v562_v63 = vadd.f32 %v1123_v25, %v518_v51  ;;  %v578_v0 = vadd.f32 %v1123_v25, %v534_v52  ;;  %v520_v3 = vmul.f32 %v1114_v23, %v449_v61 }
 0x10f   : > { %704 = vst [vmem:[%s1157_s26 + $0xd0] sm:$0xff] %v672_v50  ;;  %v536_v4 = vmul.f32 %v1114_v23, %v489_v62  ;;  %689 = vst [vmem:[%s1157_s26 + $0x58] sm:$0xff] %v657_v55  ;;  %v563_v7 = vadd.f32 %v1126_v28, %v519_v59  ;;  %v579_v8 = vadd.f32 %v1126_v28, %v535_v60 }
 0x110   : > { %705 = vst [vmem:[%s1157_s26 + $0xd8] sm:$0xff] %v673_v56  ;;  %v521_v11 = vmul.f32 %v1116_v24, %v451_v5  ;;  %v537_v12 = vmul.f32 %v1116_v24, %v491_v6  ;;  %v626_v13 = vadd.f32 %v594_v57, %v562_v63  ;;  %v642_v14 = vadd.f32 %v610_v58, %v578_v0 }
 0x111   : > { %v564_v23 = vadd.f32 %v1123_v25, %v520_v3  ;;  %v580_v15 = vadd.f32 %v1123_v25, %v536_v4  ;;  %v627_v18 = vadd.f32 %v595_v1, %v563_v7  ;;  %v643_v19 = vadd.f32 %v611_v2, %v579_v8 }
 0x112   : > { %v565_v20 = vadd.f32 %v1126_v28, %v521_v11  ;;  %v581_v21 = vadd.f32 %v1126_v28, %v537_v12  ;;  %v658_v24 = vmax.f32 %v626_v13, 0.0  ;;  %v674_v22 = vmax.f32 %v642_v14, 0.0 }
 0x113   : > { %v628_v26 = vadd.f32 %v596_v9, %v564_v23  ;;  %v644_v27 = vadd.f32 %v612_v10, %v580_v15  ;;  %v659_v25 = vmax.f32 %v627_v18, 0.0  ;;  %v675_v29 = vmax.f32 %v643_v19, 0.0 }
 0x114   : > { %v629_v30 = vadd.f32 %v597_v16, %v565_v20  ;;  %v645_v31 = vadd.f32 %v613_v17, %v581_v21  ;;  %690 = vst [vmem:[%s1157_s26 + $0x60] sm:$0xff] %v658_v24  ;;  %706 = vst [vmem:[%s1157_s26 + $0xe0] sm:$0xff] %v674_v22 }
 0x115   : > { %v660_v28 = vmax.f32 %v628_v26, 0.0  ;;  %v676_v32 = vmax.f32 %v644_v27, 0.0  ;;  %691 = vst [vmem:[%s1157_s26 + $0x68] sm:$0xff] %v659_v25  ;;  %707 = vst [vmem:[%s1157_s26 + $0xe8] sm:$0xff] %v675_v29 }
 0x116   : > { %v661_v33 = vmax.f32 %v629_v30, 0.0  ;;  %v677_v34 = vmax.f32 %v645_v31, 0.0 }
 0x117   : > { %692 = vst [vmem:[%s1157_s26 + $0x70] sm:$0xff] %v660_v28  ;;  %708 = vst [vmem:[%s1157_s26 + $0xf0] sm:$0xff] %v676_v32 }
 0x118   : > { %693 = vst [vmem:[%s1157_s26 + $0x78] sm:$0xff] %v661_v33  ;;  %709 = vst [vmem:[%s1157_s26 + $0xf8] sm:$0xff] %v677_v34 }
 0x119   : > { %925 = shalt.err (!%p922_p3)
}
 0x11a   : > { %s926_s15 = scalar_lea.hbm %s1262_s9, 4096  ;;  %s930_s23 = scalar_lea.hbm %s1320_s5, 16384 }
 0x11b   : > { %p927_p4 = scmp.ne.s32.totalorder %s1262_s9, %s926_s15  ;;  %p931_p9 = scmp.lt.u32.totalorder %s1262_s9, %s1320_s5 }
 0x11c   : > { %p932_p10 = scmp.lt.u32.totalorder %s930_s23, %s926_s15  ;;  %p934_p12 = scmp.lt.u32.totalorder %s926_s15, %s1262_s9 }
 0x11d   : > { %p928_p7 = pnand %p927_p4, %p1048_p5 }
 0x11e   : > { %p933_p11 = por %p932_p10, %p931_p9 }
 0x11f   : > { %p929_p8 = pneg %p928_p7 }
 0x120   : > { %p935_p13 = por %p934_p12, %p933_p11 }
 0x122   : > { %p936_p0 = pnand %p935_p13, %p929_p8 }
 0x124   : > { %939 = shalt.err (!%p936_p0)
}
 0x125   : > { %s978_s26 = smov 256   ;;  %s979_s30 = smov 16  }
 0x126   : > { %850 = dma.vmem_to_hbm [thread:$0]  (%p1048_p5), %s1264_s6, 4096, %s1262_s9, %s1274_s10, %s978_s26, %s978_s26, %s979_s30  }
 0x127 PF: > { %p856_p1 = scmp.ge.s32.totalorder %s974_s21, 2  ;;  %s740_s22 = sand.u32 1, %s962_s18  }
 0x128   : > { %s741_s8 = scalar_lea.sflag [#allocation3], %s740_s22 }
 0x129   : > { %p853_p2 = pnand %p856_p1, %p1052_p6 }
 0x12b   : > { %957 = dma.done.wait (!%p853_p2), %s741_s8, 4096  }
 0x12c   : > { %959 = vsyncadd (!%p853_p2), %s741_s8, 4294963200  ;;  %p15_p3 = scmp.ge.s32.totalorder %s1035_s24, 6   ;;  %s1323_s18 = smov %s966_s19 }
 0x12d   : > { %s1324_s19 = smov %s970_s20  ;;  %s1325_s20 = smov %s1046_s27 }
 0x12e   : > { %s1326_s21 = smov %s1035_s24  ;;  %17 = sbr.rel (!%p15_p3) target bundleno = 3 (0x3), region = 78 }
 0x135   :  { %746 = vsyncpa [#allocation3], 1 }
 0x136   :  { %748 = vsyncpa [#allocation3 + $0x1], 1 }

// kernel: bottleneck_forward.4
= control target key start
LH: loop header
LB: loop body
LE: loop exit
PB: predicated region body
PF: predicated region fallthrough
CT: control target
= control target key end

     0   :  { %s3762_s15 = smov 0   ;;  %s3764_s16 = smov 0   ;;  %s4595_s0 = inlined_call_operand.vmem [shape: bf16[2,496,192], index: 0, kind: input, shape index: {}]   ;;  %s4596_s1 = inlined_call_operand.vmem [shape: bf16[9,192,64], index: 1, kind: input, shape index: {}]   ;;  %s4597_s2 = inlined_call_operand.vmem [shape: f32[1,64], index: 2, kind: input, shape index: {}]   ;;  %s4598_s3 = inlined_call_operand.vmem [shape: f32[1,64], index: 3, kind: input, shape index: {}]   ;;  %s4599_s4 = inlined_call_operand.vmem [shape: bf16[2,320,64], index: 4, kind: output, shape index: {}]  }
   0x1   :  { %s3766_s17 = smov 0   ;;  %s3768_s18 = smov 0  }
   0x2   :  { %s3770_s19 = smov 0  }
   0x3 LB: > { %s23_s20 = sadd.s32 1, %s3726_s17  ;;  %s26_s21 = sadd.s32 1, %s3730_s18  ;;  %s3734_s19 = sphi %s3770_s19, %s14_s19   ;;  %s3730_s18 = sphi %s3768_s18, %s4604_s18   ;;  %s3726_s17 = sphi %s3766_s17, %s4603_s17   ;;  %s3722_s16 = sphi %s3764_s16, %s4602_s16   ;;  %s3718_s15 = sphi %s3762_s15, %s4601_s15  }
   0x4   : > { %p24_p0 = scmp.ge.s32.totalorder %s23_s20, 4  ;;  %p2897_p1 = scmp.ge.s32.totalorder %s3734_s19, 1 }
   0x5   : > { %p176_p2 = scmp.lt.s32.totalorder %s3734_s19, 9 }
   0x6   : > { %s4606_s20 = smov (%p24_p0, %s23_s20), 0  ;;  %s4608_s21 = smov (!%p24_p0, %s26_s21), %s3730_s18 }
   0x7   : > { %p177_p3 = pnand %p2897_p1, %p176_p2  ;;  %p28_p4 = scmp.ge.s32.totalorder %s4608_s21, 2 }
   0x8   : > { %v3453_v0 = vld [vmem:[%s4596_s1] sm:$0xff] (!%p177_p3)   ;;  %v3736_v1 = vmov (!%p177_p3), 0   ;;  %v3455_v3 = vld [vmem:[%s4596_s1 + $0x8] sm:$0xff] (!%p177_p3)   ;;  %v3457_v5 = vld [vmem:[%s4596_s1 + $0x10] sm:$0xff] (!%p177_p3)   ;;  %p206_p5 = scmp.lt.s32.totalorder (!%p177_p3), %s3722_s16, 1  ;;  %s3825_s10 = smul.u32 (!%p177_p3), 80, %s3718_s15 }
   0x9   : > { %s4610_s21 = smov (%p28_p4, %s4608_s21), 0  ;;  %180 = sbr.rel (%p177_p3) target bundleno = 500 (0x1f4), region = 36 }
   0xa   : > { %395 = vmatprep.subr.bf16.mxu0 (!%p177_p3), %v3736_v1  ;;  %661 = vmatprep.subr.bf16.mxu1 (!%p177_p3), %v3736_v1  ;;  %v3454_v2 = vld [vmem:[%s4596_s1 + $0x60] sm:$0xff] (!%p177_p3)   ;;  %v3456_v4 = vld [vmem:[%s4596_s1 + $0x68] sm:$0xff] (!%p177_p3)   ;;  %v3458_v6 = vld [vmem:[%s4596_s1 + $0x70] sm:$0xff] (!%p177_p3)   ;;  %s488_s22 = sadd.s32 (!%p177_p3), 8, %s3825_s10  ;;  %s223_s26 = sshra.s32 (!%p177_p3), %s3825_s10, 3  ;;  %vm379_vm0 = vcmask (!%p177_p3), 523264  }
   0xb   : > { %396 = vmatpush1.bf16.msra.mxu0 (!%p177_p3), %v3453_v0  ;;  %662 = vmatpush1.bf16.msra.mxu1 (!%p177_p3), %v3454_v2  ;;  %v3459_v7 = vld [vmem:[%s4596_s1 + $0x18] sm:$0xff] (!%p177_p3)   ;;  %v3461_v9 = vld [vmem:[%s4596_s1 + $0x20] sm:$0xff] (!%p177_p3)   ;;  %s489_s27 = sshra.s32 (!%p177_p3), %s488_s22, 3  ;;  %v3463_v11 = vld [vmem:[%s4596_s1 + $0x28] sm:$0xff] (!%p177_p3)   ;;  %s3367_s9 = sshll.u32 (!%p177_p3), %s223_s26, 3  ;;  %vm2780_vm1 = vcmask (!%p177_p3), 519168  }
   0xc   : > { %397 = vmatprep.subr.bf16.mxu0 (!%p177_p3), %v3736_v1  ;;  %663 = vmatprep.subr.bf16.mxu1 (!%p177_p3), %v3736_v1  ;;  %v3460_v8 = vld [vmem:[%s4596_s1 + $0x78] sm:$0xff] (!%p177_p3)   ;;  %v3462_v10 = vld [vmem:[%s4596_s1 + $0x80] sm:$0xff] (!%p177_p3)   ;;  %v3464_v12 = vld [vmem:[%s4596_s1 + $0x88] sm:$0xff] (!%p177_p3)   ;;  %s3368_s11 = sshll.u32 (!%p177_p3), %s489_s27, 3  ;;  %s764_s12 = sadd.s32 (!%p177_p3), 16, %s3825_s10 }
   0xd   : > { %v3465_v13 = vld [vmem:[%s4596_s1 + $0x30] sm:$0xff] (!%p177_p3)   ;;  %v3467_v16 = vld [vmem:[%s4596_s1 + $0x38] sm:$0xff] (!%p177_p3)   ;;  %v3469_v19 = vld [vmem:[%s4596_s1 + $0x40] sm:$0xff] (!%p177_p3)   ;;  %s1040_s26 = sadd.s32 (!%p177_p3), 80, %s3825_s10  ;;  %s765_s27 = sshra.s32 (!%p177_p3), %s764_s12, 3 }
   0xe   : > { %v3466_v14 = vld [vmem:[%s4596_s1 + $0x90] sm:$0xff] (!%p177_p3)   ;;  %v3468_v18 = vld [vmem:[%s4596_s1 + $0x98] sm:$0xff] (!%p177_p3)   ;;  %v3470_v20 = vld [vmem:[%s4596_s1 + $0xa0] sm:$0xff] (!%p177_p3)   ;;  %s1041_s30 = sshra.s32 (!%p177_p3), %s1040_s26, 3  ;;  %s3369_s5 = sshll.u32 (!%p177_p3), %s765_s27, 3 }
   0xf   : > { %398 = vmatpush1.bf16.msra.mxu0 (!%p177_p3), %v3455_v3  ;;  %664 = vmatpush1.bf16.msra.mxu1 (!%p177_p3), %v3456_v4  ;;  %v3471_v21 = vld [vmem:[%s4596_s1 + $0x48] sm:$0xff] (!%p177_p3)   ;;  %v3473_v23 = vld [vmem:[%s4596_s1 + $0x50] sm:$0xff] (!%p177_p3)   ;;  %v3475_v25 = vld [vmem:[%s4596_s1 + $0x58] sm:$0xff] (!%p177_p3)   ;;  %s1316_s23 = sadd.s32 (!%p177_p3), 88, %s3825_s10  ;;  %s1868_s26 = sadd.s32 (!%p177_p3), 160, %s3825_s10 }
  0x10   : > { %399 = vmatprep.subr.bf16.mxu0 %v3736_v1  ;;  %665 = vmatprep.subr.bf16.mxu1 %v3736_v1  ;;  %s4612_s16 = smov (!%p206_p5, %s3722_s16), 1  ;;  %v3472_v22 = vld [vmem:[%s4596_s1 + $0xa8] sm:$0xff]   ;;  %v3474_v24 = vld [vmem:[%s4596_s1 + $0xb0] sm:$0xff]   ;;  %v3476_v26 = vld [vmem:[%s4596_s1 + $0xb8] sm:$0xff]  }
  0x11   : > { %s3410_s25 = smul.u32 496, %s4612_s16  ;;  %v3483_v29 = vld [vmem:[%s4596_s1 + $0xc0] sm:$0xff]   ;;  %v3485_v33 = vld [vmem:[%s4596_s1 + $0xc8] sm:$0xff]   ;;  %v3487_v35 = vld [vmem:[%s4596_s1 + $0xd0] sm:$0xff]  }
  0x12   : > { %v3484_v30 = vld [vmem:[%s4596_s1 + $0x120] sm:$0xff]   ;;  %v3486_v34 = vld [vmem:[%s4596_s1 + $0x128] sm:$0xff]   ;;  %v3488_v38 = vld [vmem:[%s4596_s1 + $0x130] sm:$0xff]  }
  0x13   : > { %400 = vmatpush1.bf16.msra.mxu0 %v3457_v5  ;;  %666 = vmatpush1.bf16.msra.mxu1 %v3458_v6  ;;  %s3856_s8 = scalar_lea.vmem %s4595_s0, %s3410_s25  ;;  %v3491_v41 = vld [vmem:[%s4596_s1 + $0xd8] sm:$0xff]   ;;  %v3497_v44 = vld [vmem:[%s4596_s1 + $0xe0] sm:$0xff]   ;;  %v3501_v49 = vld [vmem:[%s4596_s1 + $0xe8] sm:$0xff]   ;;  %s1592_s25 = sadd.s32 96, %s3825_s10 }
  0x14   : > { %401 = vmatprep.subr.bf16.mxu0 %v3736_v1  ;;  %667 = vmatprep.subr.bf16.mxu1 %v3736_v1  ;;  %s3863_s14 = scalar_lea.vmem %s3856_s8, %s3367_s9  ;;  %s3870_s24 = scalar_lea.vmem %s3856_s8, %s3368_s11  ;;  %v3492_v42 = vld [vmem:[%s4596_s1 + $0x138] sm:$0xff]   ;;  %v3498_v46 = vld [vmem:[%s4596_s1 + $0x140] sm:$0xff]   ;;  %v3502_v50 = vld [vmem:[%s4596_s1 + $0x148] sm:$0xff]  }
  0x15   : > { %v3479_v15 = vld [vmem:[%s3863_s14 + $0x4] ss:$8 sps:$4 sm:$0xff]   ;;  %v3477_v27 = vld [vmem:[%s3863_s14] ss:$8 sps:$4 sm:$0xff]   ;;  %v3489_v31 = vld [vmem:[%s3863_s14 + $0x14] ss:$8 sps:$4 sm:$0xff]   ;;  %s3963_s13 = scalar_lea.vmem %s3856_s8, %s3369_s5 }
  0x16   : > { %v3482_v17 = vld [vmem:[%s3870_s24 + $0x4] ss:$8 sps:$4 sm:$0xff]   ;;  %2924 = vmatprep.mubr.msk.bf16.mxu0 %vm379_vm0, %v3479_v15  ;;  %v3480_v28 = vld [vmem:[%s3870_s24] ss:$8 sps:$4 sm:$0xff]   ;;  %v3494_v32 = vld [vmem:[%s3870_s24 + $0x14] ss:$8 sps:$4 sm:$0xff]  }
  0x17   : > { %402 = vmatpush1.bf16.msra.mxu0 %v3459_v7  ;;  %668 = vmatpush1.bf16.msra.mxu1 %v3460_v8  ;;  %v3493_v36 = vld [vmem:[%s3863_s14 + $0x10] ss:$8 sps:$4 sm:$0xff]   ;;  %v3499_v39 = vld [vmem:[%s3863_s14 + $0x24] ss:$8 sps:$4 sm:$0xff]   ;;  %s3370_s9 = sshll.u32 %s1041_s30, 3  ;;  %s1317_s30 = sshra.s32 %s1316_s23, 3 }
  0x18   : > { %403 = vmatprep.subr.bf16.mxu0 %v3736_v1  ;;  %669 = vmatprep.subr.bf16.mxu1 %v3736_v1  ;;  %v3496_v37 = vld [vmem:[%s3870_s24 + $0x10] ss:$8 sps:$4 sm:$0xff]   ;;  %v3504_v40 = vld [vmem:[%s3870_s24 + $0x24] ss:$8 sps:$4 sm:$0xff]   ;;  %v3503_v43 = vld [vmem:[%s3863_s14 + $0x20] ss:$8 sps:$4 sm:$0xff]   ;;  %s3968_s22 = scalar_lea.vmem %s3856_s8, %s3370_s9 }
  0x19   : > { %2977 = vmatprep.mubr.msk.bf16.mxu1 %vm379_vm0, %v3482_v17  ;;  %v3506_v45 = vld [vmem:[%s3870_s24 + $0x20] ss:$8 sps:$4 sm:$0xff]   ;;  %v3509_v47 = vld [vmem:[%s3863_s14 + $0x34] ss:$8 sps:$4 sm:$0xff]   ;;  %v3513_v52 = vld [vmem:[%s3863_s14 + $0x30] ss:$8 sps:$4 sm:$0xff]  }
  0x1a   : > { %v3514_v48 = vld [vmem:[%s3870_s24 + $0x34] ss:$8 sps:$4 sm:$0xff]   ;;  %v3516_v53 = vld [vmem:[%s3870_s24 + $0x30] ss:$8 sps:$4 sm:$0xff]   ;;  %v3519_v55 = vld [vmem:[%s3863_s14 + $0x44] ss:$8 sps:$4 sm:$0xff]  }
  0x1b   : > { %404 = vmatpush1.bf16.msra.mxu0 %v3461_v9  ;;  %670 = vmatpush1.bf16.msra.mxu1 %v3462_v10  ;;  %v3507_v51 = vld [vmem:[%s4596_s1 + $0xf0] sm:$0xff]   ;;  %v3524_v56 = vld [vmem:[%s3870_s24 + $0x44] ss:$8 sps:$4 sm:$0xff]   ;;  %v3511_v57 = vld [vmem:[%s4596_s1 + $0xf8] sm:$0xff]   ;;  %s1593_s5 = sshra.s32 %s1592_s25, 3  ;;  %s3371_s6 = sshll.u32 %s1317_s30, 3 }
  0x1c   : > { %405 = vmatprep.subr.bf16.mxu0 %v3736_v1  ;;  %671 = vmatprep.subr.bf16.mxu1 %v3736_v1  ;;  %v3508_v54 = vld [vmem:[%s4596_s1 + $0x150] sm:$0xff]   ;;  %v3512_v58 = vld [vmem:[%s4596_s1 + $0x158] sm:$0xff]   ;;  %v3517_v59 = vld [vmem:[%s4596_s1 + $0x100] sm:$0xff]   ;;  %s3372_s11 = sshll.u32 %s1593_s5, 3  ;;  %s4066_s12 = scalar_lea.vmem %s3856_s8, %s3371_s6 }
  0x1d   : > { %v3523_v60 = vld [vmem:[%s3863_s14 + $0x40] ss:$8 sps:$4 sm:$0xff]   ;;  %v3533_v63 = vld [vmem:[%s3963_s13 + $0x4] ss:$8 sps:$4 sm:$0xff]   ;;  %v3527_v4 = vld [vmem:[%s4596_s1 + $0x110] sm:$0xff]   ;;  %s4076_s28 = scalar_lea.vmem %s3856_s8, %s3372_s11  ;;  %s1869_s30 = sshra.s32 %s1868_s26, 3 }
  0x1e   : > { %v3526_v61 = vld [vmem:[%s3870_s24 + $0x40] ss:$8 sps:$4 sm:$0xff]   ;;  %v3536_v0 = vld [vmem:[%s3968_s22 + $0x4] ss:$8 sps:$4 sm:$0xff]   ;;  %v3528_v5 = vld [vmem:[%s4596_s1 + $0x170] sm:$0xff]   ;;  %s2144_s24 = sadd.s32 168, %s3825_s10 }
  0x1f   : > { %406 = vmatpush1.bf16.msra.mxu0 %v3463_v11  ;;  %672 = vmatpush1.bf16.msra.mxu1 %v3464_v12  ;;  %v3518_v62 = vld [vmem:[%s4596_s1 + $0x160] sm:$0xff]   ;;  %v3521_v2 = vld [vmem:[%s4596_s1 + $0x108] sm:$0xff]   ;;  %v3529_v6 = vld [vmem:[%s4596_s1 + $0x118] sm:$0xff]   ;;  %s2145_s7 = sshra.s32 %s2144_s24, 3  ;;  %s2420_s6 = sadd.s32 176, %s3825_s10 }
  0x20   : > { %407 = vmatprep.subr.bf16.mxu0 %v3736_v1  ;;  %673 = vmatprep.subr.bf16.mxu1 %v3736_v1  ;;  %v3522_v3 = vld [vmem:[%s4596_s1 + $0x168] sm:$0xff]   ;;  %v3530_v7 = vld [vmem:[%s4596_s1 + $0x178] sm:$0xff]   ;;  %v3537_v10 = vld [vmem:[%s4596_s1 + $0x180] sm:$0xff]   ;;  %s3374_s23 = sshll.u32 %s2145_s7, 3  ;;  %s2421_s11 = sshra.s32 %s2420_s6, 3 }
  0x21   : > { %v3531_v8 = vld [vmem:[%s3963_s13] ss:$8 sps:$4 sm:$0xff]   ;;  %v3541_v12 = vld [vmem:[%s3963_s13 + $0x14] ss:$8 sps:$4 sm:$0xff]   ;;  %s3375_s26 = sshll.u32 %s2421_s11, 3 }
  0x22   : > { %v3534_v9 = vld [vmem:[%s3968_s22] ss:$8 sps:$4 sm:$0xff]   ;;  %v3544_v17 = vld [vmem:[%s4596_s1 + $0x190] sm:$0xff]   ;;  %s4250_s14 = scalar_lea.vmem %s3856_s8, %s3375_s26 }
  0x23   : > { %408 = vmatpush1.bf16.msra.mxu0 %v3465_v13  ;;  %674 = vmatpush1.bf16.msra.mxu1 %v3466_v14  ;;  %v3538_v11 = vld [vmem:[%s4596_s1 + $0x1e0] sm:$0xff]   ;;  %v3551_v13 = vld [vmem:[%s3968_s22 + $0x14] ss:$8 sps:$4 sm:$0xff]   ;;  %v3539_v14 = vld [vmem:[%s4596_s1 + $0x188] sm:$0xff]  }
  0x24   : > { %409 = vmatprep.subr.bf16.mxu0 %v3736_v1  ;;  %675 = vmatprep.subr.bf16.mxu1 %v3736_v1  ;;  %v3540_v15 = vld [vmem:[%s4596_s1 + $0x1e8] sm:$0xff]  }
  0x27   : > { %410 = vmatpush1.bf16.msra.mxu0 %v3467_v16  ;;  %676 = vmatpush1.bf16.msra.mxu1 %v3468_v18  ;;  %v3543_v16 = vld [vmem:[%s3963_s13 + $0x10] ss:$8 sps:$4 sm:$0xff]   ;;  %v3548_v18 = vld [vmem:[%s3963_s13 + $0x24] ss:$8 sps:$4 sm:$0xff]  }
  0x28   : > { %411 = vmatprep.subr.bf16.mxu0 %v3736_v1  ;;  %677 = vmatprep.subr.bf16.mxu1 %v3736_v1 }
  0x2b   : > { %412 = vmatpush1.bf16.msra.mxu0 %v3469_v19  ;;  %678 = vmatpush1.bf16.msra.mxu1 %v3470_v20  ;;  %v3545_v19 = vld [vmem:[%s4596_s1 + $0x1f0] sm:$0xff]  }
  0x2c   : > { %413 = vmatprep.subr.bf16.mxu0 %v3736_v1  ;;  %679 = vmatprep.subr.bf16.mxu1 %v3736_v1  ;;  %v3553_v20 = vld [vmem:[%s3968_s22 + $0x10] ss:$8 sps:$4 sm:$0xff]  }
  0x2f   : > { %414 = vmatpush1.bf16.msra.mxu0 %v3471_v21  ;;  %680 = vmatpush1.bf16.msra.mxu1 %v3472_v22  ;;  %v3561_v21 = vld [vmem:[%s3968_s22 + $0x24] ss:$8 sps:$4 sm:$0xff]   ;;  %v3546_v22 = vld [vmem:[%s4596_s1 + $0x198] sm:$0xff]  }
  0x30   : > { %415 = vmatprep.subr.bf16.mxu0 %v3736_v1  ;;  %681 = vmatprep.subr.bf16.mxu1 %v3736_v1 }
  0x33   : > { %416 = vmatpush1.bf16.msra.mxu0 %v3473_v23  ;;  %682 = vmatpush1.bf16.msra.mxu1 %v3474_v24  ;;  %v3547_v23 = vld [vmem:[%s4596_s1 + $0x1f8] sm:$0xff]   ;;  %v3550_v24 = vld [vmem:[%s3963_s13 + $0x20] ss:$8 sps:$4 sm:$0xff]  }
  0x34   : > { %417 = vmatprep.subr.bf16.mxu0 %v3736_v1  ;;  %683 = vmatprep.subr.bf16.mxu1 %v3736_v1 }
  0x37   : > { %418 = vmatpush1.bf16.msra.mxu0 %v3475_v25  ;;  %684 = vmatpush1.bf16.msra.mxu1 %v3476_v26  ;;  %v3554_v25 = vld [vmem:[%s4596_s1 + $0x1a0] sm:$0xff]   ;;  %v3558_v26 = vld [vmem:[%s3963_s13 + $0x34] ss:$8 sps:$4 sm:$0xff]  }
  0x38   : > { %937 = vmatprep.subr.bf16.mxu0 %v3736_v1  ;;  %1213 = vmatprep.subr.bf16.mxu1 %v3736_v1 }
  0x3a   : > { %428 = vmatmul.mubr.bf16.vlgmr.msra.gmra.mrb[0].mxu0 %v3477_v27  ;;  %694 = vmatmul.mubr.bf16.vlgmr.msra.gmra.mrb[0].mxu1 %v3480_v28  ;;  %v3555_v27 = vld [vmem:[%s4596_s1 + $0x200] sm:$0xff]  }
  0x3b   : > { %938 = vmatpush1.bf16.msra.mxu0 %v3483_v29  ;;  %1214 = vmatpush1.bf16.msra.mxu1 %v3484_v30  ;;  %v3563_v28 = vld [vmem:[%s3968_s22 + $0x20] ss:$8 sps:$4 sm:$0xff]   ;;  %v3571_v29 = vld [vmem:[%s3968_s22 + $0x34] ss:$8 sps:$4 sm:$0xff]  }
  0x3c   : > { %939 = vmatprep.subr.bf16.mxu0 %v3736_v1  ;;  %1215 = vmatprep.subr.bf16.mxu1 %v3736_v1  ;;  %v3556_v30 = vld [vmem:[%s4596_s1 + $0x1a8] sm:$0xff]  }
  0x3d   : > { %2925 = vmatprep.mubr.msk.bf16.mxu0 %vm379_vm0, %v3489_v31  ;;  %2978 = vmatprep.mubr.msk.bf16.mxu1 %vm379_vm0, %v3494_v32  ;;  %v3557_v31 = vld [vmem:[%s4596_s1 + $0x208] sm:$0xff]   ;;  %v3560_v32 = vld [vmem:[%s3963_s13 + $0x30] ss:$8 sps:$4 sm:$0xff]  }
  0x3f   : > { %940 = vmatpush1.bf16.msra.mxu0 %v3485_v33  ;;  %1216 = vmatpush1.bf16.msra.mxu1 %v3486_v34  ;;  %v3564_v33 = vld [vmem:[%s4596_s1 + $0x1b0] sm:$0xff]   ;;  %v3568_v34 = vld [vmem:[%s3963_s13 + $0x44] ss:$8 sps:$4 sm:$0xff]  }
  0x40   : > { %941 = vmatprep.subr.bf16.mxu0 %v3736_v1  ;;  %1217 = vmatprep.subr.bf16.mxu1 %v3736_v1 }
  0x42   : > { %436 = vmatmul.mubr.bf16.gmra.mrb[4].mxu0 %v3493_v36  ;;  %702 = vmatmul.mubr.bf16.gmra.mrb[4].mxu1 %v3496_v37  ;;  %v3573_v36 = vld [vmem:[%s3968_s22 + $0x30] ss:$8 sps:$4 sm:$0xff]   ;;  %v3578_v37 = vld [vmem:[%s3968_s22 + $0x44] ss:$8 sps:$4 sm:$0xff]  }
  0x43   : > { %942 = vmatpush1.bf16.msra.mxu0 %v3487_v35  ;;  %1218 = vmatpush1.bf16.msra.mxu1 %v3488_v38  ;;  %v3565_v35 = vld [vmem:[%s4596_s1 + $0x210] sm:$0xff]   ;;  %v3566_v38 = vld [vmem:[%s4596_s1 + $0x1b8] sm:$0xff]  }
  0x44   : > { %943 = vmatprep.subr.bf16.mxu0 %v3736_v1  ;;  %1219 = vmatprep.subr.bf16.mxu1 %v3736_v1 }
  0x45   : > { %2926 = vmatprep.mubr.msk.bf16.mxu0 %vm379_vm0, %v3499_v39  ;;  %2979 = vmatprep.mubr.msk.bf16.mxu1 %vm379_vm0, %v3504_v40  ;;  %v3567_v39 = vld [vmem:[%s4596_s1 + $0x218] sm:$0xff]   ;;  %v3570_v40 = vld [vmem:[%s3963_s13 + $0x40] ss:$8 sps:$4 sm:$0xff]  }
  0x47   : > { %944 = vmatpush1.bf16.msra.mxu0 %v3491_v41  ;;  %1220 = vmatpush1.bf16.msra.mxu1 %v3492_v42  ;;  %v3574_v41 = vld [vmem:[%s4596_s1 + $0x1c0] sm:$0xff]  }
  0x48   : > { %945 = vmatprep.subr.bf16.mxu0 %v3736_v1  ;;  %1221 = vmatprep.subr.bf16.mxu1 %v3736_v1  ;;  %v3587_v42 = vld [vmem:[%s4066_s12 + $0x4] ss:$8 sps:$4 sm:$0xff]  }
  0x4a   : > { %444 = vmatmul.mubr.bf16.gmra.mrb[8].mxu0 %v3503_v43  ;;  %710 = vmatmul.mubr.bf16.gmra.mrb[8].mxu1 %v3506_v45  ;;  %v3575_v43 = vld [vmem:[%s4596_s1 + $0x220] sm:$0xff]  }
  0x4b   : > { %946 = vmatpush1.bf16.msra.mxu0 %v3497_v44  ;;  %1222 = vmatpush1.bf16.msra.mxu1 %v3498_v46  ;;  %v3580_v44 = vld [vmem:[%s3968_s22 + $0x40] ss:$8 sps:$4 sm:$0xff]   ;;  %v3590_v45 = vld [vmem:[%s4076_s28 + $0x4] ss:$8 sps:$4 sm:$0xff]   ;;  %s3373_s22 = sshll.u32 %s1869_s30, 3  ;;  %s4183_s30 = scalar_lea.vmem %s3856_s8, %s3374_s23 }
  0x4c   : > { %947 = vmatprep.subr.bf16.mxu0 %v3736_v1  ;;  %1223 = vmatprep.subr.bf16.mxu1 %v3736_v1  ;;  %v3576_v46 = vld [vmem:[%s4596_s1 + $0x1c8] sm:$0xff]   ;;  %s4179_s5 = scalar_lea.vmem %s3856_s8, %s3373_s22 }
  0x4d   : > { %2927 = vmatprep.mubr.msk.bf16.mxu0 %vm379_vm0, %v3509_v47  ;;  %2980 = vmatprep.mubr.msk.bf16.mxu1 %vm379_vm0, %v3514_v48  ;;  %v3577_v47 = vld [vmem:[%s4596_s1 + $0x228] sm:$0xff]   ;;  %v3581_v48 = vld [vmem:[%s4596_s1 + $0x1d0] sm:$0xff]  }
  0x4f   : > { %948 = vmatpush1.bf16.msra.mxu0 %v3501_v49  ;;  %1224 = vmatpush1.bf16.msra.mxu1 %v3502_v50  ;;  %v3582_v49 = vld [vmem:[%s4596_s1 + $0x230] sm:$0xff]   ;;  %v3583_v50 = vld [vmem:[%s4596_s1 + $0x1d8] sm:$0xff]  }
  0x50   : > { %949 = vmatprep.subr.bf16.mxu0 %v3736_v1  ;;  %1225 = vmatprep.subr.bf16.mxu1 %v3736_v1 }
  0x52   : > { %452 = vmatmul.mubr.bf16.gmra.mrb[12].mxu0 %v3513_v52  ;;  %718 = vmatmul.mubr.bf16.gmra.mrb[12].mxu1 %v3516_v53  ;;  %v3585_v52 = vld [vmem:[%s4066_s12] ss:$8 sps:$4 sm:$0xff]  }
  0x53   : > { %950 = vmatpush1.bf16.msra.mxu0 %v3507_v51  ;;  %1226 = vmatpush1.bf16.msra.mxu1 %v3508_v54  ;;  %v3584_v51 = vld [vmem:[%s4596_s1 + $0x238] sm:$0xff]   ;;  %v3588_v53 = vld [vmem:[%s4076_s28] ss:$8 sps:$4 sm:$0xff]  }
  0x54   : > { %951 = vmatprep.subr.bf16.mxu0 %v3736_v1  ;;  %1227 = vmatprep.subr.bf16.mxu1 %v3736_v1  ;;  %v3591_v54 = vld [vmem:[%s4596_s1 + $0x240] sm:$0xff]  }
  0x55   : > { %2928 = vmatprep.mubr.msk.bf16.mxu0 %vm379_vm0, %v3519_v55  ;;  %2981 = vmatprep.mubr.msk.bf16.mxu1 %vm379_vm0, %v3524_v56  ;;  %v3592_v55 = vld [vmem:[%s4596_s1 + $0x2a0] sm:$0xff]   ;;  %v3595_v56 = vld [vmem:[%s4066_s12 + $0x14] ss:$8 sps:$4 sm:$0xff]  }
  0x57   : > { %952 = vmatpush1.bf16.msra.mxu0 %v3511_v57  ;;  %1228 = vmatpush1.bf16.msra.mxu1 %v3512_v58  ;;  %v3605_v57 = vld [vmem:[%s4076_s28 + $0x14] ss:$8 sps:$4 sm:$0xff]   ;;  %v3593_v58 = vld [vmem:[%s4596_s1 + $0x248] sm:$0xff]  }
  0x58   : > { %953 = vmatprep.subr.bf16.mxu0 %v3736_v1  ;;  %1229 = vmatprep.subr.bf16.mxu1 %v3736_v1 }
  0x5a   : > { %460 = vmatmul.mubr.bf16.gmra.mrb[16].mxu0 %v3523_v60  ;;  %726 = vmatmul.mubr.bf16.gmra.mrb[16].mxu1 %v3526_v61  ;;  %v3597_v60 = vld [vmem:[%s4066_s12 + $0x10] ss:$8 sps:$4 sm:$0xff]  }
  0x5b   : > { %954 = vmatpush1.bf16.msra.mxu0 %v3517_v59  ;;  %1230 = vmatpush1.bf16.msra.mxu1 %v3518_v62  ;;  %v3594_v59 = vld [vmem:[%s4596_s1 + $0x2a8] sm:$0xff]   ;;  %v3598_v61 = vld [vmem:[%s4596_s1 + $0x250] sm:$0xff]  }
  0x5c   : > { %955 = vmatprep.subr.bf16.mxu0 %v3736_v1  ;;  %1231 = vmatprep.subr.bf16.mxu1 %v3736_v1  ;;  %v3602_v62 = vld [vmem:[%s4066_s12 + $0x24] ss:$8 sps:$4 sm:$0xff]  }
  0x5d   : > { %3030 = vmatprep.mubr.msk.bf16.mxu0 %vm379_vm0, %v3533_v63  ;;  %3083 = vmatprep.mubr.msk.bf16.mxu1 %vm379_vm0, %v3536_v0  ;;  %v3599_v63 = vld [vmem:[%s4596_s1 + $0x2b0] sm:$0xff]  }
  0x5e   : > { %v3607_v0 = vld [vmem:[%s4076_s28 + $0x10] ss:$8 sps:$4 sm:$0xff]  }
  0x5f   : > { %956 = vmatpush1.bf16.msra.mxu0 %v3521_v2  ;;  %1232 = vmatpush1.bf16.msra.mxu1 %v3522_v3  ;;  %v3615_v2 = vld [vmem:[%s4076_s28 + $0x24] ss:$8 sps:$4 sm:$0xff]   ;;  %v3600_v3 = vld [vmem:[%s4596_s1 + $0x258] sm:$0xff]  }
  0x60   : > { %957 = vmatprep.subr.bf16.mxu0 %v3736_v1  ;;  %1233 = vmatprep.subr.bf16.mxu1 %v3736_v1 }
  0x63   : > { %958 = vmatpush1.bf16.msra.mxu0 %v3527_v4  ;;  %1234 = vmatpush1.bf16.msra.mxu1 %v3528_v5  ;;  %v3601_v4 = vld [vmem:[%s4596_s1 + $0x2b8] sm:$0xff]   ;;  %v3604_v5 = vld [vmem:[%s4066_s12 + $0x20] ss:$8 sps:$4 sm:$0xff]  }
  0x64   : > { %959 = vmatprep.subr.bf16.mxu0 %v3736_v1  ;;  %1235 = vmatprep.subr.bf16.mxu1 %v3736_v1 }
  0x67   : > { %960 = vmatpush1.bf16.msra.mxu0 %v3529_v6  ;;  %1236 = vmatpush1.bf16.msra.mxu1 %v3530_v7  ;;  %v3608_v6 = vld [vmem:[%s4596_s1 + $0x260] sm:$0xff]   ;;  %v3612_v7 = vld [vmem:[%s4066_s12 + $0x34] ss:$8 sps:$4 sm:$0xff]  }
  0x68   : > { %1489 = vmatprep.subr.bf16.mxu0 %v3736_v1  ;;  %1765 = vmatprep.subr.bf16.mxu1 %v3736_v1 }
  0x6a   : > { %970 = vmatmul.mubr.bf16.vlgmr.msra.gmra.mrb[20].mxu0 %v3531_v8  ;;  %1246 = vmatmul.mubr.bf16.vlgmr.msra.gmra.mrb[20].mxu1 %v3534_v9  ;;  %v3609_v8 = vld [vmem:[%s4596_s1 + $0x2c0] sm:$0xff]  }
  0x6b   : > { %1490 = vmatpush1.bf16.msra.mxu0 %v3537_v10  ;;  %1766 = vmatpush1.bf16.msra.mxu1 %v3538_v11  ;;  %v3617_v9 = vld [vmem:[%s4076_s28 + $0x20] ss:$8 sps:$4 sm:$0xff]   ;;  %v3625_v10 = vld [vmem:[%s4076_s28 + $0x34] ss:$8 sps:$4 sm:$0xff]  }
  0x6c   : > { %1491 = vmatprep.subr.bf16.mxu0 %v3736_v1  ;;  %1767 = vmatprep.subr.bf16.mxu1 %v3736_v1  ;;  %v3610_v11 = vld [vmem:[%s4596_s1 + $0x268] sm:$0xff]  }
  0x6d   : > { %3031 = vmatprep.mubr.msk.bf16.mxu0 %vm379_vm0, %v3541_v12  ;;  %3084 = vmatprep.mubr.msk.bf16.mxu1 %vm379_vm0, %v3551_v13  ;;  %v3611_v12 = vld [vmem:[%s4596_s1 + $0x2c8] sm:$0xff]   ;;  %v3614_v13 = vld [vmem:[%s4066_s12 + $0x30] ss:$8 sps:$4 sm:$0xff]  }
  0x6f   : > { %1492 = vmatpush1.bf16.msra.mxu0 %v3539_v14  ;;  %1768 = vmatpush1.bf16.msra.mxu1 %v3540_v15  ;;  %v3618_v14 = vld [vmem:[%s4596_s1 + $0x270] sm:$0xff]   ;;  %v3622_v15 = vld [vmem:[%s4066_s12 + $0x44] ss:$8 sps:$4 sm:$0xff]  }
  0x70   : > { %1493 = vmatprep.subr.bf16.mxu0 %v3736_v1  ;;  %1769 = vmatprep.subr.bf16.mxu1 %v3736_v1 }
  0x72   : > { %978 = vmatmul.mubr.bf16.gmra.mrb[24].mxu0 %v3543_v16  ;;  %1254 = vmatmul.mubr.bf16.gmra.mrb[24].mxu1 %v3553_v20  ;;  %v3619_v16 = vld [vmem:[%s4596_s1 + $0x2d0] sm:$0xff]   ;;  %v3621_v20 = vld [vmem:[%s4596_s1 + $0x2d8] sm:$0xff]  }
  0x73   : > { %1494 = vmatpush1.bf16.msra.mxu0 %v3544_v17  ;;  %3032 = vmatprep.mubr.msk.bf16.mxu0 %vm379_vm0, %v3548_v18  ;;  %v3627_v17 = vld [vmem:[%s4076_s28 + $0x30] ss:$8 sps:$4 sm:$0xff]   ;;  %v3632_v18 = vld [vmem:[%s4076_s28 + $0x44] ss:$8 sps:$4 sm:$0xff]  }
  0x74   : > { %1770 = vmatpush1.bf16.msra.mxu1 %v3545_v19  ;;  %1495 = vmatprep.subr.bf16.mxu0 %v3736_v1  ;;  %v3620_v19 = vld [vmem:[%s4596_s1 + $0x278] sm:$0xff]  }
  0x75   : > { %1771 = vmatprep.subr.bf16.mxu1 %v3736_v1  ;;  %3085 = vmatprep.mubr.msk.bf16.mxu1 %vm379_vm0, %v3561_v21  ;;  %v3624_v21 = vld [vmem:[%s4066_s12 + $0x40] ss:$8 sps:$4 sm:$0xff]  }
  0x77   : > { %1496 = vmatpush1.bf16.msra.mxu0 %v3546_v22  ;;  %v3628_v22 = vld [vmem:[%s4596_s1 + $0x280] sm:$0xff]  }
  0x78   : > { %1772 = vmatpush1.bf16.msra.mxu1 %v3547_v23  ;;  %1497 = vmatprep.subr.bf16.mxu0 %v3736_v1  ;;  %v3641_v23 = vld [vmem:[%s4179_s5 + $0x4] ss:$8 sps:$4 sm:$0xff]  }
  0x79   : > { %1773 = vmatprep.subr.bf16.mxu1 %v3736_v1 }
  0x7a   : > { %986 = vmatmul.mubr.bf16.gmra.mrb[28].mxu0 %v3550_v24  ;;  %1262 = vmatmul.mubr.bf16.gmra.mrb[28].mxu1 %v3563_v28  ;;  %v3629_v24 = vld [vmem:[%s4596_s1 + $0x2e0] sm:$0xff]   ;;  %v3631_v28 = vld [vmem:[%s4596_s1 + $0x2e8] sm:$0xff]  }
  0x7b   : > { %1498 = vmatpush1.bf16.msra.mxu0 %v3554_v25  ;;  %3033 = vmatprep.mubr.msk.bf16.mxu0 %vm379_vm0, %v3558_v26  ;;  %v3634_v25 = vld [vmem:[%s4076_s28 + $0x40] ss:$8 sps:$4 sm:$0xff]   ;;  %v3644_v26 = vld [vmem:[%s4183_s30 + $0x4] ss:$8 sps:$4 sm:$0xff]  }
  0x7c   : > { %1774 = vmatpush1.bf16.msra.mxu1 %v3555_v27  ;;  %1499 = vmatprep.subr.bf16.mxu0 %v3736_v1  ;;  %v3630_v27 = vld [vmem:[%s4596_s1 + $0x288] sm:$0xff]  }
  0x7d   : > { %1775 = vmatprep.subr.bf16.mxu1 %v3736_v1  ;;  %3086 = vmatprep.mubr.msk.bf16.mxu1 %vm379_vm0, %v3571_v29  ;;  %v3635_v29 = vld [vmem:[%s4596_s1 + $0x290] sm:$0xff]  }
  0x7f   : > { %1500 = vmatpush1.bf16.msra.mxu0 %v3556_v30  ;;  %v3636_v30 = vld [vmem:[%s4596_s1 + $0x2f0] sm:$0xff]  }
  0x80   : > { %1776 = vmatpush1.bf16.msra.mxu1 %v3557_v31  ;;  %1501 = vmatprep.subr.bf16.mxu0 %v3736_v1  ;;  %v3637_v31 = vld [vmem:[%s4596_s1 + $0x298] sm:$0xff]  }
  0x81   : > { %1777 = vmatprep.subr.bf16.mxu1 %v3736_v1 }
  0x82   : > { %994 = vmatmul.mubr.bf16.gmra.mrb[32].mxu0 %v3560_v32  ;;  %1270 = vmatmul.mubr.bf16.gmra.mrb[32].mxu1 %v3573_v36  ;;  %v3638_v32 = vld [vmem:[%s4596_s1 + $0x2f8] sm:$0xff]  }
  0x83   : > { %1502 = vmatpush1.bf16.msra.mxu0 %v3564_v33  ;;  %3034 = vmatprep.mubr.msk.bf16.mxu0 %vm379_vm0, %v3568_v34  ;;  %v3639_v33 = vld [vmem:[%s4179_s5] ss:$8 sps:$4 sm:$0xff]   ;;  %v3647_v36 = vld [vmem:[%s4179_s5 + $0x14] ss:$8 sps:$4 sm:$0xff]  }
  0x84   : > { %1778 = vmatpush1.bf16.msra.mxu1 %v3565_v35  ;;  %1503 = vmatprep.subr.bf16.mxu0 %v3736_v1  ;;  %v3642_v34 = vld [vmem:[%s4183_s30] ss:$8 sps:$4 sm:$0xff]  }
  0x85   : > { %1779 = vmatprep.subr.bf16.mxu1 %v3736_v1  ;;  %3087 = vmatprep.mubr.msk.bf16.mxu1 %vm379_vm0, %v3578_v37  ;;  %v3645_v35 = vld [vmem:[%s4596_s1 + $0x300] sm:$0xff]   ;;  %v3654_v37 = vld [vmem:[%s4183_s30 + $0x14] ss:$8 sps:$4 sm:$0xff]  }
  0x87   : > { %1504 = vmatpush1.bf16.msra.mxu0 %v3566_v38  ;;  %v3646_v38 = vld [vmem:[%s4596_s1 + $0x308] sm:$0xff]  }
  0x88   : > { %1780 = vmatpush1.bf16.msra.mxu1 %v3567_v39  ;;  %1505 = vmatprep.subr.bf16.mxu0 %v3736_v1  ;;  %v3649_v39 = vld [vmem:[%s4179_s5 + $0x10] ss:$8 sps:$4 sm:$0xff]  }
  0x89   : > { %1781 = vmatprep.subr.bf16.mxu1 %v3736_v1 }
  0x8a   : > { %1002 = vmatmul.mubr.bf16.gmra.mrb[36].mxu0 %v3570_v40  ;;  %1278 = vmatmul.mubr.bf16.gmra.mrb[36].mxu1 %v3580_v44  ;;  %v3650_v40 = vld [vmem:[%s4596_s1 + $0x310] sm:$0xff]   ;;  %v3651_v44 = vld [vmem:[%s4596_s1 + $0x318] sm:$0xff]  }
  0x8b   : > { %1506 = vmatpush1.bf16.msra.mxu0 %v3574_v41  ;;  %3136 = vmatprep.mubr.msk.bf16.mxu0 %vm379_vm0, %v3587_v42  ;;  %v3652_v41 = vld [vmem:[%s4179_s5 + $0x24] ss:$8 sps:$4 sm:$0xff]   ;;  %v3657_v42 = vld [vmem:[%s4183_s30 + $0x10] ss:$8 sps:$4 sm:$0xff]  }
  0x8c   : > { %1782 = vmatpush1.bf16.msra.mxu1 %v3575_v43  ;;  %1507 = vmatprep.subr.bf16.mxu0 %v3736_v1  ;;  %v3662_v43 = vld [vmem:[%s4183_s30 + $0x24] ss:$8 sps:$4 sm:$0xff]  }
  0x8d   : > { %1783 = vmatprep.subr.bf16.mxu1 %v3736_v1  ;;  %3189 = vmatprep.mubr.msk.bf16.mxu1 %vm379_vm0, %v3590_v45  ;;  %v3656_v45 = vld [vmem:[%s4179_s5 + $0x20] ss:$8 sps:$4 sm:$0xff]  }
  0x8f   : > { %1508 = vmatpush1.bf16.msra.mxu0 %v3576_v46  ;;  %v3658_v46 = vld [vmem:[%s4596_s1 + $0x320] sm:$0xff]  }
  0x90   : > { %1784 = vmatpush1.bf16.msra.mxu1 %v3577_v47  ;;  %1509 = vmatprep.subr.bf16.mxu0 %v3736_v1  ;;  %v3660_v47 = vld [vmem:[%s4179_s5 + $0x34] ss:$8 sps:$4 sm:$0xff]  }
  0x91   : > { %1785 = vmatprep.subr.bf16.mxu1 %v3736_v1 }
  0x93   : > { %1510 = vmatpush1.bf16.msra.mxu0 %v3581_v48  ;;  %v3665_v48 = vld [vmem:[%s4183_s30 + $0x20] ss:$8 sps:$4 sm:$0xff]  }
  0x94   : > { %1786 = vmatpush1.bf16.msra.mxu1 %v3582_v49  ;;  %1511 = vmatprep.subr.bf16.mxu0 %v3736_v1  ;;  %v3670_v49 = vld [vmem:[%s4183_s30 + $0x34] ss:$8 sps:$4 sm:$0xff]  }
  0x95   : > { %1787 = vmatprep.subr.bf16.mxu1 %v3736_v1 }
  0x97   : > { %1512 = vmatpush1.bf16.msra.mxu0 %v3583_v50  ;;  %v3659_v50 = vld [vmem:[%s4596_s1 + $0x328] sm:$0xff]  }
  0x98   : > { %1788 = vmatpush1.bf16.msra.mxu1 %v3584_v51  ;;  %2041 = vmatprep.subr.bf16.mxu0 %v3736_v1  ;;  %v3664_v51 = vld [vmem:[%s4179_s5 + $0x30] ss:$8 sps:$4 sm:$0xff]  }
  0x99   : > { %2317 = vmatprep.subr.bf16.mxu1 %v3736_v1 }
  0x9a   : > { %1522 = vmatmul.mubr.bf16.vlgmr.msra.gmra.mrb[40].mxu0 %v3585_v52  ;;  %v3666_v52 = vld [vmem:[%s4596_s1 + $0x330] sm:$0xff]  }
  0x9b   : > { %1798 = vmatmul.mubr.bf16.vlgmr.msra.gmra.mrb[40].mxu1 %v3588_v53  ;;  %2042 = vmatpush1.bf16.msra.mxu0 %v3591_v54  ;;  %v3668_v53 = vld [vmem:[%s4179_s5 + $0x44] ss:$8 sps:$4 sm:$0xff]   ;;  %v3673_v54 = vld [vmem:[%s4183_s30 + $0x30] ss:$8 sps:$4 sm:$0xff]  }
  0x9c   : > { %2318 = vmatpush1.bf16.msra.mxu1 %v3592_v55  ;;  %2043 = vmatprep.subr.bf16.mxu0 %v3736_v1  ;;  %v3676_v55 = vld [vmem:[%s4183_s30 + $0x44] ss:$8 sps:$4 sm:$0xff]  }
  0x9d   : > { %2319 = vmatprep.subr.bf16.mxu1 %v3736_v1  ;;  %3137 = vmatprep.mubr.msk.bf16.mxu0 %vm379_vm0, %v3595_v56  ;;  %v3667_v56 = vld [vmem:[%s4596_s1 + $0x338] sm:$0xff]  }
  0x9e   : > { %3190 = vmatprep.mubr.msk.bf16.mxu1 %vm379_vm0, %v3605_v57  ;;  %v3672_v57 = vld [vmem:[%s4179_s5 + $0x40] ss:$8 sps:$4 sm:$0xff]  }
  0x9f   : > { %2044 = vmatpush1.bf16.msra.mxu0 %v3593_v58  ;;  %v3674_v58 = vld [vmem:[%s4596_s1 + $0x340] sm:$0xff]  }
  0xa0   : > { %2320 = vmatpush1.bf16.msra.mxu1 %v3594_v59  ;;  %2045 = vmatprep.subr.bf16.mxu0 %v3736_v1  ;;  %v3683_v59 = vld [vmem:[%s4250_s14 + $0x4] ss:$8 sps:$4 sm:$0xff]  }
  0xa1   : > { %2321 = vmatprep.subr.bf16.mxu1 %v3736_v1 }
  0xa2   : > { %1530 = vmatmul.mubr.bf16.gmra.mrb[44].mxu0 %v3597_v60  ;;  %v3678_v60 = vld [vmem:[%s4183_s30 + $0x40] ss:$8 sps:$4 sm:$0xff]  }
  0xa3   : > { %2046 = vmatpush1.bf16.msra.mxu0 %v3598_v61  ;;  %3138 = vmatprep.mubr.msk.bf16.mxu0 %vm379_vm0, %v3602_v62  ;;  %v3686_v61 = vld [vmem:[%s4250_s14 + $0x34] ss:$8 sps:$4 sm:$0xff]   ;;  %v3675_v62 = vld [vmem:[%s4596_s1 + $0x348] sm:$0xff]  }
  0xa4   : > { %2322 = vmatpush1.bf16.msra.mxu1 %v3599_v63  ;;  %2047 = vmatprep.subr.bf16.mxu0 %v3736_v1  ;;  %v3679_v63 = vld [vmem:[%s4596_s1 + $0x350] sm:$0xff]  }
  0xa5   : > { %2323 = vmatprep.subr.bf16.mxu1 %v3736_v1  ;;  %1806 = vmatmul.mubr.bf16.gmra.mrb[44].mxu1 %v3607_v0  ;;  %v3680_v0 = vld [vmem:[%s4596_s1 + $0x358] sm:$0xff]  }
  0xa6   : > { %3191 = vmatprep.mubr.msk.bf16.mxu1 %vm379_vm0, %v3615_v2  ;;  %v3681_v2 = vld [vmem:[%s4250_s14] ss:$8 sps:$4 sm:$0xff]  }
  0xa7   : > { %2048 = vmatpush1.bf16.msra.mxu0 %v3600_v3  ;;  %v3684_v3 = vld [vmem:[%s4250_s14 + $0x30] ss:$8 sps:$4 sm:$0xff]  }
  0xa8   : > { %2324 = vmatpush1.bf16.msra.mxu1 %v3601_v4  ;;  %2049 = vmatprep.subr.bf16.mxu0 %v3736_v1  ;;  %v3687_v4 = vld [vmem:[%s4250_s14 + $0x14] ss:$8 sps:$4 sm:$0xff]  }
  0xa9   : > { %2325 = vmatprep.subr.bf16.mxu1 %v3736_v1 }
  0xaa   : > { %1538 = vmatmul.mubr.bf16.gmra.mrb[48].mxu0 %v3604_v5  ;;  %v3689_v5 = vld [vmem:[%s4250_s14 + $0x44] ss:$8 sps:$4 sm:$0xff]  }
  0xab   : > { %2050 = vmatpush1.bf16.msra.mxu0 %v3608_v6  ;;  %3139 = vmatprep.mubr.msk.bf16.mxu0 %vm379_vm0, %v3612_v7  ;;  %v3691_v6 = vld [vmem:[%s4250_s14 + $0x10] ss:$8 sps:$4 sm:$0xff]   ;;  %v3692_v7 = vld [vmem:[%s4250_s14 + $0x40] ss:$8 sps:$4 sm:$0xff]  }
  0xac   : > { %2326 = vmatpush1.bf16.msra.mxu1 %v3609_v8  ;;  %2051 = vmatprep.subr.bf16.mxu0 %v3736_v1  ;;  %v3693_v8 = vld [vmem:[%s4250_s14 + $0x24] ss:$8 sps:$4 sm:$0xff]  }
  0xad   : > { %2327 = vmatprep.subr.bf16.mxu1 %v3736_v1  ;;  %1814 = vmatmul.mubr.bf16.gmra.mrb[48].mxu1 %v3617_v9 }
  0xae   : > { %3192 = vmatprep.mubr.msk.bf16.mxu1 %vm379_vm0, %v3625_v10 }
  0xaf   : > { %2052 = vmatpush1.bf16.msra.mxu0 %v3610_v11 }
  0xb0   : > { %2328 = vmatpush1.bf16.msra.mxu1 %v3611_v12  ;;  %2053 = vmatprep.subr.bf16.mxu0 %v3736_v1 }
  0xb1   : > { %2329 = vmatprep.subr.bf16.mxu1 %v3736_v1 }
  0xb2   : > { %1546 = vmatmul.mubr.bf16.gmra.mrb[52].mxu0 %v3614_v13 }
  0xb3   : > { %2054 = vmatpush1.bf16.msra.mxu0 %v3618_v14  ;;  %3140 = vmatprep.mubr.msk.bf16.mxu0 %vm379_vm0, %v3622_v15 }
  0xb4   : > { %2330 = vmatpush1.bf16.msra.mxu1 %v3619_v16  ;;  %2055 = vmatprep.subr.bf16.mxu0 %v3736_v1 }
  0xb5   : > { %2331 = vmatprep.subr.bf16.mxu1 %v3736_v1  ;;  %1822 = vmatmul.mubr.bf16.gmra.mrb[52].mxu1 %v3627_v17 }
  0xb6   : > { %3193 = vmatprep.mubr.msk.bf16.mxu1 %vm379_vm0, %v3632_v18 }
  0xb7   : > { %2056 = vmatpush1.bf16.msra.mxu0 %v3620_v19 }
  0xb8   : > { %2332 = vmatpush1.bf16.msra.mxu1 %v3621_v20  ;;  %2057 = vmatprep.subr.bf16.mxu0 %v3736_v1 }
  0xb9   : > { %2333 = vmatprep.subr.bf16.mxu1 %v3736_v1 }
  0xba   : > { %1554 = vmatmul.mubr.bf16.gmra.mrb[56].mxu0 %v3624_v21 }
  0xbb   : > { %2058 = vmatpush1.bf16.msra.mxu0 %v3628_v22  ;;  %3242 = vmatprep.mubr.msk.bf16.mxu0 %vm379_vm0, %v3641_v23 }
  0xbc   : > { %2334 = vmatpush1.bf16.msra.mxu1 %v3629_v24  ;;  %2059 = vmatprep.subr.bf16.mxu0 %v3736_v1 }
  0xbd   : > { %2335 = vmatprep.subr.bf16.mxu1 %v3736_v1  ;;  %1830 = vmatmul.mubr.bf16.gmra.mrb[56].mxu1 %v3634_v25 }
  0xbe   : > { %3295 = vmatprep.mubr.msk.bf16.mxu1 %vm379_vm0, %v3644_v26 }
  0xbf   : > { %2060 = vmatpush1.bf16.msra.mxu0 %v3630_v27 }
  0xc0   : > { %2336 = vmatpush1.bf16.msra.mxu1 %v3631_v28  ;;  %2061 = vmatprep.subr.bf16.mxu0 %v3736_v1 }
  0xc1   : > { %2337 = vmatprep.subr.bf16.mxu1 %v3736_v1 }
  0xc3   : > { %2062 = vmatpush1.bf16.msra.mxu0 %v3635_v29 }
  0xc4   : > { %2338 = vmatpush1.bf16.msra.mxu1 %v3636_v30  ;;  %2063 = vmatprep.subr.bf16.mxu0 %v3736_v1 }
  0xc5   : > { %2339 = vmatprep.subr.bf16.mxu1 %v3736_v1 }
  0xc7   : > { %2064 = vmatpush1.bf16.msra.mxu0 %v3637_v31 }
  0xc8   : > { %2340 = vmatpush1.bf16.msra.mxu1 %v3638_v32  ;;  %2593 = vmatprep.subr.bf16.mxu0 %v3736_v1 }
  0xc9   : > { %3386 = vmatprep.subr.bf16.mxu1 %v3736_v1 }
  0xca   : > { %2074 = vmatmul.mubr.bf16.vlgmr.msra.gmra.mrb[60].mxu0 %v3639_v33 }
  0xcb   : > { %2350 = vmatmul.mubr.bf16.vlgmr.msra.gmra.mrb[60].mxu1 %v3642_v34  ;;  %2594 = vmatpush1.bf16.msra.mxu0 %v3645_v35 }
  0xcc   : > { %3398 = vmatpush1.bf16.msra.mxu1 %v3645_v35  ;;  %2595 = vmatprep.subr.bf16.mxu0 %v3736_v1 }
  0xcd   : > { %3387 = vmatprep.subr.bf16.mxu1 %v3736_v1  ;;  %3243 = vmatprep.mubr.msk.bf16.mxu0 %vm379_vm0, %v3647_v36 }
  0xce   : > { %3296 = vmatprep.mubr.msk.bf16.mxu1 %vm379_vm0, %v3654_v37 }
  0xcf   : > { %2596 = vmatpush1.bf16.msra.mxu0 %v3646_v38 }
  0xd0   : > { %3399 = vmatpush1.bf16.msra.mxu1 %v3646_v38  ;;  %2597 = vmatprep.subr.bf16.mxu0 %v3736_v1 }
  0xd1   : > { %3388 = vmatprep.subr.bf16.mxu1 %v3736_v1 }
  0xd2   : > { %2082 = vmatmul.mubr.bf16.gmra.mrb[64].mxu0 %v3649_v39 }
  0xd3   : > { %2598 = vmatpush1.bf16.msra.mxu0 %v3650_v40  ;;  %3244 = vmatprep.mubr.msk.bf16.mxu0 %vm379_vm0, %v3652_v41 }
  0xd4   : > { %3400 = vmatpush1.bf16.msra.mxu1 %v3650_v40  ;;  %2599 = vmatprep.subr.bf16.mxu0 %v3736_v1 }
  0xd5   : > { %3389 = vmatprep.subr.bf16.mxu1 %v3736_v1  ;;  %2358 = vmatmul.mubr.bf16.gmra.mrb[64].mxu1 %v3657_v42 }
  0xd6   : > { %3297 = vmatprep.mubr.msk.bf16.mxu1 %vm379_vm0, %v3662_v43 }
  0xd7   : > { %2600 = vmatpush1.bf16.msra.mxu0 %v3651_v44 }
  0xd8   : > { %3401 = vmatpush1.bf16.msra.mxu1 %v3651_v44  ;;  %2601 = vmatprep.subr.bf16.mxu0 %v3736_v1 }
  0xd9   : > { %3390 = vmatprep.subr.bf16.mxu1 %v3736_v1 }
  0xda   : > { %2090 = vmatmul.mubr.bf16.gmra.mrb[68].mxu0 %v3656_v45 }
  0xdb   : > { %2602 = vmatpush1.bf16.msra.mxu0 %v3658_v46  ;;  %3245 = vmatprep.mubr.msk.bf16.mxu0 %vm379_vm0, %v3660_v47 }
  0xdc   : > { %3402 = vmatpush1.bf16.msra.mxu1 %v3658_v46  ;;  %2603 = vmatprep.subr.bf16.mxu0 %v3736_v1 }
  0xdd   : > { %3391 = vmatprep.subr.bf16.mxu1 %v3736_v1  ;;  %2366 = vmatmul.mubr.bf16.gmra.mrb[68].mxu1 %v3665_v48 }
  0xde   : > { %3298 = vmatprep.mubr.msk.bf16.mxu1 %vm379_vm0, %v3670_v49 }
  0xdf   : > { %2604 = vmatpush1.bf16.msra.mxu0 %v3659_v50 }
  0xe0   : > { %3403 = vmatpush1.bf16.msra.mxu1 %v3659_v50  ;;  %2605 = vmatprep.subr.bf16.mxu0 %v3736_v1 }
  0xe1   : > { %3392 = vmatprep.subr.bf16.mxu1 %v3736_v1 }
  0xe2   : > { %2098 = vmatmul.mubr.bf16.gmra.mrb[72].mxu0 %v3664_v51 }
  0xe3   : > { %2606 = vmatpush1.bf16.msra.mxu0 %v3666_v52  ;;  %3246 = vmatprep.mubr.msk.bf16.mxu0 %vm379_vm0, %v3668_v53 }
  0xe4   : > { %3404 = vmatpush1.bf16.msra.mxu1 %v3666_v52  ;;  %2607 = vmatprep.subr.bf16.mxu0 %v3736_v1 }
  0xe5   : > { %3393 = vmatprep.subr.bf16.mxu1 %v3736_v1  ;;  %2374 = vmatmul.mubr.bf16.gmra.mrb[72].mxu1 %v3673_v54 }
  0xe6   : > { %3299 = vmatprep.mubr.msk.bf16.mxu1 %vm379_vm0, %v3676_v55 }
  0xe7   : > { %2608 = vmatpush1.bf16.msra.mxu0 %v3667_v56 }
  0xe8   : > { %3405 = vmatpush1.bf16.msra.mxu1 %v3667_v56  ;;  %2609 = vmatprep.subr.bf16.mxu0 %v3736_v1 }
  0xe9   : > { %3394 = vmatprep.subr.bf16.mxu1 %v3736_v1 }
  0xea   : > { %2106 = vmatmul.mubr.bf16.gmra.mrb[76].mxu0 %v3672_v57 }
  0xeb   : > { %2610 = vmatpush1.bf16.msra.mxu0 %v3674_v58  ;;  %3348 = vmatprep.mubr.msk.bf16.mxu0 %vm379_vm0, %v3683_v59 }
  0xec   : > { %3406 = vmatpush1.bf16.msra.mxu1 %v3674_v58  ;;  %2611 = vmatprep.subr.bf16.mxu0 %v3736_v1 }
  0xed   : > { %3395 = vmatprep.subr.bf16.mxu1 %v3736_v1  ;;  %2382 = vmatmul.mubr.bf16.gmra.mrb[76].mxu1 %v3678_v60 }
  0xee   : > { %3351 = vmatprep.mubr.msk.bf16.mxu1 %vm379_vm0, %v3686_v61 }
  0xef   : > { %2612 = vmatpush1.bf16.msra.mxu0 %v3675_v62 }
  0xf0   : > { %3407 = vmatpush1.bf16.msra.mxu1 %v3675_v62  ;;  %2613 = vmatprep.subr.bf16.mxu0 %v3736_v1 }
  0xf1   : > { %3396 = vmatprep.subr.bf16.mxu1 %v3736_v1 }
  0xf3   : > { %2614 = vmatpush1.bf16.msra.mxu0 %v3679_v63 }
  0xf4   : > { %3408 = vmatpush1.bf16.msra.mxu1 %v3679_v63  ;;  %2615 = vmatprep.subr.bf16.mxu0 %v3736_v1 }
  0xf5   : > { %3397 = vmatprep.subr.bf16.mxu1 %v3736_v1  ;;  %v3695_v1 = vld [vmem:[%s4250_s14 + $0x20] ss:$8 sps:$4 sm:$0xff]   ;;  %s211_s14 = smul.u32 10, %s3718_s15 }
  0xf6   : > { %s3411_s15 = smul.u32 40, %s4612_s16 }
  0xf7   : > { %2616 = vmatpush1.bf16.msra.mxu0 %v3680_v0  ;;  %p4505_p6 = scmp.lt.s32.totalorder %s211_s14, 39 }
  0xf8   : > { %3409 = vmatpush1.bf16.msra.mxu1 %v3680_v0 }
  0xf9   : > { %s4614_s14 = smov (!%p4505_p6, %s211_s14), 39 }
  0xfa   : > { %2626 = vmatmul.mubr.bf16.vlgmr.msra.gmra.mrb[80].mxu0 %v3681_v2  ;;  %s4521_s9 = sadd.s32 %s3411_s15, %s4614_s14 }
  0xfb   : > { %2650 = vmatmul.mubr.bf16.vlgmr.msra.gmra.mrb[80].mxu1 %v3684_v3  ;;  %3349 = vmatprep.mubr.msk.bf16.mxu0 %vm379_vm0, %v3687_v4  ;;  %s2899_s16 = sshll.u32 %s4521_s9, 2 }
  0xfc   : > { %3352 = vmatprep.mubr.msk.bf16.mxu1 %vm379_vm0, %v3689_v5  ;;  %s4543_s25 = scalar_lea.vmem %s4599_s4, %s2899_s16 }
 0x102   : > { %2634 = vmatmul.mubr.bf16.gmra.mrb[84].mxu0 %v3691_v6 }
 0x103   : > { %2658 = vmatmul.mubr.bf16.gmra.mrb[84].mxu1 %v3692_v7  ;;  %3350 = vmatprep.mubr.msk.bf16.mxu0 %vm379_vm0, %v3693_v8 }
 0x10a   : > { %2642 = vmatmul.mubr.bf16.gmra.mrb[88].mxu0 %v3695_v1 }
 0x10d   : > { %v429_v9 = vpop.f32.mrb[0].mxu0  ;;  %v695_v11 = vpop.f32.mrb[0].mxu1 }
 0x10e   : > { %468 = vst.msk [vmem:[#allocation2] sm:$0xff] %vm379_vm0, %v429_v9  ;;  %v431_v10 = vpop.f32.mrb[1].mxu0  ;;  %v697_v13 = vpop.f32.mrb[1].mxu1 }
 0x10f   : > { %v432_v12 = vpop.f32.mrb[2].mxu0  ;;  %v698_v15 = vpop.f32.mrb[2].mxu1 }
 0x110   : > { %469 = vst.msk [vmem:[#allocation2 + $0x8] sm:$0xff] %vm379_vm0, %v432_v12  ;;  %v434_v14 = vpop.f32.mrb[3].mxu0  ;;  %v700_v16 = vpop.f32.mrb[3].mxu1 }
 0x115   : > { %v478_v17 = vld [vmem:[#allocation2] sm:$0xff]  ;;  %v437_v18 = vpop.f32.mrb[4].mxu0  ;;  %v703_v21 = vpop.f32.mrb[4].mxu1 }
 0x116   : > { %v734_v19 = vadd.f32 %v695_v11, %v478_v17  ;;  %470 = vst.msk [vmem:[#allocation2 + $0x10] sm:$0xff] %vm379_vm0, %v437_v18  ;;  %v439_v20 = vpop.f32.mrb[5].mxu0  ;;  %v705_v24 = vpop.f32.mrb[5].mxu1 }
 0x117   : > { %v479_v22 = vld [vmem:[#allocation2 + $0x8] sm:$0xff]  ;;  %v440_v23 = vpop.f32.mrb[6].mxu0  ;;  %v706_v27 = vpop.f32.mrb[6].mxu1 }
 0x118   : > { %744 = vst.msk [vmem:[#allocation2] sm:$0xff] %vm379_vm0, %v734_v19  ;;  %v735_v25 = vadd.f32 %v698_v15, %v479_v22  ;;  %471 = vst.msk [vmem:[#allocation2 + $0x18] sm:$0xff] %vm379_vm0, %v440_v23  ;;  %v442_v26 = vpop.f32.mrb[7].mxu0  ;;  %v708_v28 = vpop.f32.mrb[7].mxu1 }
 0x11a   : > { %745 = vst.msk [vmem:[#allocation2 + $0x8] sm:$0xff] %vm379_vm0, %v735_v25 }
 0x11d   : > { %v445_v29 = vpop.f32.mrb[8].mxu0  ;;  %v480_v30 = vld [vmem:[#allocation2 + $0x10] sm:$0xff]  ;;  %v711_v33 = vpop.f32.mrb[8].mxu1 }
 0x11e   : > { %472 = vst.msk [vmem:[#allocation2 + $0x20] sm:$0xff] %vm379_vm0, %v445_v29  ;;  %v736_v31 = vadd.f32 %v703_v21, %v480_v30  ;;  %v447_v32 = vpop.f32.mrb[9].mxu0  ;;  %v713_v36 = vpop.f32.mrb[9].mxu1 }
 0x11f   : > { %v448_v34 = vpop.f32.mrb[10].mxu0  ;;  %v481_v35 = vld [vmem:[#allocation2 + $0x18] sm:$0xff]  ;;  %v714_v39 = vpop.f32.mrb[10].mxu1  ;;  %v754_v6 = vld [vmem:[#allocation2] sm:$0xff] }
 0x120   : > { %746 = vst.msk [vmem:[#allocation2 + $0x10] sm:$0xff] %vm379_vm0, %v736_v31  ;;  %473 = vst.msk [vmem:[#allocation2 + $0x28] sm:$0xff] %vm379_vm0, %v448_v34  ;;  %v737_v37 = vadd.f32 %v706_v27, %v481_v35  ;;  %v450_v38 = vpop.f32.mrb[11].mxu0  ;;  %v716_v40 = vpop.f32.mrb[11].mxu1 }
 0x121   : > { %v755_v10 = vld [vmem:[#allocation2 + $0x8] sm:$0xff] }
 0x122   : > { %747 = vst.msk [vmem:[#allocation2 + $0x18] sm:$0xff] %vm379_vm0, %v737_v37 }
 0x125   : > { %v453_v41 = vpop.f32.mrb[12].mxu0  ;;  %v482_v42 = vld [vmem:[#allocation2 + $0x20] sm:$0xff]  ;;  %v719_v45 = vpop.f32.mrb[12].mxu1 }
 0x126   : > { %474 = vst.msk [vmem:[#allocation2 + $0x30] sm:$0xff] %vm379_vm0, %v453_v41  ;;  %v738_v43 = vadd.f32 %v711_v33, %v482_v42  ;;  %v455_v44 = vpop.f32.mrb[13].mxu0  ;;  %v721_v48 = vpop.f32.mrb[13].mxu1 }
 0x127   : > { %v456_v46 = vpop.f32.mrb[14].mxu0  ;;  %v483_v47 = vld [vmem:[#allocation2 + $0x28] sm:$0xff]  ;;  %v722_v51 = vpop.f32.mrb[14].mxu1  ;;  %v756_v17 = vld [vmem:[#allocation2 + $0x10] sm:$0xff] }
 0x128   : > { %748 = vst.msk [vmem:[#allocation2 + $0x20] sm:$0xff] %vm379_vm0, %v738_v43  ;;  %475 = vst.msk [vmem:[#allocation2 + $0x38] sm:$0xff] %vm379_vm0, %v456_v46  ;;  %v739_v49 = vadd.f32 %v714_v39, %v483_v47  ;;  %v458_v50 = vpop.f32.mrb[15].mxu0  ;;  %v724_v52 = vpop.f32.mrb[15].mxu1 }
 0x129   : > { %v757_v22 = vld [vmem:[#allocation2 + $0x18] sm:$0xff] }
 0x12a   : > { %749 = vst.msk [vmem:[#allocation2 + $0x28] sm:$0xff] %vm379_vm0, %v739_v49 }
 0x12d   : > { %v461_v53 = vpop.f32.mrb[16].mxu0  ;;  %v484_v54 = vld [vmem:[#allocation2 + $0x30] sm:$0xff]  ;;  %v727_v57 = vpop.f32.mrb[16].mxu1 }
 0x12e   : > { %476 = vst.msk [vmem:[#allocation2 + $0x40] sm:$0xff] %vm379_vm0, %v461_v53  ;;  %v740_v55 = vadd.f32 %v719_v45, %v484_v54  ;;  %v463_v56 = vpop.f32.mrb[17].mxu0  ;;  %v729_v60 = vpop.f32.mrb[17].mxu1 }
 0x12f   : > { %v464_v58 = vpop.f32.mrb[18].mxu0  ;;  %v485_v59 = vld [vmem:[#allocation2 + $0x38] sm:$0xff]  ;;  %v730_v63 = vpop.f32.mrb[18].mxu1  ;;  %v758_v33 = vld [vmem:[#allocation2 + $0x20] sm:$0xff] }
 0x130   : > { %750 = vst.msk [vmem:[#allocation2 + $0x30] sm:$0xff] %vm379_vm0, %v740_v55  ;;  %477 = vst.msk [vmem:[#allocation2 + $0x48] sm:$0xff] %vm379_vm0, %v464_v58  ;;  %v741_v61 = vadd.f32 %v722_v51, %v485_v59  ;;  %v466_v62 = vpop.f32.mrb[19].mxu0  ;;  %v732_v0 = vpop.f32.mrb[19].mxu1 }
 0x131   : > { %v759_v37 = vld [vmem:[#allocation2 + $0x28] sm:$0xff] }
 0x132   : > { %751 = vst.msk [vmem:[#allocation2 + $0x38] sm:$0xff] %vm379_vm0, %v741_v61 }
 0x135   : > { %v486_v2 = vld [vmem:[#allocation2 + $0x40] sm:$0xff] }
 0x136   : > { %v742_v3 = vadd.f32 %v727_v57, %v486_v2 }
 0x137   : > { %v487_v4 = vld [vmem:[#allocation2 + $0x48] sm:$0xff]  ;;  %v760_v49 = vld [vmem:[#allocation2 + $0x30] sm:$0xff] }
 0x138   : > { %752 = vst.msk [vmem:[#allocation2 + $0x40] sm:$0xff] %vm379_vm0, %v742_v3  ;;  %v743_v5 = vadd.f32 %v730_v63, %v487_v4 }
 0x139   : > { %v761_v53 = vld [vmem:[#allocation2 + $0x38] sm:$0xff] }
 0x13a   : > { %753 = vst.msk [vmem:[#allocation2 + $0x48] sm:$0xff] %vm379_vm0, %v743_v5 }
 0x13d   : > { %v971_v7 = vpop.f32.mrb[20].mxu0  ;;  %v1247_v9 = vpop.f32.mrb[20].mxu1 }
 0x13e   : > { %v1010_v8 = vadd.f32 %v971_v7, %v754_v6  ;;  %v973_v1 = vpop.f32.mrb[21].mxu0  ;;  %v1249_v12 = vpop.f32.mrb[21].mxu1 }
 0x13f   : > { %v974_v11 = vpop.f32.mrb[22].mxu0  ;;  %v1250_v15 = vpop.f32.mrb[22].mxu1  ;;  %v762_v2 = vld [vmem:[#allocation2 + $0x40] sm:$0xff] }
 0x140   : > { %1020 = vst.msk [vmem:[#allocation2] sm:$0xff] %vm379_vm0, %v1010_v8  ;;  %v1011_v13 = vadd.f32 %v974_v11, %v755_v10  ;;  %v976_v14 = vpop.f32.mrb[23].mxu0  ;;  %v1252_v16 = vpop.f32.mrb[23].mxu1 }
 0x141   : > { %v763_v6 = vld [vmem:[#allocation2 + $0x48] sm:$0xff] }
 0x142   : > { %1021 = vst.msk [vmem:[#allocation2 + $0x8] sm:$0xff] %vm379_vm0, %v1011_v13 }
 0x145   : > { %v979_v18 = vpop.f32.mrb[24].mxu0  ;;  %v1255_v27 = vpop.f32.mrb[24].mxu1 }
 0x146   : > { %v1012_v19 = vadd.f32 %v979_v18, %v756_v17  ;;  %v981_v20 = vpop.f32.mrb[25].mxu0  ;;  %v1257_v29 = vpop.f32.mrb[25].mxu1 }
 0x147   : > { %v1030_v21 = vld [vmem:[#allocation2] sm:$0xff]  ;;  %v982_v23 = vpop.f32.mrb[26].mxu0  ;;  %v1258_v31 = vpop.f32.mrb[26].mxu1 }
 0x148   : > { %v1286_v24 = vadd.f32 %v1247_v9, %v1030_v21  ;;  %1022 = vst.msk [vmem:[#allocation2 + $0x10] sm:$0xff] %vm379_vm0, %v1012_v19  ;;  %v1013_v25 = vadd.f32 %v982_v23, %v757_v22  ;;  %v984_v26 = vpop.f32.mrb[27].mxu0  ;;  %v1260_v32 = vpop.f32.mrb[27].mxu1 }
 0x149   : > { %v1031_v28 = vld [vmem:[#allocation2 + $0x8] sm:$0xff] }
 0x14a   : > { %1296 = vst.msk [vmem:[#allocation2] sm:$0xff] %vm379_vm0, %v1286_v24  ;;  %v1287_v30 = vadd.f32 %v1250_v15, %v1031_v28  ;;  %1023 = vst.msk [vmem:[#allocation2 + $0x18] sm:$0xff] %vm379_vm0, %v1013_v25 }
 0x14c   : > { %1297 = vst.msk [vmem:[#allocation2 + $0x8] sm:$0xff] %vm379_vm0, %v1287_v30 }
 0x14d   : > { %v987_v34 = vpop.f32.mrb[28].mxu0  ;;  %v1263_v43 = vpop.f32.mrb[28].mxu1 }
 0x14e   : > { %v1014_v35 = vadd.f32 %v987_v34, %v758_v33  ;;  %v989_v36 = vpop.f32.mrb[29].mxu0  ;;  %v1265_v45 = vpop.f32.mrb[29].mxu1 }
 0x14f   : > { %v990_v38 = vpop.f32.mrb[30].mxu0  ;;  %v1032_v39 = vld [vmem:[#allocation2 + $0x10] sm:$0xff]  ;;  %v1266_v47 = vpop.f32.mrb[30].mxu1 }
 0x150   : > { %1024 = vst.msk [vmem:[#allocation2 + $0x20] sm:$0xff] %vm379_vm0, %v1014_v35  ;;  %v1015_v40 = vadd.f32 %v990_v38, %v759_v37  ;;  %v1288_v41 = vadd.f32 %v1255_v27, %v1032_v39  ;;  %v992_v42 = vpop.f32.mrb[31].mxu0  ;;  %v1268_v48 = vpop.f32.mrb[31].mxu1 }
 0x151   : > { %v1033_v44 = vld [vmem:[#allocation2 + $0x18] sm:$0xff]  ;;  %v1306_v21 = vld [vmem:[#allocation2] sm:$0xff] }
 0x152   : > { %1025 = vst.msk [vmem:[#allocation2 + $0x28] sm:$0xff] %vm379_vm0, %v1015_v40  ;;  %1298 = vst.msk [vmem:[#allocation2 + $0x10] sm:$0xff] %vm379_vm0, %v1288_v41  ;;  %v1289_v46 = vadd.f32 %v1258_v31, %v1033_v44 }
 0x153   : > { %v1307_v26 = vld [vmem:[#allocation2 + $0x8] sm:$0xff] }
 0x154   : > { %1299 = vst.msk [vmem:[#allocation2 + $0x18] sm:$0xff] %vm379_vm0, %v1289_v46 }
 0x155   : > { %v995_v50 = vpop.f32.mrb[32].mxu0  ;;  %v1271_v59 = vpop.f32.mrb[32].mxu1 }
 0x156   : > { %v1016_v51 = vadd.f32 %v995_v50, %v760_v49  ;;  %v997_v52 = vpop.f32.mrb[33].mxu0  ;;  %v1273_v61 = vpop.f32.mrb[33].mxu1 }
 0x157   : > { %v998_v54 = vpop.f32.mrb[34].mxu0  ;;  %v1034_v55 = vld [vmem:[#allocation2 + $0x20] sm:$0xff]  ;;  %v1274_v63 = vpop.f32.mrb[34].mxu1 }
 0x158   : > { %1026 = vst.msk [vmem:[#allocation2 + $0x30] sm:$0xff] %vm379_vm0, %v1016_v51  ;;  %v1017_v56 = vadd.f32 %v998_v54, %v761_v53  ;;  %v1290_v57 = vadd.f32 %v1263_v43, %v1034_v55  ;;  %v1000_v58 = vpop.f32.mrb[35].mxu0  ;;  %v1276_v0 = vpop.f32.mrb[35].mxu1 }
 0x159   : > { %v1035_v60 = vld [vmem:[#allocation2 + $0x28] sm:$0xff]  ;;  %v1308_v33 = vld [vmem:[#allocation2 + $0x10] sm:$0xff] }
 0x15a   : > { %1027 = vst.msk [vmem:[#allocation2 + $0x38] sm:$0xff] %vm379_vm0, %v1017_v56  ;;  %1300 = vst.msk [vmem:[#allocation2 + $0x20] sm:$0xff] %vm379_vm0, %v1290_v57  ;;  %v1291_v62 = vadd.f32 %v1266_v47, %v1035_v60 }
 0x15b   : > { %v1309_v38 = vld [vmem:[#allocation2 + $0x18] sm:$0xff] }
 0x15c   : > { %1301 = vst.msk [vmem:[#allocation2 + $0x28] sm:$0xff] %vm379_vm0, %v1291_v62 }
 0x15d   : > { %v1003_v3 = vpop.f32.mrb[36].mxu0  ;;  %v1279_v11 = vpop.f32.mrb[36].mxu1 }
 0x15e   : > { %v1018_v4 = vadd.f32 %v1003_v3, %v762_v2  ;;  %v1005_v5 = vpop.f32.mrb[37].mxu0  ;;  %v1281_v13 = vpop.f32.mrb[37].mxu1 }
 0x15f   : > { %v1006_v7 = vpop.f32.mrb[38].mxu0  ;;  %v1036_v8 = vld [vmem:[#allocation2 + $0x30] sm:$0xff]  ;;  %v1282_v15 = vpop.f32.mrb[38].mxu1 }
 0x160   : > { %1028 = vst.msk [vmem:[#allocation2 + $0x40] sm:$0xff] %vm379_vm0, %v1018_v4  ;;  %v1019_v1 = vadd.f32 %v1006_v7, %v763_v6  ;;  %v1292_v9 = vadd.f32 %v1271_v59, %v1036_v8  ;;  %v1008_v10 = vpop.f32.mrb[39].mxu0  ;;  %v1284_v16 = vpop.f32.mrb[39].mxu1 }
 0x161   : > { %v1037_v12 = vld [vmem:[#allocation2 + $0x38] sm:$0xff]  ;;  %v1310_v49 = vld [vmem:[#allocation2 + $0x20] sm:$0xff] }
 0x162   : > { %1029 = vst.msk [vmem:[#allocation2 + $0x48] sm:$0xff] %vm379_vm0, %v1019_v1  ;;  %1302 = vst.msk [vmem:[#allocation2 + $0x30] sm:$0xff] %vm379_vm0, %v1292_v9  ;;  %v1293_v14 = vadd.f32 %v1274_v63, %v1037_v12 }
 0x163   : > { %v1311_v53 = vld [vmem:[#allocation2 + $0x28] sm:$0xff] }
 0x164   : > { %1303 = vst.msk [vmem:[#allocation2 + $0x38] sm:$0xff] %vm379_vm0, %v1293_v14 }
 0x167   : > { %v1038_v17 = vld [vmem:[#allocation2 + $0x40] sm:$0xff] }
 0x168   : > { %v1294_v18 = vadd.f32 %v1279_v11, %v1038_v17 }
 0x169   : > { %v1039_v19 = vld [vmem:[#allocation2 + $0x48] sm:$0xff]  ;;  %v1312_v2 = vld [vmem:[#allocation2 + $0x30] sm:$0xff] }
 0x16a   : > { %1304 = vst.msk [vmem:[#allocation2 + $0x40] sm:$0xff] %vm379_vm0, %v1294_v18  ;;  %v1295_v20 = vadd.f32 %v1282_v15, %v1039_v19 }
 0x16b   : > { %v1313_v6 = vld [vmem:[#allocation2 + $0x38] sm:$0xff] }
 0x16c   : > { %1305 = vst.msk [vmem:[#allocation2 + $0x48] sm:$0xff] %vm379_vm0, %v1295_v20 }
 0x16d   : > { %v1523_v22 = vpop.f32.mrb[40].mxu0 }
 0x16e   : > { %v1562_v23 = vadd.f32 %v1523_v22, %v1306_v21  ;;  %v1525_v24 = vpop.f32.mrb[41].mxu0  ;;  %v1799_v25 = vpop.f32.mrb[40].mxu1 }
 0x16f   : > { %v1526_v27 = vpop.f32.mrb[42].mxu0  ;;  %v1801_v28 = vpop.f32.mrb[41].mxu1 }
 0x170   : > { %1572 = vst.msk [vmem:[#allocation2] sm:$0xff] %vm379_vm0, %v1562_v23  ;;  %v1563_v29 = vadd.f32 %v1526_v27, %v1307_v26  ;;  %v1528_v30 = vpop.f32.mrb[43].mxu0  ;;  %v1802_v31 = vpop.f32.mrb[42].mxu1 }
 0x171   : > { %v1804_v32 = vpop.f32.mrb[43].mxu1  ;;  %v1314_v17 = vld [vmem:[#allocation2 + $0x40] sm:$0xff] }
 0x172   : > { %1573 = vst.msk [vmem:[#allocation2 + $0x8] sm:$0xff] %vm379_vm0, %v1563_v29 }
 0x173   : > { %v1315_v21 = vld [vmem:[#allocation2 + $0x48] sm:$0xff] }
 0x175   : > { %v1531_v34 = vpop.f32.mrb[44].mxu0 }
 0x176   : > { %v1564_v35 = vadd.f32 %v1531_v34, %v1308_v33  ;;  %v1533_v36 = vpop.f32.mrb[45].mxu0 }
 0x177   : > { %v1582_v37 = vld [vmem:[#allocation2] sm:$0xff]  ;;  %v1534_v39 = vpop.f32.mrb[46].mxu0 }
 0x178   : > { %v1838_v40 = vadd.f32 %v1799_v25, %v1582_v37  ;;  %1574 = vst.msk [vmem:[#allocation2 + $0x10] sm:$0xff] %vm379_vm0, %v1564_v35  ;;  %v1565_v41 = vadd.f32 %v1534_v39, %v1309_v38  ;;  %v1536_v42 = vpop.f32.mrb[47].mxu0  ;;  %v1807_v43 = vpop.f32.mrb[44].mxu1 }
 0x179   : > { %v1583_v44 = vld [vmem:[#allocation2 + $0x8] sm:$0xff]  ;;  %v1809_v45 = vpop.f32.mrb[45].mxu1 }
 0x17a   : > { %1848 = vst.msk [vmem:[#allocation2] sm:$0xff] %vm379_vm0, %v1838_v40  ;;  %v1839_v46 = vadd.f32 %v1802_v31, %v1583_v44  ;;  %1575 = vst.msk [vmem:[#allocation2 + $0x18] sm:$0xff] %vm379_vm0, %v1565_v41  ;;  %v1810_v47 = vpop.f32.mrb[46].mxu1 }
 0x17b   : > { %v1812_v48 = vpop.f32.mrb[47].mxu1 }
 0x17c   : > { %1849 = vst.msk [vmem:[#allocation2 + $0x8] sm:$0xff] %vm379_vm0, %v1839_v46 }
 0x17d   : > { %v1539_v50 = vpop.f32.mrb[48].mxu0 }
 0x17e   : > { %v1566_v51 = vadd.f32 %v1539_v50, %v1310_v49  ;;  %v1541_v52 = vpop.f32.mrb[49].mxu0 }
 0x17f   : > { %v1542_v54 = vpop.f32.mrb[50].mxu0  ;;  %v1584_v55 = vld [vmem:[#allocation2 + $0x10] sm:$0xff] }
 0x180   : > { %1576 = vst.msk [vmem:[#allocation2 + $0x20] sm:$0xff] %vm379_vm0, %v1566_v51  ;;  %v1567_v56 = vadd.f32 %v1542_v54, %v1311_v53  ;;  %v1840_v57 = vadd.f32 %v1807_v43, %v1584_v55  ;;  %v1544_v58 = vpop.f32.mrb[51].mxu0  ;;  %v1815_v59 = vpop.f32.mrb[48].mxu1 }
 0x181   : > { %v1585_v60 = vld [vmem:[#allocation2 + $0x18] sm:$0xff]  ;;  %v1817_v61 = vpop.f32.mrb[49].mxu1  ;;  %v1858_v37 = vld [vmem:[#allocation2] sm:$0xff] }
 0x182   : > { %1577 = vst.msk [vmem:[#allocation2 + $0x28] sm:$0xff] %vm379_vm0, %v1567_v56  ;;  %1850 = vst.msk [vmem:[#allocation2 + $0x10] sm:$0xff] %vm379_vm0, %v1840_v57  ;;  %v1841_v62 = vadd.f32 %v1810_v47, %v1585_v60  ;;  %v1818_v63 = vpop.f32.mrb[50].mxu1 }
 0x183   : > { %v1820_v0 = vpop.f32.mrb[51].mxu1  ;;  %v1859_v42 = vld [vmem:[#allocation2 + $0x8] sm:$0xff] }
 0x184   : > { %1851 = vst.msk [vmem:[#allocation2 + $0x18] sm:$0xff] %vm379_vm0, %v1841_v62 }
 0x185   : > { %v1547_v3 = vpop.f32.mrb[52].mxu0 }
 0x186   : > { %v1568_v4 = vadd.f32 %v1547_v3, %v1312_v2  ;;  %v1549_v5 = vpop.f32.mrb[53].mxu0 }
 0x187   : > { %v1550_v7 = vpop.f32.mrb[54].mxu0  ;;  %v1586_v8 = vld [vmem:[#allocation2 + $0x20] sm:$0xff] }
 0x188   : > { %1578 = vst.msk [vmem:[#allocation2 + $0x30] sm:$0xff] %vm379_vm0, %v1568_v4  ;;  %v1569_v1 = vadd.f32 %v1550_v7, %v1313_v6  ;;  %v1842_v9 = vadd.f32 %v1815_v59, %v1586_v8  ;;  %v1552_v10 = vpop.f32.mrb[55].mxu0  ;;  %v1823_v11 = vpop.f32.mrb[52].mxu1 }
 0x189   : > { %v1587_v12 = vld [vmem:[#allocation2 + $0x28] sm:$0xff]  ;;  %v1825_v13 = vpop.f32.mrb[53].mxu1  ;;  %v1860_v49 = vld [vmem:[#allocation2 + $0x10] sm:$0xff] }
 0x18a   : > { %1579 = vst.msk [vmem:[#allocation2 + $0x38] sm:$0xff] %vm379_vm0, %v1569_v1  ;;  %1852 = vst.msk [vmem:[#allocation2 + $0x20] sm:$0xff] %vm379_vm0, %v1842_v9  ;;  %v1843_v14 = vadd.f32 %v1818_v63, %v1587_v12  ;;  %v1826_v15 = vpop.f32.mrb[54].mxu1 }
 0x18b   : > { %v1828_v16 = vpop.f32.mrb[55].mxu1  ;;  %v1861_v54 = vld [vmem:[#allocation2 + $0x18] sm:$0xff] }
 0x18c   : > { %1853 = vst.msk [vmem:[#allocation2 + $0x28] sm:$0xff] %vm379_vm0, %v1843_v14 }
 0x18d   : > { %v1555_v18 = vpop.f32.mrb[56].mxu0 }
 0x18e   : > { %v1570_v19 = vadd.f32 %v1555_v18, %v1314_v17  ;;  %v1557_v20 = vpop.f32.mrb[57].mxu0 }
 0x18f   : > { %v1558_v22 = vpop.f32.mrb[58].mxu0  ;;  %v1588_v23 = vld [vmem:[#allocation2 + $0x30] sm:$0xff] }
 0x190   : > { %1580 = vst.msk [vmem:[#allocation2 + $0x40] sm:$0xff] %vm379_vm0, %v1570_v19  ;;  %v1571_v24 = vadd.f32 %v1558_v22, %v1315_v21  ;;  %v1844_v25 = vadd.f32 %v1823_v11, %v1588_v23  ;;  %v1560_v26 = vpop.f32.mrb[59].mxu0  ;;  %v1831_v27 = vpop.f32.mrb[56].mxu1 }
 0x191   : > { %v1589_v28 = vld [vmem:[#allocation2 + $0x38] sm:$0xff]  ;;  %v1833_v29 = vpop.f32.mrb[57].mxu1  ;;  %v1862_v2 = vld [vmem:[#allocation2 + $0x20] sm:$0xff] }
 0x192   : > { %1581 = vst.msk [vmem:[#allocation2 + $0x48] sm:$0xff] %vm379_vm0, %v1571_v24  ;;  %1854 = vst.msk [vmem:[#allocation2 + $0x30] sm:$0xff] %vm379_vm0, %v1844_v25  ;;  %v1845_v30 = vadd.f32 %v1826_v15, %v1589_v28  ;;  %v1834_v31 = vpop.f32.mrb[58].mxu1 }
 0x193   : > { %v1836_v32 = vpop.f32.mrb[59].mxu1  ;;  %v1863_v6 = vld [vmem:[#allocation2 + $0x28] sm:$0xff] }
 0x194   : > { %1855 = vst.msk [vmem:[#allocation2 + $0x38] sm:$0xff] %vm379_vm0, %v1845_v30 }
 0x197   : > { %v1590_v33 = vld [vmem:[#allocation2 + $0x40] sm:$0xff] }
 0x198   : > { %v1846_v34 = vadd.f32 %v1831_v27, %v1590_v33 }
 0x199   : > { %v1591_v35 = vld [vmem:[#allocation2 + $0x48] sm:$0xff]  ;;  %v1864_v17 = vld [vmem:[#allocation2 + $0x30] sm:$0xff] }
 0x19a   : > { %1856 = vst.msk [vmem:[#allocation2 + $0x40] sm:$0xff] %vm379_vm0, %v1846_v34  ;;  %v1847_v36 = vadd.f32 %v1834_v31, %v1591_v35 }
 0x19b   : > { %v1865_v21 = vld [vmem:[#allocation2 + $0x38] sm:$0xff] }
 0x19c   : > { %1857 = vst.msk [vmem:[#allocation2 + $0x48] sm:$0xff] %vm379_vm0, %v1847_v36 }
 0x19d   : > { %v2075_v38 = vpop.f32.mrb[60].mxu0 }
 0x19e   : > { %v2114_v39 = vadd.f32 %v2075_v38, %v1858_v37  ;;  %v2077_v40 = vpop.f32.mrb[61].mxu0  ;;  %v2351_v41 = vpop.f32.mrb[60].mxu1 }
 0x19f   : > { %v2078_v43 = vpop.f32.mrb[62].mxu0  ;;  %v2353_v44 = vpop.f32.mrb[61].mxu1 }
 0x1a0   : > { %2124 = vst.msk [vmem:[#allocation2] sm:$0xff] %vm379_vm0, %v2114_v39  ;;  %v2115_v45 = vadd.f32 %v2078_v43, %v1859_v42  ;;  %v2080_v46 = vpop.f32.mrb[63].mxu0  ;;  %v2354_v47 = vpop.f32.mrb[62].mxu1 }
 0x1a1   : > { %v2356_v48 = vpop.f32.mrb[63].mxu1  ;;  %v1866_v33 = vld [vmem:[#allocation2 + $0x40] sm:$0xff] }
 0x1a2   : > { %2125 = vst.msk [vmem:[#allocation2 + $0x8] sm:$0xff] %vm379_vm0, %v2115_v45 }
 0x1a3   : > { %v1867_v37 = vld [vmem:[#allocation2 + $0x48] sm:$0xff] }
 0x1a5   : > { %v2083_v50 = vpop.f32.mrb[64].mxu0 }
 0x1a6   : > { %v2116_v51 = vadd.f32 %v2083_v50, %v1860_v49  ;;  %v2085_v52 = vpop.f32.mrb[65].mxu0 }
 0x1a7   : > { %v2134_v53 = vld [vmem:[#allocation2] sm:$0xff]  ;;  %v2086_v55 = vpop.f32.mrb[66].mxu0 }
 0x1a8   : > { %v2390_v56 = vadd.f32 %v2351_v41, %v2134_v53  ;;  %2126 = vst.msk [vmem:[#allocation2 + $0x10] sm:$0xff] %vm379_vm0, %v2116_v51  ;;  %v2117_v57 = vadd.f32 %v2086_v55, %v1861_v54  ;;  %v2088_v58 = vpop.f32.mrb[67].mxu0  ;;  %v2359_v59 = vpop.f32.mrb[64].mxu1 }
 0x1a9   : > { %v2135_v60 = vld [vmem:[#allocation2 + $0x8] sm:$0xff]  ;;  %v2361_v61 = vpop.f32.mrb[65].mxu1 }
 0x1aa   : > { %2400 = vst.msk [vmem:[#allocation2] sm:$0xff] %vm379_vm0, %v2390_v56  ;;  %v2391_v62 = vadd.f32 %v2354_v47, %v2135_v60  ;;  %2127 = vst.msk [vmem:[#allocation2 + $0x18] sm:$0xff] %vm379_vm0, %v2117_v57  ;;  %v2362_v63 = vpop.f32.mrb[66].mxu1 }
 0x1ab   : > { %v2364_v0 = vpop.f32.mrb[67].mxu1 }
 0x1ac   : > { %2401 = vst.msk [vmem:[#allocation2 + $0x8] sm:$0xff] %vm379_vm0, %v2391_v62 }
 0x1ad   : > { %v2091_v3 = vpop.f32.mrb[68].mxu0 }
 0x1ae   : > { %v2118_v4 = vadd.f32 %v2091_v3, %v1862_v2  ;;  %v2093_v5 = vpop.f32.mrb[69].mxu0 }
 0x1af   : > { %v2094_v7 = vpop.f32.mrb[70].mxu0  ;;  %v2136_v8 = vld [vmem:[#allocation2 + $0x10] sm:$0xff] }
 0x1b0   : > { %2128 = vst.msk [vmem:[#allocation2 + $0x20] sm:$0xff] %vm379_vm0, %v2118_v4  ;;  %v2119_v1 = vadd.f32 %v2094_v7, %v1863_v6  ;;  %v2392_v9 = vadd.f32 %v2359_v59, %v2136_v8  ;;  %v2096_v10 = vpop.f32.mrb[71].mxu0  ;;  %v2367_v11 = vpop.f32.mrb[68].mxu1  ;;  %v4519_v6 = vld [vmem:[%s4597_s2] ss:$0 sm:$0xff] }
 0x1b1   : > { %v2137_v12 = vld [vmem:[#allocation2 + $0x18] sm:$0xff]  ;;  %v2369_v13 = vpop.f32.mrb[69].mxu1  ;;  %v2410_v53 = vld [vmem:[#allocation2] sm:$0xff] }
 0x1b2   : > { %2129 = vst.msk [vmem:[#allocation2 + $0x28] sm:$0xff] %vm379_vm0, %v2119_v1  ;;  %2402 = vst.msk [vmem:[#allocation2 + $0x10] sm:$0xff] %vm379_vm0, %v2392_v9  ;;  %v2393_v14 = vadd.f32 %v2362_v63, %v2137_v12  ;;  %v2370_v15 = vpop.f32.mrb[70].mxu1  ;;  %v4526_v13 = vld [vmem:[%s4598_s3] ss:$0 sm:$0xff] }
 0x1b3   : > { %v2372_v16 = vpop.f32.mrb[71].mxu1  ;;  %v2411_v61 = vld [vmem:[#allocation2 + $0x8] sm:$0xff] }
 0x1b4   : > { %2403 = vst.msk [vmem:[#allocation2 + $0x18] sm:$0xff] %vm379_vm0, %v2393_v14 }
 0x1b5   : > { %v2099_v18 = vpop.f32.mrb[72].mxu0 }
 0x1b6   : > { %v2120_v19 = vadd.f32 %v2099_v18, %v1864_v17  ;;  %v2101_v20 = vpop.f32.mrb[73].mxu0 }
 0x1b7   : > { %v2102_v22 = vpop.f32.mrb[74].mxu0  ;;  %v2138_v23 = vld [vmem:[#allocation2 + $0x20] sm:$0xff] }
 0x1b8   : > { %2130 = vst.msk [vmem:[#allocation2 + $0x30] sm:$0xff] %vm379_vm0, %v2120_v19  ;;  %v2121_v24 = vadd.f32 %v2102_v22, %v1865_v21  ;;  %v2394_v25 = vadd.f32 %v2367_v11, %v2138_v23  ;;  %v2104_v26 = vpop.f32.mrb[75].mxu0  ;;  %v2375_v27 = vpop.f32.mrb[72].mxu1 }
 0x1b9   : > { %v2139_v28 = vld [vmem:[#allocation2 + $0x28] sm:$0xff]  ;;  %v2377_v29 = vpop.f32.mrb[73].mxu1  ;;  %v2412_v7 = vld [vmem:[#allocation2 + $0x10] sm:$0xff] }
 0x1ba   : > { %2131 = vst.msk [vmem:[#allocation2 + $0x38] sm:$0xff] %vm379_vm0, %v2121_v24  ;;  %2404 = vst.msk [vmem:[#allocation2 + $0x20] sm:$0xff] %vm379_vm0, %v2394_v25  ;;  %v2395_v30 = vadd.f32 %v2370_v15, %v2139_v28  ;;  %v2378_v31 = vpop.f32.mrb[74].mxu1 }
 0x1bb   : > { %v2380_v32 = vpop.f32.mrb[75].mxu1  ;;  %v2413_v16 = vld [vmem:[#allocation2 + $0x18] sm:$0xff] }
 0x1bc   : > { %2405 = vst.msk [vmem:[#allocation2 + $0x28] sm:$0xff] %vm379_vm0, %v2395_v30 }
 0x1bd   : > { %v2107_v34 = vpop.f32.mrb[76].mxu0 }
 0x1be   : > { %v2122_v35 = vadd.f32 %v2107_v34, %v1866_v33  ;;  %v2109_v36 = vpop.f32.mrb[77].mxu0 }
 0x1bf   : > { %v2110_v38 = vpop.f32.mrb[78].mxu0  ;;  %v2140_v39 = vld [vmem:[#allocation2 + $0x30] sm:$0xff] }
 0x1c0   : > { %2132 = vst.msk [vmem:[#allocation2 + $0x40] sm:$0xff] %vm379_vm0, %v2122_v35  ;;  %v2123_v40 = vadd.f32 %v2110_v38, %v1867_v37  ;;  %v2396_v41 = vadd.f32 %v2375_v27, %v2140_v39  ;;  %v2112_v42 = vpop.f32.mrb[79].mxu0  ;;  %v2383_v43 = vpop.f32.mrb[76].mxu1 }
 0x1c1   : > { %v2141_v44 = vld [vmem:[#allocation2 + $0x38] sm:$0xff]  ;;  %v2385_v45 = vpop.f32.mrb[77].mxu1  ;;  %v2414_v37 = vld [vmem:[#allocation2 + $0x20] sm:$0xff] }
 0x1c2   : > { %2133 = vst.msk [vmem:[#allocation2 + $0x48] sm:$0xff] %vm379_vm0, %v2123_v40  ;;  %2406 = vst.msk [vmem:[#allocation2 + $0x30] sm:$0xff] %vm379_vm0, %v2396_v41  ;;  %v2397_v46 = vadd.f32 %v2378_v31, %v2141_v44  ;;  %v2386_v47 = vpop.f32.mrb[78].mxu1 }
 0x1c3   : > { %v2388_v48 = vpop.f32.mrb[79].mxu1 }
 0x1c4   : > { %2407 = vst.msk [vmem:[#allocation2 + $0x38] sm:$0xff] %vm379_vm0, %v2397_v46  ;;  %v2415_v46 = vld [vmem:[#allocation2 + $0x28] sm:$0xff] }
 0x1c7   : > { %v2142_v49 = vld [vmem:[#allocation2 + $0x40] sm:$0xff] }
 0x1c8   : > { %v2398_v50 = vadd.f32 %v2383_v43, %v2142_v49 }
 0x1c9   : > { %v2143_v51 = vld [vmem:[#allocation2 + $0x48] sm:$0xff]  ;;  %v2416_v56 = vld [vmem:[#allocation2 + $0x30] sm:$0xff] }
 0x1ca   : > { %2408 = vst.msk [vmem:[#allocation2 + $0x40] sm:$0xff] %vm379_vm0, %v2398_v50  ;;  %v2399_v52 = vadd.f32 %v2386_v47, %v2143_v51 }
 0x1cb   : > { %v2417_v0 = vld [vmem:[#allocation2 + $0x38] sm:$0xff] }
 0x1cc   : > { %2409 = vst.msk [vmem:[#allocation2 + $0x48] sm:$0xff] %vm379_vm0, %v2399_v52 }
 0x1cd   : > { %v2627_v54 = vpop.f32.mrb[80].mxu0 }
 0x1ce   : > { %v2666_v55 = vadd.f32 %v2627_v54, %v2410_v53  ;;  %v2651_v57 = vpop.f32.mrb[80].mxu1  ;;  %v2629_v58 = vpop.f32.mrb[81].mxu0 }
 0x1cf   : > { %v2672_v59 = vadd.f32 %v2651_v57, %v2416_v56  ;;  %v2653_v60 = vpop.f32.mrb[81].mxu1  ;;  %v2630_v62 = vpop.f32.mrb[82].mxu0 }
 0x1d0   : > { %2676 = vst.msk [vmem:[#allocation2] sm:$0xff] %vm379_vm0, %v2666_v55  ;;  %v2667_v63 = vadd.f32 %v2630_v62, %v2411_v61  ;;  %v2654_v2 = vpop.f32.mrb[82].mxu1  ;;  %v2632_v3 = vpop.f32.mrb[83].mxu0 }
 0x1d1   : > { %2682 = vst.msk [vmem:[#allocation2 + $0x30] sm:$0xff] %vm379_vm0, %v2672_v59  ;;  %v2673_v4 = vadd.f32 %v2654_v2, %v2417_v0  ;;  %v2656_v5 = vpop.f32.mrb[83].mxu1  ;;  %v2418_v9 = vld [vmem:[#allocation2 + $0x40] sm:$0xff] }
 0x1d2   : > { %2677 = vst.msk [vmem:[#allocation2 + $0x8] sm:$0xff] %vm379_vm0, %v2667_v63 }
 0x1d3   : > { %2683 = vst.msk [vmem:[#allocation2 + $0x38] sm:$0xff] %vm379_vm0, %v2673_v4  ;;  %v2419_v21 = vld [vmem:[#allocation2 + $0x48] sm:$0xff] }
 0x1d5   : > { %v2635_v8 = vpop.f32.mrb[84].mxu0 }
 0x1d6   : > { %v2668_v1 = vadd.f32 %v2635_v8, %v2412_v7  ;;  %v2659_v10 = vpop.f32.mrb[84].mxu1  ;;  %v2637_v11 = vpop.f32.mrb[85].mxu0 }
 0x1d7   : > { %v2686_v12 = vld [vmem:[#allocation2] sm:$0xff]  ;;  %v2674_v14 = vadd.f32 %v2659_v10, %v2418_v9  ;;  %v2661_v15 = vpop.f32.mrb[85].mxu1  ;;  %v2638_v17 = vpop.f32.mrb[86].mxu0 }
 0x1d8   : > { %v2703_v18 = vmul.f32 %v4519_v6, %v2686_v12  ;;  %v2692_v19 = vld [vmem:[#allocation2 + $0x30] sm:$0xff]  ;;  %2678 = vst.msk [vmem:[#allocation2 + $0x10] sm:$0xff] %vm379_vm0, %v2668_v1  ;;  %v2669_v20 = vadd.f32 %v2638_v17, %v2413_v16  ;;  %v2662_v22 = vpop.f32.mrb[86].mxu1  ;;  %v2640_v23 = vpop.f32.mrb[87].mxu0 }
 0x1d9   : > { %v2709_v24 = vmul.f32 %v4519_v6, %v2692_v19  ;;  %v2687_v25 = vld [vmem:[#allocation2 + $0x8] sm:$0xff]  ;;  %2684 = vst.msk [vmem:[#allocation2 + $0x40] sm:$0xff] %vm379_vm0, %v2674_v14  ;;  %v2675_v26 = vadd.f32 %v2662_v22, %v2419_v21  ;;  %v2664_v27 = vpop.f32.mrb[87].mxu1 }
 0x1da   : > { %v2720_v28 = vadd.f32 %v4526_v13, %v2703_v18  ;;  %v2704_v29 = vmul.f32 %v4519_v6, %v2687_v25  ;;  %v2693_v30 = vld [vmem:[#allocation2 + $0x38] sm:$0xff]  ;;  %2679 = vst.msk [vmem:[#allocation2 + $0x18] sm:$0xff] %vm379_vm0, %v2669_v20 }
 0x1db   : > { %v2726_v31 = vadd.f32 %v4526_v13, %v2709_v24  ;;  %v2710_v32 = vmul.f32 %v4519_v6, %v2693_v30  ;;  %2685 = vst.msk [vmem:[#allocation2 + $0x48] sm:$0xff] %vm379_vm0, %v2675_v26 }
 0x1dc   : > { %v2730_v33 = vmax.f32 %v2720_v28, 0.0  ;;  %v2721_v34 = vadd.f32 %v4526_v13, %v2704_v29 }
 0x1dd   : > { %v2736_v35 = vmax.f32 %v2726_v31, 0.0  ;;  %v2727_v36 = vadd.f32 %v4526_v13, %v2710_v32  ;;  %v2643_v38 = vpop.f32.mrb[88].mxu0 }
 0x1de   : > { %v3376_v39 = vpack.c.bf16 %v2730_v33, %v2730_v33  ;;  %v2731_v40 = vmax.f32 %v2721_v34, 0.0  ;;  %v2670_v41 = vadd.f32 %v2643_v38, %v2414_v37  ;;  %v2645_v42 = vpop.f32.mrb[89].mxu0 }
 0x1df   : > { %v3382_v43 = vpack.c.bf16 %v2736_v35, %v2736_v35  ;;  %v2737_v44 = vmax.f32 %v2727_v36, 0.0  ;;  %v2688_v45 = vld [vmem:[#allocation2 + $0x10] sm:$0xff]  ;;  %v2646_v47 = vpop.f32.mrb[90].mxu0 }
 0x1e0   : > { %2781 = vst.msk [vmem:[%s4543_s25] sm:$0xf] %vm2780_vm1, %v3376_v39  ;;  %v3377_v48 = vpack.c.bf16 %v2731_v40, %v2731_v40  ;;  %v2705_v49 = vmul.f32 %v4519_v6, %v2688_v45  ;;  %v2694_v50 = vld [vmem:[#allocation2 + $0x40] sm:$0xff]  ;;  %v2671_v51 = vadd.f32 %v2646_v47, %v2415_v46  ;;  %v2648_v52 = vpop.f32.mrb[91].mxu0 }
 0x1e1   : > { %2680 = vst.msk [vmem:[#allocation2 + $0x20] sm:$0xff] %vm379_vm0, %v2670_v41  ;;  %v3383_v53 = vpack.c.bf16 %v2737_v44, %v2737_v44  ;;  %v2711_v54 = vmul.f32 %v4519_v6, %v2694_v50  ;;  %v2689_v55 = vld [vmem:[#allocation2 + $0x18] sm:$0xff] }
 0x1e2   : > { %2787 = vst.msk [vmem:[%s4543_s25 + $0x18] sm:$0xf] %vm2780_vm1, %v3382_v43  ;;  %2782 = vst.msk [vmem:[%s4543_s25 + $0x4] sm:$0xf] %vm2780_vm1, %v3377_v48  ;;  %v2722_v56 = vadd.f32 %v4526_v13, %v2705_v49  ;;  %v2706_v57 = vmul.f32 %v4519_v6, %v2689_v55  ;;  %v2695_v58 = vld [vmem:[#allocation2 + $0x48] sm:$0xff] }
 0x1e3   : > { %2681 = vst.msk [vmem:[#allocation2 + $0x28] sm:$0xff] %vm379_vm0, %v2671_v51  ;;  %v2728_v59 = vadd.f32 %v4526_v13, %v2711_v54  ;;  %v2712_v60 = vmul.f32 %v4519_v6, %v2695_v58 }
 0x1e4   : > { %2788 = vst.msk [vmem:[%s4543_s25 + $0x1c] sm:$0xf] %vm2780_vm1, %v3383_v53  ;;  %v2732_v61 = vmax.f32 %v2722_v56, 0.0  ;;  %v2723_v62 = vadd.f32 %v4526_v13, %v2706_v57 }
 0x1e5   : > { %v2738_v63 = vmax.f32 %v2728_v59, 0.0  ;;  %v2729_v0 = vadd.f32 %v4526_v13, %v2712_v60 }
 0x1e6   : > { %v3378_v2 = vpack.c.bf16 %v2732_v61, %v2732_v61  ;;  %v2733_v3 = vmax.f32 %v2723_v62, 0.0 }
 0x1e7   : > { %v3384_v4 = vpack.c.bf16 %v2738_v63, %v2738_v63  ;;  %v2739_v5 = vmax.f32 %v2729_v0, 0.0 }
 0x1e8   : > { %v2690_v7 = vld [vmem:[#allocation2 + $0x20] sm:$0xff]  ;;  %2783 = vst.msk [vmem:[%s4543_s25 + $0x8] sm:$0xf] %vm2780_vm1, %v3378_v2  ;;  %v3379_v8 = vpack.c.bf16 %v2733_v3, %v2733_v3 }
 0x1e9   : > { %v2707_v1 = vmul.f32 %v4519_v6, %v2690_v7  ;;  %2789 = vst.msk [vmem:[%s4543_s25 + $0x20] sm:$0xf] %vm2780_vm1, %v3384_v4  ;;  %v3385_v9 = vpack.c.bf16 %v2739_v5, %v2739_v5 }
 0x1ea   : > { %v2691_v10 = vld [vmem:[#allocation2 + $0x28] sm:$0xff]  ;;  %2784 = vst.msk [vmem:[%s4543_s25 + $0xc] sm:$0xf] %vm2780_vm1, %v3379_v8 }
 0x1eb   : > { %v2724_v11 = vadd.f32 %v4526_v13, %v2707_v1  ;;  %v2708_v12 = vmul.f32 %v4519_v6, %v2691_v10  ;;  %2790 = vst.msk [vmem:[%s4543_s25 + $0x24] sm:$0xf] %vm2780_vm1, %v3385_v9 }
 0x1ed   : > { %v2734_v14 = vmax.f32 %v2724_v11, 0.0  ;;  %v2725_v15 = vadd.f32 %v4526_v13, %v2708_v12 }
 0x1ef   : > { %v3380_v16 = vpack.c.bf16 %v2734_v14, %v2734_v14  ;;  %v2735_v17 = vmax.f32 %v2725_v15, 0.0 }
 0x1f1   : > { %2785 = vst.msk [vmem:[%s4543_s25 + $0x10] sm:$0xf] %vm2780_vm1, %v3380_v16  ;;  %v3381_v18 = vpack.c.bf16 %v2735_v17, %v2735_v17 }
 0x1f3   : > { %2786 = vst.msk [vmem:[%s4543_s25 + $0x14] sm:$0xf] %vm2780_vm1, %v3381_v18 }
 0x1f4 PF: > { %s14_s19 = sadd.s32 1, %s3734_s19   ;;  %s4601_s15 = smov %s3726_s17 }
 0x1f5   : > { %p11_p7 = scmp.ge.s32.totalorder %s14_s19, 10   ;;  %s4602_s16 = smov %s3730_s18 }
 0x1f6   : > { %s4603_s17 = smov %s4606_s20  ;;  %s4604_s18 = smov %s4610_s21 }
 0x1f7   :  { %13 = sbr.rel (!%p11_p7) target bundleno = 3 (0x3), region = 83 }

</bundles_post_ra>
